<compile_context>
chip_gen: v6e
topology: v6e:2x2x1
jax: 0.10.0
libtpu: 0.0.40
codegen_flags: <defaults>
</compile_context>

<pallas_src>
import jax
import jax.numpy as jnp
from jax import lax
from jax.experimental import pallas as pl
from jax.experimental.pallas import tpu as pltpu


def _cdiv(a, b):
    return -(-a // b)


def _round_up(x, m):
    return _cdiv(x, m) * m


# ------------------------------------------------------------------ kernels
def _fused_upsample_kernel(top_ref, bot_ref, w_ref, b_ref, o_ref):
    """Fused patch-build + 4-tap GEMM + bias, bf16 store.

    top_ref/bot_ref: (1, ta, W+2, Cp)  padded-input views (dh = 0 / dh = 1), bf16
    w_ref          : (4, Cp, Ncp)      fused per-tap weights, tap k = 2*dh + dw, bf16
    b_ref          : (1, Ncp)          f32 bias (tiled over the 4 parities)
    o_ref          : (1, ta, W+1, Ncp) per-anchor parity outputs, compute dtype
    """
    _, ta, wp2, cp = top_ref.shape
    wp1 = wp2 - 1
    ncp = o_ref.shape[3]
    rows = ta * wp1

    def tap(view, k):
        # (ta, W+1, Cp) -> (ta*(W+1), Cp) GEMM LHS; f32 MXU accumulation.
        return jnp.dot(view.reshape(rows, cp), w_ref[k],
                       preferred_element_type=jnp.float32)

    acc = tap(top_ref[0, :, 0:wp1, :], 0)          # (dh, dw) = (0, 0)
    acc = acc + tap(top_ref[0, :, 1:wp2, :], 1)    # (0, 1)
    acc = acc + tap(bot_ref[0, :, 0:wp1, :], 2)    # (1, 0)
    acc = acc + tap(bot_ref[0, :, 1:wp2, :], 3)    # (1, 1)
    acc = acc + b_ref[...]                         # f32 bias add
    o_ref[0] = acc.reshape(ta, wp1, ncp).astype(o_ref.dtype)   # cast on store (bf16)


def _gemm_bias_kernel(a_ref, w_ref, b_ref, o_ref):
    """Fallback: plain lane-dense GEMM + bias on a wrapper-built patch matrix."""
    acc = jnp.dot(a_ref[...], w_ref[...], preferred_element_type=jnp.float32)
    o_ref[...] = (acc + b_ref[...]).astype(o_ref.dtype)


def _fallback_gemm(x_top, x_bot, w_all, b_cat, N, Hp1, Wp1, Wp2, Cp, Ncp,
                   compute_dtype, budget):
    # TODO(synk): fallback (wrapper-built patch matrix) only for Mosaic builds that
    # reject the fused kernel's in-kernel slicing/reshape; still bf16-out / lane-dense.
    A = jnp.concatenate([x_top[:, :, 0:Wp1, :], x_top[:, :, 1:Wp2, :],
                         x_bot[:, :, 0:Wp1, :], x_bot[:, :, 1:Wp2, :]],
                        axis=-1).reshape(N * Hp1 * Wp1, 4 * Cp)
    w2d = w_all.reshape(4 * Cp, Ncp)
    M = A.shape[0]
    it = jnp.dtype(compute_dtype).itemsize
    tm = 128
    while ((2 * tm * 4 * Cp * it + 2 * tm * Ncp * it + 2 * 4 * Cp * Ncp * it
            + tm * Ncp * 4) * 2 < budget and tm < 1024
           and tm * 2 <= _round_up(M, 128)):
        tm *= 2
    out2d = pl.pallas_call(
        _gemm_bias_kernel,
        out_shape=jax.ShapeDtypeStruct((M, Ncp), compute_dtype),
        grid=(_cdiv(M, tm),),
        in_specs=[pl.BlockSpec((tm, 4 * Cp), lambda i: (i, 0)),
                  pl.BlockSpec((4 * Cp, Ncp), lambda i: (0, 0)),
                  pl.BlockSpec((1, Ncp), lambda i: (0, 0))],
        out_specs=pl.BlockSpec((tm, Ncp), lambda i: (i, 0)),
        compiler_params=pltpu.CompilerParams(
            dimension_semantics=("parallel",),
            vmem_limit_bytes=int(min(budget, 64 << 20))),
    )(A, w2d, b_cat)
    return out2d.reshape(N, Hp1, Wp1, Ncp)


# ------------------------------------------------------------------ wrapper
def upsample_conv_transpose(x_nchw, weight, bias, *, compute_dtype=jnp.bfloat16,
                            channels_last=False, target_rows=1024):
    """ConvTranspose2d(dim, dim, 4, stride=2, padding=1) forward.

    x_nchw : (N, C, H, W) float32
    weight : (C_in, C_out, 4, 4)  (PyTorch ConvTranspose2d layout, C_in == C_out == dim)
    bias   : (C_out,)
    returns: (N, C, 2H, 2W) float32 (or (N, 2H, 2W, C) if channels_last=True)
    Set compute_dtype=jnp.float32 for a full-precision fallback (review concern #1).
    """
    N, C, H, W = x_nchw.shape
    out_dtype = x_nchw.dtype
    Hp1, Wp1, Wp2 = H + 1, W + 1, W + 2

    # K (per-tap reduction) padded to a multiple of 32 (lane-aligned when C%128==0);
    # output columns padded to a multiple of 128 for unmasked, lane-dense stores.
    Cp = _round_up(C, 32)
    Ncp = _round_up(4 * C, 128)

    # ---- wrapper glue: padded NHWC input + the two row-shifted (dh=0/1) views -------
    x_nhwc = jnp.transpose(x_nchw, (0, 2, 3, 1)).astype(compute_dtype)
    xp = jnp.pad(x_nhwc, ((0, 0), (1, 1), (1, 1), (0, Cp - C)))     # (N, H+2, W+2, Cp)
    x_top = xp[:, 0:Hp1]        # anchor row a -> xp row a       (dh = 0)
    x_bot = xp[:, 1:H + 2]      # anchor row a -> xp row a + 1   (dh = 1)

    # ---- fused per-tap weights: tap k = 2*dh + dw; parity p = 2*r + s owns cols p*C;
    #      ConvTranspose tap (kh, kw) = (3 - r - 2*dh, 3 - s - 2*dw) -----------------
    wf = weight.astype(jnp.float32)
    taps = []
    for dh in range(2):
        for dw in range(2):
            cols = [wf[:, :, 3 - r - 2 * dh, 3 - s - 2 * dw]        # each (C_in, C_out)
                    for r in range(2) for s in range(2)]
            taps.append(jnp.concatenate(cols, axis=1))              # (C, 4C)
    w_all = jnp.stack(taps, axis=0)                                  # (4, C, 4C)
    w_all = jnp.pad(w_all, ((0, 0), (0, Cp - C), (0, Ncp - 4 * C))).astype(compute_dtype)
    b_cat = jnp.pad(jnp.tile(bias.astype(jnp.float32), 4),
                    (0, Ncp - 4 * C)).reshape(1, Ncp)

    # ---- tiling & VMEM budget --------------------------------------------------------
    a_item = jnp.dtype(compute_dtype).itemsize

    def fused_vmem(ta_, single_buffer_consts):
        cbuf = 1 if single_buffer_consts else 2
        return (2 * 2 * ta_ * Wp2 * Cp * a_item       # two input views, double-buffered
                + 2 * ta_ * Wp1 * Ncp * a_item        # output tile, double-buffered
                + cbuf * 4 * Cp * Ncp * a_item        # fused weights (constant block)
                + cbuf * Ncp * 4                      # bias
                + ta_ * Wp1 * Ncp * 4)                # f32 accumulator

    # Budget per core: ~75% of physical VMEM, capped at ~100 MiB
    # (v5e/v6e: 128 MiB -> ~96 MiB; v7x: 64 MiB -> ~48 MiB).
    try:
        phys_vmem = int(pltpu.get_tpu_info().vmem_capacity_bytes)
    except Exception:
        phys_vmem = 64 << 20
    budget = min((phys_vmem * 3) // 4, 100 << 20)

    # Anchor-row tile: ~target_rows GEMM rows per block, >= 8 grid blocks for the
    # 2-TC split where possible, shrink to fit the VMEM budget, prefer an even total.
    ta = max(1, min(Hp1, target_rows // Wp1))
    min_blocks = 8
    if N * _cdiv(Hp1, ta) < min_blocks:
        ta = _cdiv(Hp1, min(Hp1, _cdiv(min_blocks, N)))
    while fused_vmem(ta, True) > budget and ta > 1:
        ta = max(1, ta // 2)
    nblk = _cdiv(Hp1, ta)
    if (N * nblk) % 2 == 1 and nblk < Hp1:            # even split across 2 TensorCores
        ta = _cdiv(Hp1, nblk + 1)
        nblk = _cdiv(Hp1, ta)

    has_buffered = hasattr(pl, "Buffered")

    def build_fused(single_buffer_consts):
        use_buf = single_buffer_consts and has_buffered
        const_kw = {"pipeline_mode": pl.Buffered(1)} if use_buf else {}
        need = fused_vmem(ta, use_buf)
        vmem_limit = int(min(budget, max(need * 5 // 4 + (2 << 20), 16 << 20)))
        return pl.pallas_call(
            _fused_upsample_kernel,
            out_shape=jax.ShapeDtypeStruct((N, Hp1, Wp1, Ncp), compute_dtype),
            grid=(N, nblk),
            in_specs=[
                pl.BlockSpec((1, ta, Wp2, Cp), lambda n, i: (n, i, 0, 0)),
                pl.BlockSpec((1, ta, Wp2, Cp), lambda n, i: (n, i, 0, 0)),
                pl.BlockSpec((4, Cp, Ncp), lambda n, i: (0, 0, 0), **const_kw),
                pl.BlockSpec((1, Ncp), lambda n, i: (0, 0), **const_kw),
            ],
            out_specs=pl.BlockSpec((1, ta, Wp1, Ncp), lambda n, i: (n, i, 0, 0)),
            compiler_params=pltpu.CompilerParams(
                dimension_semantics=("parallel", "parallel"),
                vmem_limit_bytes=vmem_limit,
            ),
        )

    out4 = None
    for single_buffer_consts in (True, False):
        try:
            out4 = jax.block_until_ready(
                build_fused(single_buffer_consts)(x_top, x_bot, w_all, b_cat))
            break
        except Exception:
            out4 = None
    if out4 is None:
        out4 = _fallback_gemm(x_top, x_bot, w_all, b_cat, N, Hp1, Wp1, Wp2, Cp, Ncp,
                              compute_dtype, budget)

    # ---- epilogue: parity select + pixel-shuffle interleave, one pass in bf16 --------
    P = out4                                               # (N, H+1, W+1, Ncp)
    p00 = P[:, 0:H,   0:W,   0 * C:1 * C]                  # out[2i,   2j]
    p01 = P[:, 0:H,   1:Wp1, 1 * C:2 * C]                  # out[2i,   2j+1]
    p10 = P[:, 1:Hp1, 0:W,   2 * C:3 * C]                  # out[2i+1, 2j]
    p11 = P[:, 1:Hp1, 1:Wp1, 3 * C:4 * C]                  # out[2i+1, 2j+1]
    y = jnp.stack([jnp.stack([p00, p01], axis=3),
                   jnp.stack([p10, p11], axis=3)], axis=2)  # (N, H, 2, W, 2, C)
    y = y.reshape(N, 2 * H, 2 * W, C)
    if channels_last:
        return y.astype(out_dtype)
    return jnp.transpose(y, (0, 3, 1, 2)).astype(out_dtype)


# ------------------------------------------------------------------ reference / test
def _reference_conv_transpose(x_nchw, weight, bias):
    """Pure-XLA reference matching PyTorch ConvTranspose2d(dim, dim, 4, 2, 1)."""
    C = weight.shape[1]
    w_oihw = jnp.transpose(weight[:, :, ::-1, ::-1], (1, 0, 2, 3))   # (oc, ic, kh, kw)
    out = lax.conv_general_dilated(
        x_nchw, w_oihw,
        window_strides=(1, 1),
        padding=((2, 2), (2, 2)),
        lhs_dilation=(2, 2),
        dimension_numbers=("NCHW", "OIHW", "NCHW"),
        precision=lax.Precision.HIGHEST,
    )
    return out + bias.reshape(1, C, 1, 1)


if __name__ == "__main__":
    key = jax.random.PRNGKey(0)
    k_x, k_w, k_b = jax.random.split(key, 3)

    N, dim, H, W = 2, 4, 16, 16
    x = jax.random.normal(k_x, (N, dim, H, W), dtype=jnp.float32)
    # PyTorch ConvTranspose2d weight layout: (C_in, C_out, kH, kW)
    weight = 0.1 * jax.random.normal(k_w, (dim, dim, 4, 4), dtype=jnp.float32)
    bias = 0.1 * jax.random.normal(k_b, (dim,), dtype=jnp.float32)

    out = jax.block_until_ready(upsample_conv_transpose(x, weight, bias))
    assert out.shape == (N, dim, 2 * H, 2 * W), out.shape

    # Kernel math: bf16 operands, f32 MXU accumulation, bf16 store -> compare against
    # the XLA reference on the same bf16-rounded operands at bf16 output tolerance.
    xq = x.astype(jnp.bfloat16).astype(jnp.float32)
    wq = weight.astype(jnp.bfloat16).astype(jnp.float32)
    ref = jax.block_until_ready(_reference_conv_transpose(xq, wq, bias))
    max_err = float(jnp.max(jnp.abs(out - ref)))
    assert jnp.allclose(out, ref, rtol=1e-2, atol=1e-2), max_err

    print("KERNEL_OK")
</pallas_src>

<mosaic_0001>
module attributes {stable_mosaic.version = 11 : i64} {
  func.func @_fused_upsample_kernel(%arg0: i32, %arg1: i32, %arg2: memref<1x5x18x32xbf16, #tpu.memory_space<vmem>>, %arg3: memref<1x5x18x32xbf16, #tpu.memory_space<vmem>>, %arg4: memref<4x32x128xbf16, #tpu.memory_space<vmem>>, %arg5: memref<1x128xf32, #tpu.memory_space<vmem>>, %arg6: memref<1x5x17x128xbf16, #tpu.memory_space<vmem>>) attributes {dimension_semantics = [#tpu.dimension_semantics<parallel>, #tpu.dimension_semantics<parallel>], iteration_bounds = array<i64: 2, 4>, scalar_prefetch = 0 : i64, scratch_operands = 0 : i64, tpu.core_type = #tpu.core_type<tc>, window_params = [{transform_indices = @transform_0, window_bounds = array<i64: 1, 5, 18, 32>}, {transform_indices = @transform_1, window_bounds = array<i64: 1, 5, 18, 32>}, {pipeline_mode = #tpu.pipeline_mode<synchronous>, transform_indices = @transform_2, window_bounds = array<i64: 4, 32, 128>}, {pipeline_mode = #tpu.pipeline_mode<synchronous>, transform_indices = @transform_3, window_bounds = array<i64: 1, 128>}, {transform_indices = @transform_4, window_bounds = array<i64: 1, 5, 17, 128>}]} {
    %c0 = arith.constant 0 : index
    %c0_0 = arith.constant 0 : index
    %c0_1 = arith.constant 0 : index
    %c0_2 = arith.constant 0 : index
    %0 = vector.load %arg2[%c0, %c0_0, %c0_1, %c0_2] : memref<1x5x18x32xbf16, #tpu.memory_space<vmem>>, vector<1x5x17x32xbf16>
    %1 = vector.shape_cast %0 : vector<1x5x17x32xbf16> to vector<5x17x32xbf16>
    %2 = vector.shape_cast %1 : vector<5x17x32xbf16> to vector<85x32xbf16>
    %c0_3 = arith.constant 0 : index
    %c0_4 = arith.constant 0 : index
    %c0_5 = arith.constant 0 : index
    %3 = vector.load %arg4[%c0_3, %c0_4, %c0_5] : memref<4x32x128xbf16, #tpu.memory_space<vmem>>, vector<1x32x128xbf16>
    %4 = vector.shape_cast %3 : vector<1x32x128xbf16> to vector<32x128xbf16>
    %cst = arith.constant dense<0.000000e+00> : vector<85x128xf32>
    %5 = tpu.matmul %2, %4, %cst {dimension_numbers = #tpu.dot_dimension_numbers<[1], [0], [0], [1], [0, 0, 1, 1], [], []>} : vector<85x32xbf16>, vector<32x128xbf16>, vector<85x128xf32> -> vector<85x128xf32>
    %c0_6 = arith.constant 0 : index
    %c0_7 = arith.constant 0 : index
    %c1 = arith.constant 1 : index
    %c0_8 = arith.constant 0 : index
    %6 = vector.load %arg2[%c0_6, %c0_7, %c1, %c0_8] : memref<1x5x18x32xbf16, #tpu.memory_space<vmem>>, vector<1x5x17x32xbf16>
    %7 = vector.shape_cast %6 : vector<1x5x17x32xbf16> to vector<5x17x32xbf16>
    %8 = vector.shape_cast %7 : vector<5x17x32xbf16> to vector<85x32xbf16>
    %c1_9 = arith.constant 1 : index
    %c0_10 = arith.constant 0 : index
    %c0_11 = arith.constant 0 : index
    %9 = vector.load %arg4[%c1_9, %c0_10, %c0_11] : memref<4x32x128xbf16, #tpu.memory_space<vmem>>, vector<1x32x128xbf16>
    %10 = vector.shape_cast %9 : vector<1x32x128xbf16> to vector<32x128xbf16>
    %cst_12 = arith.constant dense<0.000000e+00> : vector<85x128xf32>
    %11 = tpu.matmul %8, %10, %cst_12 {dimension_numbers = #tpu.dot_dimension_numbers<[1], [0], [0], [1], [0, 0, 1, 1], [], []>} : vector<85x32xbf16>, vector<32x128xbf16>, vector<85x128xf32> -> vector<85x128xf32>
    %12 = arith.addf %5, %11 : vector<85x128xf32>
    %c0_13 = arith.constant 0 : index
    %c0_14 = arith.constant 0 : index
    %c0_15 = arith.constant 0 : index
    %c0_16 = arith.constant 0 : index
    %13 = vector.load %arg3[%c0_13, %c0_14, %c0_15, %c0_16] : memref<1x5x18x32xbf16, #tpu.memory_space<vmem>>, vector<1x5x17x32xbf16>
    %14 = vector.shape_cast %13 : vector<1x5x17x32xbf16> to vector<5x17x32xbf16>
    %15 = vector.shape_cast %14 : vector<5x17x32xbf16> to vector<85x32xbf16>
    %c2 = arith.constant 2 : index
    %c0_17 = arith.constant 0 : index
    %c0_18 = arith.constant 0 : index
    %16 = vector.load %arg4[%c2, %c0_17, %c0_18] : memref<4x32x128xbf16, #tpu.memory_space<vmem>>, vector<1x32x128xbf16>
    %17 = vector.shape_cast %16 : vector<1x32x128xbf16> to vector<32x128xbf16>
    %cst_19 = arith.constant dense<0.000000e+00> : vector<85x128xf32>
    %18 = tpu.matmul %15, %17, %cst_19 {dimension_numbers = #tpu.dot_dimension_numbers<[1], [0], [0], [1], [0, 0, 1, 1], [], []>} : vector<85x32xbf16>, vector<32x128xbf16>, vector<85x128xf32> -> vector<85x128xf32>
    %19 = arith.addf %12, %18 : vector<85x128xf32>
    %c0_20 = arith.constant 0 : index
    %c0_21 = arith.constant 0 : index
    %c1_22 = arith.constant 1 : index
    %c0_23 = arith.constant 0 : index
    %20 = vector.load %arg3[%c0_20, %c0_21, %c1_22, %c0_23] : memref<1x5x18x32xbf16, #tpu.memory_space<vmem>>, vector<1x5x17x32xbf16>
    %21 = vector.shape_cast %20 : vector<1x5x17x32xbf16> to vector<5x17x32xbf16>
    %22 = vector.shape_cast %21 : vector<5x17x32xbf16> to vector<85x32xbf16>
    %c3 = arith.constant 3 : index
    %c0_24 = arith.constant 0 : index
    %c0_25 = arith.constant 0 : index
    %23 = vector.load %arg4[%c3, %c0_24, %c0_25] : memref<4x32x128xbf16, #tpu.memory_space<vmem>>, vector<1x32x128xbf16>
    %24 = vector.shape_cast %23 : vector<1x32x128xbf16> to vector<32x128xbf16>
    %cst_26 = arith.constant dense<0.000000e+00> : vector<85x128xf32>
    %25 = tpu.matmul %22, %24, %cst_26 {dimension_numbers = #tpu.dot_dimension_numbers<[1], [0], [0], [1], [0, 0, 1, 1], [], []>} : vector<85x32xbf16>, vector<32x128xbf16>, vector<85x128xf32> -> vector<85x128xf32>
    %26 = arith.addf %19, %25 : vector<85x128xf32>
    %c0_27 = arith.constant 0 : index
    %c0_28 = arith.constant 0 : index
    %27 = vector.load %arg5[%c0_27, %c0_28] : memref<1x128xf32, #tpu.memory_space<vmem>>, vector<1x128xf32>
    %28 = vector.broadcast %27 : vector<1x128xf32> to vector<85x128xf32>
    %29 = arith.addf %26, %28 : vector<85x128xf32>
    %30 = vector.shape_cast %29 : vector<85x128xf32> to vector<5x17x128xf32>
    %31 = arith.truncf %30 : vector<5x17x128xf32> to vector<5x17x128xbf16>
    %c0_29 = arith.constant 0 : index
    %c0_30 = arith.constant 0 : index
    %c0_31 = arith.constant 0 : index
    %c0_32 = arith.constant 0 : index
    %32 = vector.load %arg6[%c0_29, %c0_30, %c0_31, %c0_32] : memref<1x5x17x128xbf16, #tpu.memory_space<vmem>>, vector<1x5x17x128xbf16>
    %33 = vector.shape_cast %32 : vector<1x5x17x128xbf16> to vector<5x17x128xbf16>
    %34 = vector.shape_cast %31 : vector<5x17x128xbf16> to vector<1x5x17x128xbf16>
    tpu.vector_store %arg6[%c0_29, %c0_30, %c0_31, %c0_32], %34 {strides = array<i32>} : memref<1x5x17x128xbf16, #tpu.memory_space<vmem>>, vector<1x5x17x128xbf16>,
    return
  }
  func.func @transform_0(%arg0: i32, %arg1: i32) -> (i32, i32, i32, i32) {
    %c0_i32 = arith.constant 0 : i32
    %c0_i32_0 = arith.constant 0 : i32
    %c0_i32_1 = arith.constant 0 : i32
    return %arg0, %arg1, %c0_i32, %c0_i32_0 : i32, i32, i32, i32
  }
  func.func @transform_1(%arg0: i32, %arg1: i32) -> (i32, i32, i32, i32) {
    %c0_i32 = arith.constant 0 : i32
    %c0_i32_0 = arith.constant 0 : i32
    %c0_i32_1 = arith.constant 0 : i32
    return %arg0, %arg1, %c0_i32, %c0_i32_0 : i32, i32, i32, i32
  }
  func.func @transform_2(%arg0: i32, %arg1: i32) -> (i32, i32, i32) {
    %c0_i32 = arith.constant 0 : i32
    %c0_i32_0 = arith.constant 0 : i32
    %c0_i32_1 = arith.constant 0 : i32
    %c0_i32_2 = arith.constant 0 : i32
    return %c0_i32, %c0_i32_0, %c0_i32_1 : i32, i32, i32
  }
  func.func @transform_3(%arg0: i32, %arg1: i32) -> (i32, i32) {
    %c0_i32 = arith.constant 0 : i32
    %c0_i32_0 = arith.constant 0 : i32
    %c0_i32_1 = arith.constant 0 : i32
    return %c0_i32, %c0_i32_0 : i32, i32
  }
  func.func @transform_4(%arg0: i32, %arg1: i32) -> (i32, i32, i32, i32) {
    %c0_i32 = arith.constant 0 : i32
    %c0_i32_0 = arith.constant 0 : i32
    %c0_i32_1 = arith.constant 0 : i32
    return %arg0, %arg1, %c0_i32, %c0_i32_0 : i32, i32, i32, i32
  }
}

module attributes {stable_mosaic.version = 11 : i64} {
  func.func @_fused_upsample_kernel(%arg0: i32, %arg1: i32, %arg2: memref<1x5x18x32xbf16, #tpu.memory_space<vmem>>, %arg3: memref<1x5x18x32xbf16, #tpu.memory_space<vmem>>, %arg4: memref<4x32x128xbf16, #tpu.memory_space<vmem>>, %arg5: memref<1x128xf32, #tpu.memory_space<vmem>>, %arg6: memref<1x5x17x128xbf16, #tpu.memory_space<vmem>>) attributes {dimension_semantics = [#tpu.dimension_semantics<parallel>, #tpu.dimension_semantics<parallel>], iteration_bounds = array<i64: 2, 4>, scalar_prefetch = 0 : i64, scratch_operands = 0 : i64, tpu.core_type = #tpu.core_type<tc>, window_params = [{transform_indices = @transform_0, window_bounds = array<i64: 1, 5, 18, 32>}, {transform_indices = @transform_1, window_bounds = array<i64: 1, 5, 18, 32>}, {pipeline_mode = #tpu.pipeline_mode<synchronous>, transform_indices = @transform_2, window_bounds = array<i64: 4, 32, 128>}, {pipeline_mode = #tpu.pipeline_mode<synchronous>, transform_indices = @transform_3, window_bounds = array<i64: 1, 128>}, {transform_indices = @transform_4, window_bounds = array<i64: 1, 5, 17, 128>}]} {
    %c0 = arith.constant 0 : index
    %c0_0 = arith.constant 0 : index
    %c0_1 = arith.constant 0 : index
    %c0_2 = arith.constant 0 : index
    %0 = vector.load %arg2[%c0, %c0_0, %c0_1, %c0_2] : memref<1x5x18x32xbf16, #tpu.memory_space<vmem>>, vector<1x5x17x32xbf16>
    %1 = vector.shape_cast %0 : vector<1x5x17x32xbf16> to vector<5x17x32xbf16>
    %2 = vector.shape_cast %1 : vector<5x17x32xbf16> to vector<85x32xbf16>
    %c0_3 = arith.constant 0 : index
    %c0_4 = arith.constant 0 : index
    %c0_5 = arith.constant 0 : index
    %3 = vector.load %arg4[%c0_3, %c0_4, %c0_5] : memref<4x32x128xbf16, #tpu.memory_space<vmem>>, vector<1x32x128xbf16>
    %4 = vector.shape_cast %3 : vector<1x32x128xbf16> to vector<32x128xbf16>
    %cst = arith.constant dense<0.000000e+00> : vector<85x128xf32>
    %5 = tpu.matmul %2, %4, %cst {dimension_numbers = #tpu.dot_dimension_numbers<[1], [0], [0], [1], [0, 0, 1, 1], [], []>} : vector<85x32xbf16>, vector<32x128xbf16>, vector<85x128xf32> -> vector<85x128xf32>
    %c0_6 = arith.constant 0 : index
    %c0_7 = arith.constant 0 : index
    %c1 = arith.constant 1 : index
    %c0_8 = arith.constant 0 : index
    %6 = vector.load %arg2[%c0_6, %c0_7, %c1, %c0_8] : memref<1x5x18x32xbf16, #tpu.memory_space<vmem>>, vector<1x5x17x32xbf16>
    %7 = vector.shape_cast %6 : vector<1x5x17x32xbf16> to vector<5x17x32xbf16>
    %8 = vector.shape_cast %7 : vector<5x17x32xbf16> to vector<85x32xbf16>
    %c1_9 = arith.constant 1 : index
    %c0_10 = arith.constant 0 : index
    %c0_11 = arith.constant 0 : index
    %9 = vector.load %arg4[%c1_9, %c0_10, %c0_11] : memref<4x32x128xbf16, #tpu.memory_space<vmem>>, vector<1x32x128xbf16>
    %10 = vector.shape_cast %9 : vector<1x32x128xbf16> to vector<32x128xbf16>
    %cst_12 = arith.constant dense<0.000000e+00> : vector<85x128xf32>
    %11 = tpu.matmul %8, %10, %cst_12 {dimension_numbers = #tpu.dot_dimension_numbers<[1], [0], [0], [1], [0, 0, 1, 1], [], []>} : vector<85x32xbf16>, vector<32x128xbf16>, vector<85x128xf32> -> vector<85x128xf32>
    %12 = arith.addf %5, %11 : vector<85x128xf32>
    %c0_13 = arith.constant 0 : index
    %c0_14 = arith.constant 0 : index
    %c0_15 = arith.constant 0 : index
    %c0_16 = arith.constant 0 : index
    %13 = vector.load %arg3[%c0_13, %c0_14, %c0_15, %c0_16] : memref<1x5x18x32xbf16, #tpu.memory_space<vmem>>, vector<1x5x17x32xbf16>
    %14 = vector.shape_cast %13 : vector<1x5x17x32xbf16> to vector<5x17x32xbf16>
    %15 = vector.shape_cast %14 : vector<5x17x32xbf16> to vector<85x32xbf16>
    %c2 = arith.constant 2 : index
    %c0_17 = arith.constant 0 : index
    %c0_18 = arith.constant 0 : index
    %16 = vector.load %arg4[%c2, %c0_17, %c0_18] : memref<4x32x128xbf16, #tpu.memory_space<vmem>>, vector<1x32x128xbf16>
    %17 = vector.shape_cast %16 : vector<1x32x128xbf16> to vector<32x128xbf16>
    %cst_19 = arith.constant dense<0.000000e+00> : vector<85x128xf32>
    %18 = tpu.matmul %15, %17, %cst_19 {dimension_numbers = #tpu.dot_dimension_numbers<[1], [0], [0], [1], [0, 0, 1, 1], [], []>} : vector<85x32xbf16>, vector<32x128xbf16>, vector<85x128xf32> -> vector<85x128xf32>
    %19 = arith.addf %12, %18 : vector<85x128xf32>
    %c0_20 = arith.constant 0 : index
    %c0_21 = arith.constant 0 : index
    %c1_22 = arith.constant 1 : index
    %c0_23 = arith.constant 0 : index
    %20 = vector.load %arg3[%c0_20, %c0_21, %c1_22, %c0_23] : memref<1x5x18x32xbf16, #tpu.memory_space<vmem>>, vector<1x5x17x32xbf16>
    %21 = vector.shape_cast %20 : vector<1x5x17x32xbf16> to vector<5x17x32xbf16>
    %22 = vector.shape_cast %21 : vector<5x17x32xbf16> to vector<85x32xbf16>
    %c3 = arith.constant 3 : index
    %c0_24 = arith.constant 0 : index
    %c0_25 = arith.constant 0 : index
    %23 = vector.load %arg4[%c3, %c0_24, %c0_25] : memref<4x32x128xbf16, #tpu.memory_space<vmem>>, vector<1x32x128xbf16>
    %24 = vector.shape_cast %23 : vector<1x32x128xbf16> to vector<32x128xbf16>
    %cst_26 = arith.constant dense<0.000000e+00> : vector<85x128xf32>
    %25 = tpu.matmul %22, %24, %cst_26 {dimension_numbers = #tpu.dot_dimension_numbers<[1], [0], [0], [1], [0, 0, 1, 1], [], []>} : vector<85x32xbf16>, vector<32x128xbf16>, vector<85x128xf32> -> vector<85x128xf32>
    %26 = arith.addf %19, %25 : vector<85x128xf32>
    %c0_27 = arith.constant 0 : index
    %c0_28 = arith.constant 0 : index
    %27 = vector.load %arg5[%c0_27, %c0_28] : memref<1x128xf32, #tpu.memory_space<vmem>>, vector<1x128xf32>
    %28 = vector.broadcast %27 : vector<1x128xf32> to vector<85x128xf32>
    %29 = arith.addf %26, %28 : vector<85x128xf32>
    %30 = vector.shape_cast %29 : vector<85x128xf32> to vector<5x17x128xf32>
    %31 = arith.truncf %30 : vector<5x17x128xf32> to vector<5x17x128xbf16>
    %c0_29 = arith.constant 0 : index
    %c0_30 = arith.constant 0 : index
    %c0_31 = arith.constant 0 : index
    %c0_32 = arith.constant 0 : index
    %32 = vector.load %arg6[%c0_29, %c0_30, %c0_31, %c0_32] : memref<1x5x17x128xbf16, #tpu.memory_space<vmem>>, vector<1x5x17x128xbf16>
    %33 = vector.shape_cast %32 : vector<1x5x17x128xbf16> to vector<5x17x128xbf16>
    %34 = vector.shape_cast %31 : vector<5x17x128xbf16> to vector<1x5x17x128xbf16>
    tpu.vector_store %arg6[%c0_29, %c0_30, %c0_31, %c0_32], %34 {strides = array<i32>} : memref<1x5x17x128xbf16, #tpu.memory_space<vmem>>, vector<1x5x17x128xbf16>,
    return
  }
  func.func @transform_0(%arg0: i32, %arg1: i32) -> (i32, i32, i32, i32) {
    %c0_i32 = arith.constant 0 : i32
    %c0_i32_0 = arith.constant 0 : i32
    %c0_i32_1 = arith.constant 0 : i32
    return %arg0, %arg1, %c0_i32, %c0_i32_0 : i32, i32, i32, i32
  }
  func.func @transform_1(%arg0: i32, %arg1: i32) -> (i32, i32, i32, i32) {
    %c0_i32 = arith.constant 0 : i32
    %c0_i32_0 = arith.constant 0 : i32
    %c0_i32_1 = arith.constant 0 : i32
    return %arg0, %arg1, %c0_i32, %c0_i32_0 : i32, i32, i32, i32
  }
  func.func @transform_2(%arg0: i32, %arg1: i32) -> (i32, i32, i32) {
    %c0_i32 = arith.constant 0 : i32
    %c0_i32_0 = arith.constant 0 : i32
    %c0_i32_1 = arith.constant 0 : i32
    %c0_i32_2 = arith.constant 0 : i32
    return %c0_i32, %c0_i32_0, %c0_i32_1 : i32, i32, i32
  }
  func.func @transform_3(%arg0: i32, %arg1: i32) -> (i32, i32) {
    %c0_i32 = arith.constant 0 : i32
    %c0_i32_0 = arith.constant 0 : i32
    %c0_i32_1 = arith.constant 0 : i32
    return %c0_i32, %c0_i32_0 : i32, i32
  }
  func.func @transform_4(%arg0: i32, %arg1: i32) -> (i32, i32, i32, i32) {
    %c0_i32 = arith.constant 0 : i32
    %c0_i32_0 = arith.constant 0 : i32
    %c0_i32_1 = arith.constant 0 : i32
    return %arg0, %arg1, %c0_i32, %c0_i32_0 : i32, i32, i32, i32
  }
}

module attributes {stable_mosaic.version = 11 : i64} {
  func.func @_gemm_bias_kernel(%arg0: i32, %arg1: memref<512x128xbf16, #tpu.memory_space<vmem>>, %arg2: memref<128x128xbf16, #tpu.memory_space<vmem>>, %arg3: memref<1x128xf32, #tpu.memory_space<vmem>>, %arg4: memref<512x128xbf16, #tpu.memory_space<vmem>>) attributes {dimension_semantics = [#tpu.dimension_semantics<parallel>], iteration_bounds = array<i64: 2>, scalar_prefetch = 0 : i64, scratch_operands = 0 : i64, tpu.core_type = #tpu.core_type<tc>, window_params = [{transform_indices = @transform_0, window_bounds = array<i64: 512, 128>}, {pipeline_mode = #tpu.pipeline_mode<synchronous>, transform_indices = @transform_1, window_bounds = array<i64: 128, 128>}, {pipeline_mode = #tpu.pipeline_mode<synchronous>, transform_indices = @transform_2, window_bounds = array<i64: 1, 128>}, {transform_indices = @transform_3, window_bounds = array<i64: 512, 128>}]} {
    %c0 = arith.constant 0 : index
    %c0_0 = arith.constant 0 : index
    %0 = vector.load %arg1[%c0, %c0_0] : memref<512x128xbf16, #tpu.memory_space<vmem>>, vector<512x128xbf16>
    %c0_1 = arith.constant 0 : index
    %c0_2 = arith.constant 0 : index
    %1 = vector.load %arg2[%c0_1, %c0_2] : memref<128x128xbf16, #tpu.memory_space<vmem>>, vector<128x128xbf16>
    %cst = arith.constant dense<0.000000e+00> : vector<512x128xf32>
    %2 = tpu.matmul %0, %1, %cst {dimension_numbers = #tpu.dot_dimension_numbers<[1], [0], [0], [1], [0, 0, 1, 1], [], []>} : vector<512x128xbf16>, vector<128x128xbf16>, vector<512x128xf32> -> vector<512x128xf32>
    %c0_3 = arith.constant 0 : index
    %c0_4 = arith.constant 0 : index
    %3 = vector.load %arg3[%c0_3, %c0_4] : memref<1x128xf32, #tpu.memory_space<vmem>>, vector<1x128xf32>
    %4 = vector.broadcast %3 : vector<1x128xf32> to vector<512x128xf32>
    %5 = arith.addf %2, %4 : vector<512x128xf32>
    %6 = arith.truncf %5 : vector<512x128xf32> to vector<512x128xbf16>
    %c0_5 = arith.constant 0 : index
    %c0_6 = arith.constant 0 : index
    %7 = vector.load %arg4[%c0_5, %c0_6] : memref<512x128xbf16, #tpu.memory_space<vmem>>, vector<512x128xbf16>
    tpu.vector_store %arg4[%c0_5, %c0_6], %6 {strides = array<i32>} : memref<512x128xbf16, #tpu.memory_space<vmem>>, vector<512x128xbf16>,
    return
  }
  func.func @transform_0(%arg0: i32) -> (i32, i32) {
    %c0_i32 = arith.constant 0 : i32
    %c0_i32_0 = arith.constant 0 : i32
    return %arg0, %c0_i32 : i32, i32
  }
  func.func @transform_1(%arg0: i32) -> (i32, i32) {
    %c0_i32 = arith.constant 0 : i32
    %c0_i32_0 = arith.constant 0 : i32
    %c0_i32_1 = arith.constant 0 : i32
    return %c0_i32, %c0_i32_0 : i32, i32
  }
  func.func @transform_2(%arg0: i32) -> (i32, i32) {
    %c0_i32 = arith.constant 0 : i32
    %c0_i32_0 = arith.constant 0 : i32
    %c0_i32_1 = arith.constant 0 : i32
    return %c0_i32, %c0_i32_0 : i32, i32
  }
  func.func @transform_3(%arg0: i32) -> (i32, i32) {
    %c0_i32 = arith.constant 0 : i32
    %c0_i32_0 = arith.constant 0 : i32
    return %arg0, %c0_i32 : i32, i32
  }
}

</mosaic_0001>

<bundles_post_ra>
// kernel: tpu_custom_call.1
= control target key start
LH: loop header
LB: loop body
LE: loop exit
PB: predicated region body
PF: predicated region fallthrough
CT: control target
= control target key end

     0   :  { %s5523_s15 = smov 0   ;;  %s5525_s16 = smov 0   ;;  %s6295_s0 = inlined_call_operand.vmem [shape: bf16[2,17,18,32], index: 0, kind: input, shape index: {}]   ;;  %s6296_s1 = inlined_call_operand.vmem [shape: bf16[2,17,18,32], index: 1, kind: input, shape index: {}]   ;;  %s6297_s2 = inlined_call_operand.vmem [shape: bf16[4,32,128], index: 2, kind: input, shape index: {}]   ;;  %s6298_s3 = inlined_call_operand.vmem [shape: f32[1,128], index: 3, kind: input, shape index: {}]   ;;  %s6299_s4 = inlined_call_operand.vmem [shape: bf16[2,17,17,128], index: 4, kind: output, shape index: {}]  }
   0x1   :  { %s5527_s17 = smov 0   ;;  %s5529_s18 = smov 0  }
   0x2   :  { %s5531_s19 = smov 0   ;;  %s5533_s20 = smov 0  }
   0x3   :  { %s5535_s21 = smov 0  }
   0x4 LB: > { %s23_s22 = sadd.s32 1, %s5455_s19  ;;  %s26_s23 = sadd.s32 1, %s5459_s20  ;;  %s5463_s21 = sphi %s5535_s21, %s14_s21   ;;  %s5459_s20 = sphi %s5533_s20, %s6311_s20   ;;  %s5455_s19 = sphi %s5531_s19, %s6310_s19   ;;  %s5451_s18 = sphi %s5529_s18, %s6309_s18   ;;  %s5447_s17 = sphi %s5527_s17, %s6308_s17   ;;  %s5443_s16 = sphi %s5525_s16, %s6307_s16   ;;  %s5439_s15 = sphi %s5523_s15, %s6306_s15  }
   0x5   : > { %p24_p0 = scmp.ge.s32.totalorder %s23_s22, 4  ;;  %s4876_s24 = sadd.s32 4294967295, %s5463_s21  }
   0x6   : > { %p143_p1 = scmp.ne.s32.totalorder %s5443_s16, %s5439_s15  ;;  %p144_p2 = scmp.eq.s32.totalorder %s4876_s24, 7 }
   0x7   : > { %s6313_s22 = smov (%p24_p0, %s23_s22), 0  ;;  %s6315_s23 = smov (!%p24_p0, %s26_s23), %s5459_s20 }
   0x8   : > { %s129_s25 = ssub.s32 %s5455_s19, %s6313_s22  ;;  %p28_p3 = scmp.ge.s32.totalorder %s6315_s23, 2 }
   0x9   : > { %p4880_p4 = scmp.ge.s32.totalorder %s5463_s21, 1  ;;  %p5569_p5 = por %p144_p2, %p143_p1 }
   0xa   : > { %p222_p6 = scmp.lt.s32.totalorder %s5463_s21, 9  ;;  %s6317_s23 = smov (%p28_p3, %s6315_s23), 0 }
   0xb   : > { %s128_s27 = ssub.s32 %s5459_s20, %s6317_s23  ;;  %s133_s29 = sadd.s32 1, %s5443_s16 }
   0xc   : > { %p223_p7 = pnand %p4880_p4, %p222_p6  ;;  %s130_s28 = sor.u32 %s129_s25, %s128_s27 }
   0xd   : > { %p131_p8 = scmp.eq.s32.totalorder %s130_s28, 0  ;;  %s5586_s7 = smul.u32 (!%p223_p7), 5, %s5447_s17 }
   0xe   : > { %226 = sbr.rel (%p223_p7) target bundleno = 483 (0x1e3), region = 36  ;;  %p278_p9 = scmp.lt.s32.totalorder (!%p223_p7), %s5451_s18, 1 }
   0xf   : > { %s5580_s30 = scalar_select %p131_p8, %s5443_s16, %s133_s29  }
  0x10   : > { %p280_p10 = scmp.lt.s32.totalorder (!%p223_p7), %s5586_s7, 16 }
  0x13   : > { %v5365_v0 = vld [vmem:[%s6297_s2 + $0x18] sm:$0xff]   ;;  %v362_v1 = vlaneseq  ;;  %v5366_v2 = vld [vmem:[%s6297_s2 + $0x8] sm:$0xff]   ;;  %v5367_v3 = vld [vmem:[%s6297_s2 + $0x10] sm:$0xff]   ;;  %s279_s14 = scalar_select %p278_p9, %s5451_s18, 1  ;;  %v5497_v7 = vmov 1966171168  }
  0x14   : > { %5173 = vmatprep.subr.bf16.mxu0 %v5365_v0  ;;  %5189 = vmatprep.subr.bf16.mxu1 %v5366_v2  ;;  %v5368_v4 = vld [vmem:[%s6297_s2] sm:$0xff]   ;;  %s281_s24 = scalar_select %p280_p10, %s5586_s7, 16  ;;  %v5604_v6 = vld [vmem:[%s6297_s2 + $0x28] sm:$0xff]   ;;  %v360_v8 = vunpack.c.l.s4 %v5497_v7  ;;  %v5609_v9 = vld [vmem:[%s6297_s2 + $0x38] sm:$0xff]   ;;  %vm1083_vm0 = vcmask 261120   ;;  %vm4527_vm1 = vcmask 1040384  }
  0x15   : > { %5174 = vmatpush3.bf16.msra.mxu0 %v5365_v0  ;;  %5190 = vmatpush3.bf16.msra.mxu1 %v5366_v2  ;;  %v363_v5 = vshrl.u32 %v362_v1, 7  ;;  %s5239_s28 = smul.u32 51, %s279_s14  ;;  %vm4528_vm2 = vsmask.f32 256  ;;  %s4561_s10 = ssub.s32 (%p5569_p5), 17, %s5586_s7 }
  0x16   : > { %5175 = vmatprep.subr.bf16.mxu0 %v5367_v3  ;;  %5191 = vmatprep.subr.bf16.mxu1 %v5368_v4  ;;  %s5238_s6 = smul.u32 3, %s281_s24  ;;  %v361_v10 = vunpack.c.0.s8 %v360_v8  ;;  %vm5980_vm3 = vmand %vm4527_vm1, %vm4528_vm2  ;;  %p4562_p11 = scmp.lt.s32.totalorder (%p5569_p5), %s4561_s10, 5 }
  0x17   : > { %s5242_s11 = smul.u32 (%p5569_p5), 15, %s5447_s17 }
  0x18   : > { %s5611_s8 = sadd.s32 %s5239_s28, %s5238_s6  ;;  %v5615_v11 = vsub.s32 %v361_v10, %v363_v5 }
  0x19   : > { %5176 = vmatpush3.bf16.msra.mxu0 %v5367_v3  ;;  %5192 = vmatpush3.bf16.msra.mxu1 %v5368_v4  ;;  %s4881_s9 = sshll.u32 %s5611_s8, 2  ;;  %s269_s8 = sand.u32 1, %s5439_s15  }
  0x1a   : > { %5205 = vmatprep.subr.bf16.mxu0 %v5604_v6  ;;  %5221 = vmatprep.subr.bf16.mxu1 %v5609_v9  ;;  %s5623_s12 = scalar_lea.vmem %s6295_s0, %s4881_s9  ;;  %s5759_s29 = scalar_lea.vmem %s6296_s1, %s4881_s9 }
  0x1b   : > { %v4883_v12 = vld.sshfl [vmem:[%s5623_s12] sm:$0x33 pattern:$0x75316420]  ;;  %s5964_s9 = smul.u32 60, %s269_s8 }
  0x1c   : > { %v4884_v13 = vld.sshfl [vmem:[%s5623_s12 + $0x4] sm:$0x33 pattern:$0x75316420]  ;;  %v358_v14 = vcombine.high %v4883_v12, %v4883_v12  ;;  %v365_v15 = vrot.slane %v4883_v12, %v5615_v11 }
  0x1d   : > { %v382_v16 = vcombine.high %v4884_v13, %v4884_v13  ;;  %v389_v17 = vrot.slane %v4884_v13, %v5615_v11  ;;  %v4885_v18 = vld.sshfl [vmem:[%s5623_s12 + $0x8] sm:$0x1 pattern:$0x75316420]  ;;  %s5985_s15 = scalar_lea.vmem [#allocation2], %s5964_s9  }
  0x1e   : > { %v372_v19 = vrot.slane %v358_v14, %v5615_v11  ;;  %v373_v20 = vcombine.high %v365_v15, %v365_v15  ;;  %v5632_v21 = vrot.slane %v4885_v18, %v5615_v11  ;;  %v662_v22 = vunpack.i.h.s16 %v365_v15  ;;  %v4886_v23 = vld.sshfl [vmem:[%s5623_s12 + $0xc] sm:$0x33 pattern:$0x75316420] }
  0x1f   : > { %v396_v24 = vrot.slane %v382_v16, %v5615_v11  ;;  %v397_v25 = vcombine.high %v389_v17, %v389_v17  ;;  %v670_v26 = vunpack.i.h.s16 %v389_v17  ;;  %v420_v27 = vcombine.high %v4886_v23, %v4886_v23  ;;  %v4887_v52 = vld.sshfl [vmem:[%s5623_s12 + $0x10] sm:$0x33 pattern:$0x75316420] }
  0x20   : > { %v1225_v28 = vcombine.low %v365_v15, %v372_v19  ;;  %v4954_v29 = vcombine.high %v365_v15, %v372_v19  ;;  %v374_v30 = vcombine.high %v372_v19, %v372_v19  ;;  %v664_v31 = vunpack.i.h.s16 %v372_v19 }
  0x21   : > { %v1227_v32 = vcombine.low %v389_v17, %v396_v24  ;;  %v4955_v33 = vcombine.high %v389_v17, %v396_v24  ;;  %v398_v34 = vcombine.high %v396_v24, %v396_v24  ;;  %v666_v35 = vunpack.i.h.s16 %v373_v20 }
  0x22   : > { %v1235_v36 = vrot.slane %v1225_v28, %v5615_v11  ;;  %v1242_v37 = vrot.slane %v4954_v29, %v5615_v11  ;;  %v668_v38 = vunpack.i.h.s16 %v374_v30  ;;  %v672_v39 = vunpack.i.h.s16 %v396_v24 }
  0x23   : > { %v1249_v40 = vrot.slane %v1227_v32, %v5615_v11  ;;  %v1256_v41 = vrot.slane %v4955_v33, %v5615_v11  ;;  %v674_v42 = vunpack.i.h.s16 %v397_v25  ;;  %v676_v43 = vunpack.i.h.s16 %v398_v34 }
  0x24   : > { %v1257_v44 = vcombine.low %v1235_v36, %v1242_v37  ;;  %v4902_v45 = vpack.i.b16 %v372_v19, %v662_v22  ;;  %v4903_v46 = vpack.i.b16 %v373_v20, %v664_v31  ;;  %v4904_v47 = vpack.i.b16 %v374_v30, %v666_v35  ;;  %v4888_v37 = vld.sshfl [vmem:[%s5623_s12 + $0x14] sm:$0x1 pattern:$0x75316420] }
  0x25   : > { %v1258_v48 = vcombine.low %v1249_v40, %v1256_v41  ;;  %v4905_v49 = vpack.i.b16 %v389_v17, %v668_v38  ;;  %v4906_v50 = vpack.i.b16 %v396_v24, %v670_v26  ;;  %v4907_v51 = vpack.i.b16 %v397_v25, %v672_v39 }
  0x26   : > { %v1265_v53 = vrot.slane %v1257_v44, %v5615_v11  ;;  %v4908_v54 = vpack.i.b16 %v398_v34, %v674_v42  ;;  %v4909_v55 = vpack.i.b16 %v5632_v21, %v676_v43  ;;  %v803_v56 = vcombine.low %v4902_v45, %v4903_v46  ;;  %v4889_v42 = vld.sshfl [vmem:[%s5623_s12 + $0x18] sm:$0x33 pattern:$0x75316420] }
  0x27   : > { %v1272_v57 = vrot.slane %v1258_v48, %v5615_v11  ;;  %v804_v58 = vcombine.low %v4904_v47, %v4905_v49  ;;  %v805_v59 = vcombine.low %v4906_v50, %v4907_v51  ;;  %v427_v60 = vrot.slane %v4886_v23, %v5615_v11  ;;  %v4890_v47 = vld.sshfl [vmem:[%s5623_s12 + $0x1c] sm:$0x33 pattern:$0x75316420] }
  0x28   : > { %v806_v61 = vcombine.low %v4908_v54, %v4909_v55  ;;  %v813_v62 = vrot.slane %v803_v56, %v5615_v11  ;;  %v434_v63 = vrot.slane %v420_v27, %v5615_v11  ;;  %v444_v0 = vcombine.high %v4887_v52, %v4887_v52 }
  0x29   : > { %v1273_v1 = vcombine.low %v1265_v53, %v1272_v57  ;;  %v820_v2 = vrot.slane %v804_v58, %v5615_v11  ;;  %v827_v3 = vrot.slane %v805_v59, %v5615_v11  ;;  %v435_v4 = vcombine.high %v427_v60, %v427_v60 }
  0x2a   : > { %v834_v5 = vrot.slane %v806_v61, %v5615_v11  ;;  %v436_v7 = vcombine.high %v434_v63, %v434_v63  ;;  %v451_v8 = vrot.slane %v4887_v52, %v5615_v11  ;;  %v458_v10 = vrot.slane %v444_v0, %v5615_v11 }
  0x2b   : > { %5193 = vmatprep.mubr.msk.bf16.mxu1 %vm1083_vm0, %v1273_v1  ;;  %v835_v12 = vcombine.low %v813_v62, %v820_v2  ;;  %v679_v13 = vunpack.i.h.s16 %v427_v60  ;;  %v681_v14 = vunpack.i.h.s16 %v434_v63  ;;  %v683_v15 = vunpack.i.h.s16 %v435_v4 }
  0x2c   : > { %v836_v16 = vcombine.low %v827_v3, %v834_v5  ;;  %v459_v17 = vcombine.high %v451_v8, %v451_v8  ;;  %v5653_v18 = vcombine.high %v458_v10, %v458_v10  ;;  %v685_v19 = vunpack.i.h.s16 %v436_v7 }
  0x2d   : > { %v843_v20 = vrot.slane %v835_v12, %v5615_v11  ;;  %v687_v22 = vunpack.i.h.s16 %v451_v8  ;;  %v689_v23 = vunpack.i.h.s16 %v458_v10  ;;  %v4936_v24 = vpack.i.b16 %v427_v60, %v5632_v21 }
  0x2e   : > { %v850_v25 = vrot.slane %v836_v16, %v5615_v11  ;;  %v691_v26 = vunpack.i.h.s16 %v459_v17  ;;  %v4937_v27 = vpack.i.b16 %v434_v63, %v679_v13  ;;  %v4938_v28 = vpack.i.b16 %v435_v4, %v681_v14 }
  0x2f   : > { %v4939_v29 = vpack.i.b16 %v436_v7, %v683_v15  ;;  %v4940_v30 = vpack.i.b16 %v451_v8, %v685_v19  ;;  %v4941_v31 = vpack.i.b16 %v458_v10, %v687_v22  ;;  %v4942_v32 = vpack.i.b16 %v459_v17, %v689_v23  ;;  %v5372_v19 = vld [vmem:[%s6297_s2 + $0x30] sm:$0xff]  }
  0x30   : > { %v851_v33 = vcombine.low %v843_v20, %v850_v25  ;;  %v4943_v34 = vpack.i.b16 %v5653_v18, %v691_v26  ;;  %v1274_v35 = vcombine.low %v4936_v24, %v4937_v27  ;;  %v750_v36 = vunpack.i.h.s16 %v5632_v21 }
  0x31   : > { %v1275_v38 = vcombine.low %v4938_v28, %v4939_v29  ;;  %v1276_v39 = vcombine.low %v4940_v30, %v4941_v31  ;;  %v4926_v40 = vcombine.high %v427_v60, %v434_v63  ;;  %v854_v41 = vcombine.low %v451_v8, %v458_v10  ;;  %v5371_v28 = vld [vmem:[%s6297_s2 + $0x20] sm:$0xff]  }
  0x32   : > { %5177 = vmatprep.mubr.msk.bf16.mxu0 %vm1083_vm0, %v851_v33  ;;  %v1277_v43 = vcombine.low %v4942_v32, %v4943_v34  ;;  %v1284_v44 = vrot.slane %v1274_v35, %v5615_v11  ;;  %v768_v45 = vpack.i.b16 %v679_v13, %v750_v36  ;;  %v4927_v46 = vcombine.high %v451_v8, %v458_v10 }
  0x33   : > { %v1291_v48 = vrot.slane %v1275_v38, %v5615_v11  ;;  %v1298_v49 = vrot.slane %v1276_v39, %v5615_v11  ;;  %v869_v21 = vrot.slane %v4926_v40, %v5615_v11  ;;  %v876_v50 = vrot.slane %v854_v41, %v5615_v11  ;;  %v4892_v41 = vld.sshfl [vmem:[%s5623_s12 + $0x24] sm:$0x33 pattern:$0x75316420] }
  0x34   : > { %v1305_v51 = vrot.slane %v1277_v43, %v5615_v11  ;;  %v852_v52 = vcombine.low %v768_v45, %v434_v63  ;;  %v883_v53 = vrot.slane %v4927_v46, %v5615_v11  ;;  %v5672_v54 = vrot.slane %v4888_v37, %v5615_v11  ;;  %v4891_v37 = vld.sshfl [vmem:[%s5623_s12 + $0x20] sm:$0x1 pattern:$0x75316420] }
  0x35   : > { %v1306_v55 = vcombine.low %v1284_v44, %v1291_v48  ;;  %v482_v56 = vcombine.high %v4889_v42, %v4889_v42  ;;  %v489_v57 = vrot.slane %v4889_v42, %v5615_v11  ;;  %v506_v58 = vcombine.high %v4890_v47, %v4890_v47  ;;  %v4893_v46 = vld.sshfl [vmem:[%s5623_s12 + $0x28] sm:$0x33 pattern:$0x75316420] }
  0x36   : > { %v1307_v59 = vcombine.low %v1298_v49, %v1305_v51  ;;  %v862_v60 = vrot.slane %v852_v52, %v5615_v11  ;;  %v885_v61 = vcombine.low %v876_v50, %v883_v53  ;;  %v513_v62 = vrot.slane %v4890_v47, %v5615_v11 }
  0x37   : > { %v1314_v0 = vrot.slane %v1306_v55, %v5615_v11  ;;  %v496_v63 = vrot.slane %v482_v56, %v5615_v11  ;;  %v497_v1 = vcombine.high %v489_v57, %v489_v57  ;;  %v520_v2 = vrot.slane %v506_v58, %v5615_v11 }
  0x38   : > { %v1321_v3 = vrot.slane %v1307_v59, %v5615_v11  ;;  %v884_v4 = vcombine.low %v862_v60, %v869_v21  ;;  %v899_v5 = vrot.slane %v885_v61, %v5615_v11  ;;  %v521_v7 = vcombine.high %v513_v62, %v513_v62 }
  0x39   : > { %v498_v8 = vcombine.high %v496_v63, %v496_v63  ;;  %v693_v10 = vunpack.i.h.s16 %v5653_v18  ;;  %v1324_v12 = vcombine.low %v496_v63, %v497_v1  ;;  %v5683_v13 = vcombine.high %v520_v2, %v520_v2 }
  0x3a   : > { %v1322_v14 = vcombine.low %v1314_v0, %v1321_v3  ;;  %v892_v15 = vrot.slane %v884_v4, %v5615_v11  ;;  %v1326_v16 = vcombine.low %v520_v2, %v521_v7  ;;  %v696_v17 = vunpack.i.h.s16 %v489_v57 }
  0x3b   : > { %v4944_v20 = vpack.i.b16 %v5672_v54, %v693_v10  ;;  %v1325_v22 = vcombine.low %v498_v8, %v513_v62  ;;  %v1340_v23 = vrot.slane %v1324_v12, %v5615_v11  ;;  %v698_v24 = vunpack.i.h.s16 %v496_v63 }
  0x3c   : > { %5194 = vmatmul.mubr.msk.bf16.vlgmr.msra.gmra.mxu1 %vm1083_vm0, %v1322_v14  ;;  %v900_v18 = vcombine.low %v892_v15, %v899_v5  ;;  %v1354_v25 = vrot.slane %v1326_v16, %v5615_v11  ;;  %v700_v26 = vunpack.i.h.s16 %v497_v1  ;;  %v702_v27 = vunpack.i.h.s16 %v498_v8 }
  0x3d   : > { %5222 = vmatpush3.bf16.msra.mxu1 %v5609_v9  ;;  %v1323_v29 = vcombine.low %v4944_v20, %v489_v57  ;;  %v1347_v30 = vrot.slane %v1325_v22, %v5615_v11  ;;  %v704_v31 = vunpack.i.h.s16 %v513_v62  ;;  %v706_v32 = vunpack.i.h.s16 %v520_v2 }
  0x3e   : > { %5178 = vmatmul.mubr.msk.bf16.vlgmr.msra.gmra.mxu0 %vm1083_vm0, %v900_v18  ;;  %v708_v33 = vunpack.i.h.s16 %v521_v7  ;;  %v4910_v34 = vpack.i.b16 %v496_v63, %v696_v17  ;;  %v4911_v35 = vpack.i.b16 %v497_v1, %v698_v24  ;;  %v4912_v36 = vpack.i.b16 %v498_v8, %v700_v26  ;;  %5223 = vmatprep.subr.bf16.mxu1 %v5372_v19 }
  0x3f   : > { %5206 = vmatpush3.bf16.msra.mxu0 %v5604_v6  ;;  %v1333_v38 = vrot.slane %v1323_v29, %v5615_v11  ;;  %v1356_v9 = vcombine.low %v1347_v30, %v1354_v25  ;;  %v4913_v39 = vpack.i.b16 %v513_v62, %v702_v27  ;;  %v4914_v40 = vpack.i.b16 %v520_v2, %v704_v31  ;;  %v4894_v30 = vld.sshfl [vmem:[%s5623_s12 + $0x2c] sm:$0x1 pattern:$0x75316420] }
  0x40   : > { %v4915_v42 = vpack.i.b16 %v521_v7, %v706_v32  ;;  %v4916_v43 = vpack.i.b16 %v5683_v13, %v708_v33  ;;  %v901_v44 = vcombine.low %v5672_v54, %v4910_v34  ;;  %v902_v45 = vcombine.low %v4911_v35, %v4912_v36  ;;  %5207 = vmatprep.subr.bf16.mxu0 %v5371_v28  ;;  %v4895_v35 = vld.sshfl [vmem:[%s5623_s12 + $0x30] sm:$0x33 pattern:$0x75316420] }
  0x41   : > { %v1355_v47 = vcombine.low %v1333_v38, %v1340_v23  ;;  %v1370_v48 = vrot.slane %v1356_v9, %v5615_v11  ;;  %v903_v49 = vcombine.low %v4913_v39, %v4914_v40  ;;  %v536_v6 = vrot.slane %v4891_v37, %v5615_v11  ;;  %5224 = vmatpush3.bf16.msra.mxu1 %v5372_v19  ;;  %v4896_v9 = vld.sshfl [vmem:[%s5623_s12 + $0x34] sm:$0x33 pattern:$0x75316420] }
  0x42   : > { %v904_v21 = vcombine.low %v4915_v42, %v4916_v43  ;;  %v911_v50 = vrot.slane %v901_v44, %v5615_v11  ;;  %v918_v51 = vrot.slane %v902_v45, %v5615_v11  ;;  %v544_v52 = vcombine.high %v4892_v41, %v4892_v41 }
  0x43   : > { %v1363_v53 = vrot.slane %v1355_v47, %v5615_v11  ;;  %v925_v54 = vrot.slane %v903_v49, %v5615_v11  ;;  %v551_v55 = vrot.slane %v4892_v41, %v5615_v11  ;;  %v568_v56 = vcombine.high %v4893_v46, %v4893_v46  ;;  %5208 = vmatpush3.bf16.msra.mxu0 %v5371_v28 }
  0x44   : > { %v932_v57 = vrot.slane %v904_v21, %v5615_v11  ;;  %v933_v58 = vcombine.low %v911_v50, %v918_v51  ;;  %v558_v59 = vrot.slane %v544_v52, %v5615_v11  ;;  %v575_v60 = vrot.slane %v4893_v46, %v5615_v11 }
  0x45   : > { %v1371_v61 = vcombine.low %v1363_v53, %v1370_v48  ;;  %v559_v62 = vcombine.high %v551_v55, %v551_v55  ;;  %v582_v0 = vrot.slane %v568_v56, %v5615_v11  ;;  %v713_v63 = vunpack.i.h.s16 %v551_v55 }
  0x46   : > { %v934_v1 = vcombine.low %v925_v54, %v932_v57  ;;  %v941_v2 = vrot.slane %v933_v58, %v5615_v11  ;;  %v560_v3 = vcombine.high %v558_v59, %v558_v59  ;;  %v583_v4 = vcombine.high %v575_v60, %v575_v60 }
  0x47   : > { %5197 = vmatprep.mubr.msk.bf16.mxu1 %vm1083_vm0, %v1371_v61  ;;  %v715_v5 = vunpack.i.h.s16 %v558_v59  ;;  %v717_v7 = vunpack.i.h.s16 %v559_v62  ;;  %v721_v8 = vunpack.i.h.s16 %v575_v60  ;;  %v723_v10 = vunpack.i.h.s16 %v582_v0 }
  0x48   : > { %v948_v12 = vrot.slane %v934_v1, %v5615_v11  ;;  %v719_v14 = vunpack.i.h.s16 %v560_v3  ;;  %v4945_v15 = vpack.i.b16 %v551_v55, %v536_v6  ;;  %v4946_v16 = vpack.i.b16 %v558_v59, %v713_v63 }
  0x49   : > { %v4947_v17 = vpack.i.b16 %v559_v62, %v715_v5  ;;  %v4948_v19 = vpack.i.b16 %v560_v3, %v717_v7  ;;  %v4950_v20 = vpack.i.b16 %v582_v0, %v721_v8  ;;  %v4951_v22 = vpack.i.b16 %v583_v4, %v723_v10 }
  0x4a   : > { %v949_v23 = vcombine.low %v941_v2, %v948_v12  ;;  %v4949_v24 = vpack.i.b16 %v575_v60, %v719_v14  ;;  %v1372_v18 = vcombine.low %v5683_v13, %v4945_v15  ;;  %v710_v25 = vunpack.i.h.s16 %v5683_v13 }
  0x4b   : > { %v1373_v26 = vcombine.low %v4946_v16, %v4947_v17  ;;  %v1375_v27 = vcombine.low %v4950_v20, %v4951_v22  ;;  %v752_v28 = vunpack.i.h.s16 %v536_v6  ;;  %v951_v29 = vcombine.low %v558_v59, %v559_v62 }
  0x4c   : > { %5181 = vmatprep.mubr.msk.bf16.mxu0 %vm1083_vm0, %v949_v23  ;;  %v1374_v31 = vcombine.low %v4948_v19, %v4949_v24  ;;  %v1382_v32 = vrot.slane %v1372_v18, %v5615_v11  ;;  %v4917_v33 = vpack.i.b16 %v536_v6, %v710_v25  ;;  %v952_v34 = vcombine.low %v560_v3, %v575_v60 }
  0x4d   : > { %v1389_v36 = vrot.slane %v1373_v26, %v5615_v11  ;;  %v1403_v37 = vrot.slane %v1375_v27, %v5615_v11  ;;  %v785_v38 = vpack.i.b16 %v713_v63, %v752_v28  ;;  %v953_v13 = vcombine.low %v582_v0, %v583_v4  ;;  %v4897_v26 = vld.sshfl [vmem:[%s5623_s12 + $0x38] sm:$0x1 pattern:$0x75316420]  ;;  %s5241_s12 = smul.u32 (%p5569_p5), 51, %s5451_s18 }
  0x4e   : > { %v1396_v39 = vrot.slane %v1374_v31, %v5615_v11  ;;  %v967_v40 = vrot.slane %v951_v29, %v5615_v11  ;;  %v974_v41 = vrot.slane %v952_v34, %v5615_v11  ;;  %v5732_v42 = vcombine.high %v582_v0, %v582_v0 }
  0x4f   : > { %v1404_v43 = vcombine.low %v1382_v32, %v1389_v36  ;;  %v950_v44 = vcombine.low %v4917_v33, %v785_v38  ;;  %v981_v45 = vrot.slane %v953_v13, %v5615_v11  ;;  %v598_v46 = vrot.slane %v4894_v30, %v5615_v11  ;;  %s4569_s13 = sadd.s32 (%p5569_p5), %s5242_s11, %s5241_s12 }
  0x50   : > { %v1405_v47 = vcombine.low %v1396_v39, %v1403_v37  ;;  %v606_v48 = vcombine.high %v4895_v35, %v4895_v35  ;;  %v613_v49 = vrot.slane %v4895_v35, %v5615_v11  ;;  %v630_v6 = vcombine.high %v4896_v9, %v4896_v9  ;;  %s5099_s24 = sshll.u32 (%p5569_p5), %s4569_s13, 2 }
  0x51   : > { %v1412_v21 = vrot.slane %v1404_v43, %v5615_v11  ;;  %v960_v50 = vrot.slane %v950_v44, %v5615_v11  ;;  %v983_v51 = vcombine.low %v974_v41, %v981_v45  ;;  %v637_v52 = vrot.slane %v4896_v9, %v5615_v11  ;;  %v5015_v41 = vld.sshfl [vmem:[%s5759_s29] sm:$0x33 pattern:$0x75316420]  ;;  %s6212_s28 = scalar_lea.vmem (%p5569_p5), %s6299_s4, %s5099_s24  }
  0x52   : > { %v1419_v53 = vrot.slane %v1405_v47, %v5615_v11  ;;  %v620_v54 = vrot.slane %v606_v48, %v5615_v11  ;;  %v644_v55 = vrot.slane %v630_v6, %v5615_v11  ;;  %v725_v56 = vunpack.i.h.s16 %v583_v4 }
  0x53   : > { %v982_v57 = vcombine.low %v960_v50, %v967_v40  ;;  %v997_v58 = vrot.slane %v983_v51, %v5615_v11  ;;  %v727_v59 = vunpack.i.h.s16 %v5732_v42  ;;  %v621_v60 = vcombine.high %v613_v49, %v613_v49  ;;  %v5016_v51 = vld.sshfl [vmem:[%s5759_s29 + $0x4] sm:$0x33 pattern:$0x75316420] }
  0x54   : > { %v1420_v61 = vcombine.low %v1412_v21, %v1419_v53  ;;  %v4952_v62 = vpack.i.b16 %v5732_v42, %v725_v56  ;;  %v1422_v0 = vcombine.low %v613_v49, %v620_v54  ;;  %v4956_v63 = vcombine.high %v613_v49, %v620_v54  ;;  %v5017_v56 = vld.sshfl [vmem:[%s5759_s29 + $0x8] sm:$0x1 pattern:$0x75316420] }
  0x55   : > { %v990_v1 = vrot.slane %v982_v57, %v5615_v11  ;;  %v4953_v2 = vpack.i.b16 %v598_v46, %v727_v59  ;;  %v1424_v3 = vcombine.low %v637_v52, %v644_v55  ;;  %v622_v5 = vcombine.high %v620_v54, %v620_v54 }
  0x56   : > { %5198 = vmatmul.mubr.msk.bf16.gmra.mxu1 %vm1083_vm0, %v1420_v61  ;;  %v1438_v4 = vrot.slane %v1422_v0, %v5615_v11  ;;  %v1445_v7 = vrot.slane %v4956_v63, %v5615_v11  ;;  %v645_v8 = vcombine.high %v637_v52, %v637_v52  ;;  %v730_v10 = vunpack.i.h.s16 %v613_v49 }
  0x57   : > { %v998_v12 = vcombine.low %v990_v1, %v997_v58  ;;  %v1421_v14 = vcombine.low %v4952_v62, %v4953_v2  ;;  %v1452_v15 = vrot.slane %v1424_v3, %v5615_v11  ;;  %v732_v16 = vunpack.i.h.s16 %v620_v54 }
  0x58   : > { %v734_v17 = vunpack.i.h.s16 %v621_v60  ;;  %v736_v19 = vunpack.i.h.s16 %v622_v5  ;;  %v738_v20 = vunpack.i.h.s16 %v637_v52  ;;  %v740_v22 = vunpack.i.h.s16 %v644_v55 }
  0x59   : > { %5182 = vmatmul.mubr.msk.bf16.gmra.mxu0 %vm1083_vm0, %v998_v12  ;;  %v1431_v23 = vrot.slane %v1421_v14, %v5615_v11  ;;  %v1454_v24 = vcombine.low %v1445_v7, %v1452_v15  ;;  %v4918_v18 = vpack.i.b16 %v620_v54, %v730_v10  ;;  %v4919_v25 = vpack.i.b16 %v621_v60, %v732_v16 }
  0x5a   : > { %v4920_v27 = vpack.i.b16 %v622_v5, %v734_v17  ;;  %v4921_v28 = vpack.i.b16 %v637_v52, %v736_v19  ;;  %v4922_v29 = vpack.i.b16 %v644_v55, %v738_v20  ;;  %v4923_v30 = vpack.i.b16 %v645_v8, %v740_v22  ;;  %v5018_v5 = vld.sshfl [vmem:[%s5759_s29 + $0xc] sm:$0x33 pattern:$0x75316420] }
  0x5b   : > { %v1453_v31 = vcombine.low %v1431_v23, %v1438_v4  ;;  %v1468_v32 = vrot.slane %v1454_v24, %v5615_v11  ;;  %v999_v33 = vcombine.low %v5732_v42, %v598_v46  ;;  %v1000_v34 = vcombine.low %v4918_v18, %v4919_v25 }
  0x5c   : > { %v1001_v35 = vcombine.low %v4920_v27, %v4921_v28  ;;  %v1002_v36 = vcombine.low %v4922_v29, %v4923_v30  ;;  %v660_v37 = vrot.slane %v4897_v26, %v5615_v11  ;;  %v4957_v38 = vcombine.high %v637_v52, %v644_v55 }
  0x5d   : > { %v1461_v13 = vrot.slane %v1453_v31, %v5615_v11  ;;  %v1009_v9 = vrot.slane %v999_v33, %v5615_v11  ;;  %v1016_v39 = vrot.slane %v1000_v34, %v5615_v11  ;;  %v646_v40 = vcombine.high %v644_v55, %v644_v55 }
  0x5e   : > { %v1023_v43 = vrot.slane %v1001_v35, %v5615_v11  ;;  %v1030_v44 = vrot.slane %v1002_v36, %v5615_v11  ;;  %v745_v42 = vunpack.i.l.s16 %v660_v37  ;;  %v1477_v45 = vrot.slane %v4957_v38, %v5615_v11 }
  0x5f   : > { %v1469_v46 = vcombine.low %v1461_v13, %v1468_v32  ;;  %v1031_v47 = vcombine.low %v1009_v9, %v1016_v39  ;;  %v742_v48 = vunpack.i.h.s16 %v645_v8  ;;  %v744_v49 = vunpack.i.h.s16 %v646_v40 }
  0x60   : > { %v1032_v6 = vcombine.low %v1023_v43, %v1030_v44  ;;  %v1484_v21 = vrot.slane %v745_v42, %v5615_v11  ;;  %v754_v50 = vunpack.i.h.s16 %v660_v37  ;;  %v2502_v52 = vcombine.high %v5015_v41, %v5015_v41  ;;  %v5019_v43 = vld.sshfl [vmem:[%s5759_s29 + $0x10] sm:$0x33 pattern:$0x75316420] }
  0x61   : > { %5201 = vmatprep.mubr.msk.bf16.mxu1 %vm1083_vm0, %v1469_v46  ;;  %v1039_v53 = vrot.slane %v1031_v47, %v5615_v11  ;;  %v4924_v54 = vpack.i.b16 %v646_v40, %v742_v48  ;;  %v4925_v55 = vpack.i.b16 %v660_v37, %v744_v49  ;;  %v2509_v57 = vrot.slane %v5015_v41, %v5615_v11 }
  0x62   : > { %v1046_v58 = vrot.slane %v1032_v6, %v5615_v11  ;;  %v1485_v59 = vcombine.low %v1477_v45, %v1484_v21  ;;  %v1062_v60 = vrot.slane %v754_v50, %v5615_v11  ;;  %v2516_v61 = vrot.slane %v2502_v52, %v5615_v11 }
  0x63   : > { %v1048_v62 = vcombine.low %v4924_v54, %v4925_v55  ;;  %v2517_v0 = vcombine.high %v2509_v57, %v2509_v57  ;;  %v2526_v63 = vcombine.high %v5016_v51, %v5016_v51  ;;  %v2533_v1 = vrot.slane %v5016_v51, %v5615_v11 }
  0x64   : > { %v1047_v2 = vcombine.low %v1039_v53, %v1046_v58  ;;  %v1492_v3 = vrot.slane %v1485_v59, %v5615_v11  ;;  %v2518_v4 = vcombine.high %v2516_v61, %v2516_v61  ;;  %v5784_v7 = vrot.slane %v5017_v56, %v5615_v11 }
  0x65   : > { %v1055_v8 = vrot.slane %v1048_v62, %v5615_v11  ;;  %v2540_v10 = vrot.slane %v2526_v63, %v5615_v11  ;;  %v2541_v12 = vcombine.high %v2533_v1, %v2533_v1  ;;  %v5789_v14 = vrot.slane %v5018_v5, %v5615_v11 }
  0x66   : > { %5185 = vmatprep.mubr.msk.bf16.mxu0 %vm1083_vm0, %v1047_v2  ;;  %5202 = vmatmul.mubr.msk.bf16.gmra.mxu1 %vm1083_vm0, %v1492_v3  ;;  %v2805_v15 = vunpack.i.h.s16 %v2509_v57  ;;  %v2807_v16 = vunpack.i.h.s16 %v2516_v61  ;;  %v2809_v17 = vunpack.i.h.s16 %v2517_v0  ;;  %v2811_v19 = vunpack.i.h.s16 %v2518_v4 }
  0x67   : > { %v1063_v20 = vcombine.low %v1055_v8, %v1062_v60  ;;  %v2542_v22 = vcombine.high %v2540_v10, %v2540_v10  ;;  %v2813_v23 = vunpack.i.h.s16 %v2533_v1  ;;  %v2815_v24 = vunpack.i.h.s16 %v2540_v10 }
  0x68   : > { %v2817_v18 = vunpack.i.h.s16 %v2541_v12  ;;  %v2821_v25 = vunpack.i.h.s16 %v5784_v7  ;;  %v2822_v26 = vunpack.i.h.s16 %v5789_v14  ;;  %v5034_v27 = vpack.i.b16 %v2516_v61, %v2805_v15 }
  0x69   : > { %v1070_v28 = vrot.slane %v1063_v20, %v5615_v11  ;;  %v2819_v29 = vunpack.i.h.s16 %v2542_v22  ;;  %v5035_v30 = vpack.i.b16 %v2517_v0, %v2807_v16  ;;  %v5036_v31 = vpack.i.b16 %v2518_v4, %v2809_v17 }
  0x6a   : > { %v5037_v32 = vpack.i.b16 %v2533_v1, %v2811_v19  ;;  %v5038_v33 = vpack.i.b16 %v2540_v10, %v2813_v23  ;;  %v5039_v34 = vpack.i.b16 %v2541_v12, %v2815_v24  ;;  %v5040_v35 = vpack.i.b16 %v2542_v22, %v2817_v18 }
  0x6b   : > { %5186 = vmatmul.mubr.msk.bf16.gmra.mxu0 %vm1083_vm0, %v1070_v28  ;;  %v5041_v36 = vpack.i.b16 %v5784_v7, %v2819_v29  ;;  %v2903_v37 = vpack.i.b16 %v2822_v26, %v2821_v25  ;;  %v2938_v38 = vcombine.low %v5034_v27, %v5035_v30  ;;  %v2076_v13 = vcombine.low %v2509_v57, %v2516_v61  ;;  %v5020_v29 = vld.sshfl [vmem:[%s5759_s29 + $0x14] sm:$0x1 pattern:$0x75316420] }
  0x6c   : > { %v2939_v9 = vcombine.low %v5036_v31, %v5037_v32  ;;  %v2940_v39 = vcombine.low %v5038_v33, %v5039_v34  ;;  %v5003_v40 = vcombine.high %v2509_v57, %v2516_v61  ;;  %v2078_v41 = vcombine.low %v2533_v1, %v2540_v10  ;;  %v5021_v34 = vld.sshfl [vmem:[%s5759_s29 + $0x18] sm:$0x33 pattern:$0x75316420] }
  0x6d   : > { %v2941_v44 = vcombine.low %v5040_v35, %v5041_v36  ;;  %v2948_v42 = vrot.slane %v2938_v38, %v5615_v11  ;;  %v5004_v45 = vcombine.high %v2533_v1, %v2540_v10  ;;  %v2086_v46 = vrot.slane %v2076_v13, %v5615_v11 }
  0x6e   : > { %v2955_v47 = vrot.slane %v2939_v9, %v5615_v11  ;;  %v2962_v48 = vrot.slane %v2940_v39, %v5615_v11  ;;  %v2093_v49 = vrot.slane %v5003_v40, %v5615_v11  ;;  %v2100_v6 = vrot.slane %v2078_v41, %v5615_v11  ;;  %v5022_v41 = vld.sshfl [vmem:[%s5759_s29 + $0x1c] sm:$0x33 pattern:$0x75316420] }
  0x6f   : > { %v2969_v21 = vrot.slane %v2941_v44, %v5615_v11  ;;  %v2107_v50 = vrot.slane %v5004_v45, %v5615_v11  ;;  %v2564_v51 = vcombine.high %v5018_v5, %v5018_v5  ;;  %v2588_v52 = vcombine.high %v5019_v43, %v5019_v43 }
  0x70   : > { %v2970_v53 = vcombine.low %v2948_v42, %v2955_v47  ;;  %v2108_v54 = vcombine.low %v2086_v46, %v2093_v49  ;;  %v2595_v55 = vrot.slane %v5019_v43, %v5615_v11  ;;  %v1717_v56 = vcombine.high %v5789_v14, %v5789_v14 }
  0x71   : > { %v2971_v57 = vcombine.low %v2962_v48, %v2969_v21  ;;  %v2109_v58 = vcombine.low %v2100_v6, %v2107_v50  ;;  %v2578_v59 = vrot.slane %v2564_v51, %v5615_v11  ;;  %v2602_v60 = vrot.slane %v2588_v52, %v5615_v11 }
  0x72   : > { %v2978_v61 = vrot.slane %v2970_v53, %v5615_v11  ;;  %v2116_v62 = vrot.slane %v2108_v54, %v5615_v11  ;;  %v1741_v0 = vcombine.high %v2595_v55, %v2595_v55  ;;  %v1965_v63 = vunpack.i.h.s16 %v1717_v56 }
  0x73   : > { %v2985_v1 = vrot.slane %v2971_v57, %v5615_v11  ;;  %v2123_v2 = vrot.slane %v2109_v58, %v5615_v11  ;;  %v2987_v3 = vcombine.low %v2903_v37, %v2578_v59  ;;  %v5058_v5 = vcombine.high %v5789_v14, %v2578_v59 }
  0x74   : > { %v2989_v4 = vcombine.low %v2595_v55, %v2602_v60  ;;  %v5059_v8 = vcombine.high %v2595_v55, %v2602_v60  ;;  %v1718_v10 = vcombine.high %v2578_v59, %v2578_v59  ;;  %v5819_v12 = vcombine.high %v2602_v60, %v2602_v60 }
  0x75   : > { %v2986_v15 = vcombine.low %v2978_v61, %v2985_v1  ;;  %v2124_v16 = vcombine.low %v2116_v62, %v2123_v2  ;;  %v2997_v17 = vrot.slane %v2987_v3, %v5615_v11  ;;  %v3004_v19 = vrot.slane %v5058_v5, %v5615_v11 }
  0x76   : > { %v3011_v20 = vrot.slane %v2989_v4, %v5615_v11  ;;  %v3018_v22 = vrot.slane %v5059_v8, %v5615_v11  ;;  %v1963_v23 = vunpack.i.h.s16 %v2578_v59  ;;  %v1967_v24 = vunpack.i.h.s16 %v1718_v10 }
  0x77   : > { %5225 = vmatprep.mubr.msk.bf16.mxu1 %vm1083_vm0, %v2986_v15  ;;  %5209 = vmatprep.mubr.msk.bf16.mxu0 %vm1083_vm0, %v2124_v16  ;;  %v3019_v18 = vcombine.low %v2997_v17, %v3004_v19  ;;  %v1969_v25 = vunpack.i.h.s16 %v2595_v55  ;;  %v1971_v27 = vunpack.i.h.s16 %v2602_v60  ;;  %v1973_v28 = vunpack.i.h.s16 %v1741_v0 }
  0x78   : > { %v3020_v30 = vcombine.low %v3011_v20, %v3018_v22  ;;  %v4985_v31 = vpack.i.b16 %v5789_v14, %v5784_v7  ;;  %v4986_v32 = vpack.i.b16 %v2578_v59, %v2822_v26  ;;  %v4987_v33 = vpack.i.b16 %v1717_v56, %v1963_v23  ;;  %v5023_v22 = vld.sshfl [vmem:[%s5759_s29 + $0x20] sm:$0x1 pattern:$0x75316420] }
  0x79   : > { %v3027_v35 = vrot.slane %v3019_v18, %v5615_v11  ;;  %v4988_v36 = vpack.i.b16 %v1718_v10, %v1965_v63  ;;  %v4989_v37 = vpack.i.b16 %v2595_v55, %v1967_v24  ;;  %v4990_v38 = vpack.i.b16 %v2602_v60, %v1969_v25 }
  0x7a   : > { %v3034_v13 = vrot.slane %v3020_v30, %v5615_v11  ;;  %v4991_v9 = vpack.i.b16 %v1741_v0, %v1971_v27  ;;  %v4992_v39 = vpack.i.b16 %v5819_v12, %v1973_v28  ;;  %v2125_v40 = vcombine.low %v4985_v31, %v4986_v32  ;;  %v5024_v27 = vld.sshfl [vmem:[%s5759_s29 + $0x24] sm:$0x33 pattern:$0x75316420] }
  0x7b   : > { %v2126_v43 = vcombine.low %v4987_v33, %v4988_v36  ;;  %v2127_v44 = vcombine.low %v4989_v37, %v4990_v38  ;;  %v2618_v7 = vrot.slane %v5020_v29, %v5615_v11  ;;  %v2626_v14 = vcombine.high %v5021_v34, %v5021_v34  ;;  %v5025_v32 = vld.sshfl [vmem:[%s5759_s29 + $0x28] sm:$0x33 pattern:$0x75316420] }
  0x7c   : > { %v3035_v26 = vcombine.low %v3027_v35, %v3034_v13  ;;  %v2128_v42 = vcombine.low %v4991_v9, %v4992_v39  ;;  %v2135_v45 = vrot.slane %v2125_v40, %v5615_v11  ;;  %v2633_v46 = vrot.slane %v5021_v34, %v5615_v11 }
  0x7d   : > { %v2142_v47 = vrot.slane %v2126_v43, %v5615_v11  ;;  %v2149_v48 = vrot.slane %v2127_v44, %v5615_v11  ;;  %v2640_v49 = vrot.slane %v2626_v14, %v5615_v11  ;;  %v2650_v6 = vcombine.high %v5022_v41, %v5022_v41 }
  0x7e   : > { %5226 = vmatmul.mubr.msk.bf16.vlgmr.msra.gmra.mxu1 %vm1083_vm0, %v3035_v26  ;;  %v2156_v21 = vrot.slane %v2128_v42, %v5615_v11  ;;  %v2641_v50 = vcombine.high %v2633_v46, %v2633_v46  ;;  %v2657_v51 = vrot.slane %v5022_v41, %v5615_v11  ;;  %v2839_v52 = vunpack.i.h.s16 %v2633_v46 }
  0x7f   : > { %v2157_v53 = vcombine.low %v2135_v45, %v2142_v47  ;;  %v2642_v54 = vcombine.high %v2640_v49, %v2640_v49  ;;  %v2664_v55 = vrot.slane %v2650_v6, %v5615_v11  ;;  %v2841_v56 = vunpack.i.h.s16 %v2640_v49 }
  0x80   : > { %v2158_v57 = vcombine.low %v2149_v48, %v2156_v21  ;;  %v2665_v58 = vcombine.high %v2657_v51, %v2657_v51  ;;  %v2843_v59 = vunpack.i.h.s16 %v2641_v50  ;;  %v2847_v60 = vunpack.i.h.s16 %v2657_v51 }
  0x81   : > { %v2165_v61 = vrot.slane %v2157_v53, %v5615_v11  ;;  %v5848_v62 = vcombine.high %v2664_v55, %v2664_v55  ;;  %v2845_v0 = vunpack.i.h.s16 %v2642_v54  ;;  %v2849_v63 = vunpack.i.h.s16 %v2664_v55 }
  0x82   : > { %v2172_v1 = vrot.slane %v2158_v57, %v5615_v11  ;;  %v2851_v2 = vunpack.i.h.s16 %v2665_v58  ;;  %v5042_v3 = vpack.i.b16 %v2640_v49, %v2839_v52  ;;  %v5043_v5 = vpack.i.b16 %v2641_v50, %v2841_v56 }
  0x83   : > { %v5044_v4 = vpack.i.b16 %v2642_v54, %v2843_v59  ;;  %v5045_v8 = vpack.i.b16 %v2657_v51, %v2845_v0  ;;  %v5046_v10 = vpack.i.b16 %v2664_v55, %v2847_v60  ;;  %v5047_v15 = vpack.i.b16 %v2665_v58, %v2849_v63 }
  0x84   : > { %v2173_v16 = vcombine.low %v2165_v61, %v2172_v1  ;;  %v5048_v17 = vpack.i.b16 %v5848_v62, %v2851_v2  ;;  %v3036_v19 = vcombine.low %v2618_v7, %v5042_v3  ;;  %v1975_v20 = vunpack.i.h.s16 %v5819_v12 }
  0x85   : > { %v3037_v23 = vcombine.low %v5043_v5, %v5044_v4  ;;  %v3038_v24 = vcombine.low %v5045_v8, %v5046_v10  ;;  %v2175_v18 = vcombine.low %v2640_v49, %v2641_v50  ;;  %v2176_v25 = vcombine.low %v2642_v54, %v2657_v51 }
  0x86   : > { %5210 = vmatmul.mubr.msk.bf16.vlgmr.msra.gmra.mxu0 %vm1083_vm0, %v2173_v16  ;;  %v3039_v28 = vcombine.low %v5047_v15, %v5048_v17  ;;  %v3046_v29 = vrot.slane %v3036_v19, %v5615_v11  ;;  %v4993_v30 = vpack.i.b16 %v2618_v7, %v1975_v20  ;;  %v2177_v31 = vcombine.low %v2664_v55, %v2665_v58 }
  0x87   : > { %v3053_v33 = vrot.slane %v3037_v23, %v5615_v11  ;;  %v3060_v34 = vrot.slane %v3038_v24, %v5615_v11  ;;  %v2191_v12 = vrot.slane %v2175_v18, %v5615_v11  ;;  %v2198_v35 = vrot.slane %v2176_v25, %v5615_v11  ;;  %v5026_v23 = vld.sshfl [vmem:[%s5759_s29 + $0x2c] sm:$0x1 pattern:$0x75316420] }
  0x88   : > { %v3067_v36 = vrot.slane %v3039_v28, %v5615_v11  ;;  %v2174_v37 = vcombine.low %v4993_v30, %v2633_v46  ;;  %v2205_v38 = vrot.slane %v2177_v31, %v5615_v11  ;;  %v2680_v13 = vrot.slane %v5023_v22, %v5615_v11  ;;  %v5027_v28 = vld.sshfl [vmem:[%s5759_s29 + $0x30] sm:$0x33 pattern:$0x75316420] }
  0x89   : > { %v3068_v9 = vcombine.low %v3046_v29, %v3053_v33  ;;  %v2688_v39 = vcombine.high %v5024_v27, %v5024_v27  ;;  %v2695_v40 = vrot.slane %v5024_v27, %v5615_v11  ;;  %v2712_v41 = vcombine.high %v5025_v32, %v5025_v32 }
  0x8a   : > { %v3069_v43 = vcombine.low %v3060_v34, %v3067_v36  ;;  %v2184_v44 = vrot.slane %v2174_v37, %v5615_v11  ;;  %v2207_v7 = vcombine.low %v2198_v35, %v2205_v38  ;;  %v2719_v14 = vrot.slane %v5025_v32, %v5615_v11  ;;  %v5028_v32 = vld.sshfl [vmem:[%s5759_s29 + $0x34] sm:$0x33 pattern:$0x75316420] }
  0x8b   : > { %v3076_v26 = vrot.slane %v3068_v9, %v5615_v11  ;;  %v2702_v42 = vrot.slane %v2688_v39, %v5615_v11  ;;  %v2703_v45 = vcombine.high %v2695_v40, %v2695_v40  ;;  %v2726_v46 = vrot.slane %v2712_v41, %v5615_v11 }
  0x8c   : > { %v3083_v47 = vrot.slane %v3069_v43, %v5615_v11  ;;  %v2206_v48 = vcombine.low %v2184_v44, %v2191_v12  ;;  %v2221_v49 = vrot.slane %v2207_v7, %v5615_v11  ;;  %v5873_v6 = vcombine.high %v2719_v14, %v2719_v14 }
  0x8d   : > { %v2704_v21 = vcombine.high %v2702_v42, %v2702_v42  ;;  %v2853_v50 = vunpack.i.h.s16 %v5848_v62  ;;  %v2855_v51 = vunpack.i.h.s16 %v2680_v13  ;;  %v2856_v52 = vunpack.i.h.s16 %v2695_v40 }
  0x8e   : > { %v3084_v53 = vcombine.low %v3076_v26, %v3083_v47  ;;  %v2214_v54 = vrot.slane %v2206_v48, %v5615_v11  ;;  %v3086_v55 = vcombine.low %v2702_v42, %v2703_v45  ;;  %v3088_v56 = vcombine.low %v2726_v46, %v5873_v6 }
  0x8f   : > { %v5049_v57 = vpack.i.b16 %v2680_v13, %v2853_v50  ;;  %v2920_v58 = vpack.i.b16 %v2856_v52, %v2855_v51  ;;  %v3087_v59 = vcombine.low %v2704_v21, %v2719_v14  ;;  %v1997_v60 = vunpack.i.h.s16 %v2702_v42 }
  0x90   : > { %5229 = vmatprep.mubr.msk.bf16.mxu1 %vm1083_vm0, %v3084_v53  ;;  %v2222_v61 = vcombine.low %v2214_v54, %v2221_v49  ;;  %v3102_v0 = vrot.slane %v3086_v55, %v5615_v11  ;;  %v3116_v63 = vrot.slane %v3088_v56, %v5615_v11  ;;  %v1999_v1 = vunpack.i.h.s16 %v2703_v45 }
  0x91   : > { %v3085_v2 = vcombine.low %v5049_v57, %v2920_v58  ;;  %v3109_v3 = vrot.slane %v3087_v59, %v5615_v11  ;;  %v2001_v5 = vunpack.i.h.s16 %v2704_v21  ;;  %v2003_v4 = vunpack.i.h.s16 %v2719_v14 }
  0x92   : > { %5213 = vmatprep.mubr.msk.bf16.mxu0 %vm1083_vm0, %v2222_v61  ;;  %v2005_v8 = vunpack.i.h.s16 %v2726_v46  ;;  %v4994_v10 = vpack.i.b16 %v2695_v40, %v2680_v13  ;;  %v4995_v15 = vpack.i.b16 %v2702_v42, %v2856_v52  ;;  %v4996_v16 = vpack.i.b16 %v2703_v45, %v1997_v60 }
  0x93   : > { %v3095_v17 = vrot.slane %v3085_v2, %v5615_v11  ;;  %v3118_v19 = vcombine.low %v3109_v3, %v3116_v63  ;;  %v4997_v20 = vpack.i.b16 %v2704_v21, %v1999_v1  ;;  %v4998_v22 = vpack.i.b16 %v2719_v14, %v2001_v5 }
  0x94   : > { %v4999_v24 = vpack.i.b16 %v2726_v46, %v2003_v4  ;;  %v5000_v18 = vpack.i.b16 %v5873_v6, %v2005_v8  ;;  %v2223_v25 = vcombine.low %v5848_v62, %v4994_v10  ;;  %v2224_v27 = vcombine.low %v4995_v15, %v4996_v16  ;;  %v5029_v10 = vld.sshfl [vmem:[%s5759_s29 + $0x38] sm:$0x1 pattern:$0x75316420] }
  0x95   : > { %v3117_v29 = vcombine.low %v3095_v17, %v3102_v0  ;;  %v3132_v30 = vrot.slane %v3118_v19, %v5615_v11  ;;  %v2225_v31 = vcombine.low %v4997_v20, %v4998_v22  ;;  %v2728_v33 = vcombine.high %v2726_v46, %v2726_v46 }
  0x96   : > { %v2226_v34 = vcombine.low %v4999_v24, %v5000_v18  ;;  %v2233_v12 = vrot.slane %v2223_v25, %v5615_v11  ;;  %v2240_v35 = vrot.slane %v2224_v27, %v5615_v11  ;;  %v2742_v36 = vrot.slane %v5026_v23, %v5615_v11 }
  0x97   : > { %v3125_v37 = vrot.slane %v3117_v29, %v5615_v11  ;;  %v2247_v38 = vrot.slane %v2225_v31, %v5615_v11  ;;  %v2750_v62 = vcombine.high %v5027_v28, %v5027_v28  ;;  %v2757_v13 = vrot.slane %v5027_v28, %v5615_v11 }
  0x98   : > { %v2254_v9 = vrot.slane %v2226_v34, %v5615_v11  ;;  %v2255_v39 = vcombine.low %v2233_v12, %v2240_v35  ;;  %v2774_v40 = vcombine.high %v5028_v32, %v5028_v32  ;;  %v5898_v41 = vrot.slane %v5028_v32, %v5615_v11 }
  0x99   : > { %v3133_v43 = vcombine.low %v3125_v37, %v3132_v30  ;;  %v2764_v44 = vrot.slane %v2750_v62, %v5615_v11  ;;  %v2765_v7 = vcombine.high %v2757_v13, %v2757_v13  ;;  %v2873_v14 = vunpack.i.h.s16 %v2757_v13 }
  0x9a   : > { %v2256_v26 = vcombine.low %v2247_v38, %v2254_v9  ;;  %v2263_v42 = vrot.slane %v2255_v39, %v5615_v11  ;;  %v2788_v45 = vrot.slane %v2774_v40, %v5615_v11  ;;  %v2789_v46 = vcombine.high %v5898_v41, %v5898_v41 }
  0x9b   : > { %5230 = vmatmul.mubr.msk.bf16.gmra.mxu1 %vm1083_vm0, %v3133_v43  ;;  %v2766_v47 = vcombine.high %v2764_v44, %v2764_v44  ;;  %v2875_v48 = vunpack.i.h.s16 %v2764_v44  ;;  %v2877_v49 = vunpack.i.h.s16 %v2765_v7  ;;  %v2881_v21 = vunpack.i.h.s16 %v5898_v41 }
  0x9c   : > { %v2270_v50 = vrot.slane %v2256_v26, %v5615_v11  ;;  %v2883_v51 = vunpack.i.h.s16 %v2788_v45  ;;  %v5050_v52 = vpack.i.b16 %v2764_v44, %v2873_v14  ;;  %v3134_v53 = vcombine.low %v2728_v33, %v2742_v36 }
  0x9d   : > { %v2879_v54 = vunpack.i.h.s16 %v2766_v47  ;;  %v5051_v55 = vpack.i.b16 %v2765_v7, %v2875_v48  ;;  %v5052_v56 = vpack.i.b16 %v2766_v47, %v2877_v49  ;;  %v5054_v57 = vpack.i.b16 %v2788_v45, %v2881_v21 }
  0x9e   : > { %v2271_v58 = vcombine.low %v2263_v42, %v2270_v50  ;;  %v5055_v59 = vpack.i.b16 %v2789_v46, %v2883_v51  ;;  %v3144_v60 = vrot.slane %v3134_v53, %v5615_v11  ;;  %v2007_v61 = vunpack.i.h.s16 %v5873_v6 }
  0x9f   : > { %v5053_v0 = vpack.i.b16 %v5898_v41, %v2879_v54  ;;  %v3135_v63 = vcombine.low %v5050_v52, %v5051_v55  ;;  %v2009_v1 = vunpack.i.h.s16 %v2728_v33  ;;  %v2273_v2 = vcombine.low %v2757_v13, %v2764_v44 }
  0xa0   : > { %5214 = vmatmul.mubr.msk.bf16.gmra.mxu0 %vm1083_vm0, %v2271_v58  ;;  %v3137_v3 = vcombine.low %v5054_v57, %v5055_v59  ;;  %v5001_v5 = vpack.i.b16 %v2728_v33, %v2007_v61  ;;  %v5005_v4 = vcombine.high %v2757_v13, %v2764_v44  ;;  %v2275_v8 = vcombine.low %v5898_v41, %v2788_v45 }
  0xa1   : > { %v3136_v15 = vcombine.low %v5052_v56, %v5053_v0  ;;  %v3151_v16 = vrot.slane %v3135_v63, %v5615_v11  ;;  %v5002_v17 = vpack.i.b16 %v2742_v36, %v2009_v1  ;;  %v2289_v19 = vrot.slane %v2273_v2, %v5615_v11 }
  0xa2   : > { %v3165_v6 = vrot.slane %v3137_v3, %v5615_v11  ;;  %v2296_v20 = vrot.slane %v5005_v4, %v5615_v11  ;;  %v2303_v22 = vrot.slane %v2275_v8, %v5615_v11  ;;  %v2790_v23 = vcombine.high %v2788_v45, %v2788_v45 }
  0xa3   : > { %v3158_v24 = vrot.slane %v3136_v15, %v5615_v11  ;;  %v3166_v18 = vcombine.low %v3144_v60, %v3151_v16  ;;  %v2272_v25 = vcombine.low %v5001_v5, %v5002_v17  ;;  %v2804_v27 = vrot.slane %v5029_v10, %v5615_v11 }
  0xa4   : > { %v2305_v28 = vcombine.low %v2296_v20, %v2303_v22  ;;  %v2885_v29 = vunpack.i.h.s16 %v2789_v46  ;;  %v2887_v30 = vunpack.i.h.s16 %v2790_v23  ;;  %v5006_v31 = vcombine.high %v5898_v41, %v2788_v45 }
  0xa5   : > { %v3167_v32 = vcombine.low %v3158_v24, %v3165_v6  ;;  %v3174_v33 = vrot.slane %v3166_v18, %v5615_v11  ;;  %v2282_v34 = vrot.slane %v2272_v25, %v5615_v11  ;;  %v2889_v12 = vunpack.i.h.s16 %v2804_v27  ;;  %v5958_v18 = vld [vmem:[%s6298_s3] ss:$0 sm:$0xff] }
  0xa6   : > { %v5056_v35 = vpack.i.b16 %v2790_v23, %v2885_v29  ;;  %v5057_v36 = vpack.i.b16 %v2804_v27, %v2887_v30  ;;  %v2027_v37 = vunpack.i.l.s16 %v2804_v27  ;;  %v2319_v13 = vrot.slane %v2305_v28, %v5615_v11 }
  0xa7   : > { %v3181_v38 = vrot.slane %v3167_v32, %v5615_v11  ;;  %v2304_v62 = vcombine.low %v2282_v34, %v2289_v19  ;;  %v2328_v9 = vrot.slane %v5006_v31, %v5615_v11  ;;  %v3197_v40 = vrot.slane %v2889_v12, %v5615_v11 }
  0xa8   : > { %v3183_v39 = vcombine.low %v5056_v35, %v5057_v36  ;;  %v2335_v41 = vrot.slane %v2027_v37, %v5615_v11 }
  0xa9   : > { %v3182_v43 = vcombine.low %v3174_v33, %v3181_v38  ;;  %v2312_v44 = vrot.slane %v2304_v62, %v5615_v11 }
  0xaa   : > { %v3190_v7 = vrot.slane %v3183_v39, %v5615_v11  ;;  %v2336_v14 = vcombine.low %v2328_v9, %v2335_v41 }
  0xab   : > { %5233 = vmatprep.mubr.msk.bf16.mxu1 %vm1083_vm0, %v3182_v43  ;;  %v2320_v26 = vcombine.low %v2312_v44, %v2319_v13 }
  0xac   : > { %v3198_v42 = vcombine.low %v3190_v7, %v3197_v40  ;;  %v2343_v45 = vrot.slane %v2336_v14, %v5615_v11 }
  0xad   : > { %5217 = vmatprep.mubr.msk.bf16.mxu0 %vm1083_vm0, %v2320_v26 }
  0xae   : > { %v3205_v46 = vrot.slane %v3198_v42, %v5615_v11  ;;  %5218 = vmatmul.mubr.msk.bf16.gmra.mxu0 %vm1083_vm0, %v2343_v45 }
  0xb0   : > { %5234 = vmatmul.mubr.msk.bf16.gmra.mxu1 %vm1083_vm0, %v3205_v46 }
  0xfc   : > { %v5195_v47 = vpop.f32.mrf.mxu1 }
  0xfe   : > { %v5179_v48 = vpop.f32.mrf.mxu0  ;;  %v1557_v49 = vpop.f32.mrf.mxu1 }
  0xff   : > { %v1566_v6 = vadd.f32 %v5195_v47, %v5179_v48 }
 0x100   : > { %v1136_v21 = vpop.f32.mrf.mxu0  ;;  %v5196_v50 = vpop.f32.mrf.mxu1 }
 0x101   : > { %v1558_v23 = vadd.f32 %v1557_v49, %v1136_v21 }
 0x102   : > { %v5180_v51 = vpop.f32.mrf.mxu0  ;;  %v1560_v52 = vpop.f32.mrf.mxu1 }
 0x103   : > { %v1569_v27 = vadd.f32 %v5196_v50, %v5180_v51 }
 0x104   : > { %v1139_v53 = vpop.f32.mrf.mxu0 }
 0x105   : > { %v1561_v12 = vadd.f32 %v1560_v52, %v1139_v53 }
 0x116   : > { %v5937_v54 = vpop.f32.mrf.mxu1 }
 0x118   : > { %v5939_v55 = vpop.f32.mrf.mxu1 }
 0x119   : > { %v5941_v56 = vpop.f32.mrf.mxu0 }
 0x11a   : > { %v5200_v57 = vpop.f32.mrf.mxu1 }
 0x11b   : > { %v5943_v58 = vpop.f32.mrf.mxu0 }
 0x11c   : > { %v1576_v60 = vpop.f32.mrf.mxu1 }
 0x11d   : > { %v5184_v59 = vpop.f32.mrf.mxu0 }
 0x11e   : > { %v5945_v61 = vadd.f32 %v5200_v57, %v5184_v59 }
 0x11f   : > { %v1155_v0 = vpop.f32.mrf.mxu0 }
 0x120   : > { %v5947_v63 = vadd.f32 %v1576_v60, %v1155_v0 }
 0x126   : > { %v5203_v1 = vpop.f32.mrf.mxu1 }
 0x128   : > { %v1589_v2 = vpop.f32.mrf.mxu1 }
 0x12a   : > { %v5204_v3 = vpop.f32.mrf.mxu1 }
 0x12b   : > { %v5187_v5 = vpop.f32.mrf.mxu0 }
 0x12c   : > { %v5949_v4 = vadd.f32 %v5203_v1, %v5187_v5  ;;  %v1592_v16 = vpop.f32.mrf.mxu1  ;;  %v4530_v5 = vld [vmem:[%s5985_s15 + $0x8] sm:$0x1] }
 0x12d   : > { %v1168_v8 = vpop.f32.mrf.mxu0 }
 0x12e   : > { %v5951_v10 = vadd.f32 %v1589_v2, %v1168_v8 }
 0x12f   : > { %v5188_v15 = vpop.f32.mrf.mxu0 }
 0x131   : > { %v1171_v17 = vpop.f32.mrf.mxu0 }
 0x132   : > { %v5953_v19 = vadd.f32 %v1592_v16, %v1171_v17 }
 0x13e   : > { %v5227_v20 = vpop.f32.mrf.mxu1 }
 0x140   : > { %v3270_v29 = vpop.f32.mrf.mxu1 }
 0x142   : > { %v5228_v62 = vpop.f32.mrf.mxu1 }
 0x144   : > { %v3273_v49 = vpop.f32.mrf.mxu1 }
 0x146   : > { %v5211_v22 = vpop.f32.mrf.mxu0 }
 0x147   : > { %v2456_v24 = vadd.f32 %v5211_v22, %v1566_v6 }
 0x148   : > { %v2408_v25 = vpop.f32.mrf.mxu0 }
 0x149   : > { %v3318_v28 = vadd.f32 %v5227_v20, %v2456_v24  ;;  %v2454_v30 = vadd.f32 %v2408_v25, %v1558_v23 }
 0x14a   : > { %v5212_v31 = vpop.f32.mrf.mxu0 }
 0x14b   : > { %v3336_v32 = vadd.f32 %v5958_v18, %v3318_v28  ;;  %v3316_v33 = vadd.f32 %v3270_v29, %v2454_v30  ;;  %v2457_v34 = vadd.f32 %v5212_v31, %v1569_v27 }
 0x14c   : > { %v2411_v35 = vpop.f32.mrf.mxu0 }
 0x14d   : > { %v3454_v36 = vcombine.high %v3336_v32, %v3336_v32  ;;  %v3461_v37 = vrot.slane %v3336_v32, %v5615_v11  ;;  %v3334_v38 = vadd.f32 %v5958_v18, %v3316_v33  ;;  %v3319_v13 = vadd.f32 %v5228_v62, %v2457_v34 }
 0x14e   : > { %v2455_v9 = vadd.f32 %v2411_v35, %v1561_v12 }
 0x14f   : > { %v3468_v39 = vrot.slane %v3454_v36, %v5615_v11  ;;  %v3469_v40 = vcombine.high %v3461_v37, %v3461_v37  ;;  %v3477_v41 = vrot.slane %v3461_v37, %v5615_v11  ;;  %v3356_v43 = vcombine.high %v3334_v38, %v3334_v38 }
 0x150   : > { %v3363_v44 = vrot.slane %v3334_v38, %v5615_v11  ;;  %v3337_v48 = vadd.f32 %v5958_v18, %v3319_v13  ;;  %v3317_v52 = vadd.f32 %v3273_v49, %v2455_v9 }
 0x151   : > { %v3470_v7 = vcombine.high %v3468_v39, %v3468_v39  ;;  %v3484_v14 = vrot.slane %v3468_v39, %v5615_v11  ;;  %v3491_v26 = vrot.slane %v3469_v40, %v5615_v11  ;;  %v3499_v42 = vcombine.high %v3477_v41, %v3477_v41 }
 0x152   : > { %v3989_v45 = vrot.slane %v3477_v41, %v5615_v11  ;;  %v3370_v46 = vrot.slane %v3356_v43, %v5615_v11  ;;  %v3371_v47 = vcombine.high %v3363_v44, %v3363_v44  ;;  %v3379_v59 = vrot.slane %v3363_v44, %v5615_v11 }
 0x153   : > { %v3498_v21 = vrot.slane %v3470_v7, %v5615_v11  ;;  %v3500_v50 = vcombine.high %v3484_v14, %v3484_v14  ;;  %v3501_v51 = vcombine.high %v3491_v26, %v3491_v26  ;;  %v3997_v0 = vcombine.low %v3491_v26, %v3499_v42 }
 0x154   : > { %v3996_v53 = vrot.slane %v3989_v45, %v5615_v11  ;;  %v3372_v57 = vcombine.high %v3370_v46, %v3370_v46  ;;  %v3393_v60 = vrot.slane %v3371_v47, %v5615_v11  ;;  %v3386_v8 = vrot.slane %v3370_v46, %v5615_v11 }
 0x155   : > { %v3998_v1 = vcombine.low %v3501_v51, %v3484_v14  ;;  %v3999_v2 = vcombine.low %v3498_v21, %v3500_v50  ;;  %v3502_v22 = vcombine.high %v3498_v21, %v3498_v21  ;;  %v3503_v23 = vcombine.high %v3337_v48, %v3337_v48 }
 0x156   : > { %v5111_v15 = vpack.c.bf16 %v3996_v53, %v3996_v53  ;;  %v3400_v16 = vrot.slane %v3372_v57, %v5615_v11  ;;  %v3885_v17 = vcombine.low %v3379_v59, %v3393_v60  ;;  %v5069_v6 = vcombine.high %v3379_v59, %v3393_v60 }
 0x157   : > { %v4014_v20 = vrot.slane %v3998_v1, %v5615_v11  ;;  %v3510_v24 = vrot.slane %v3337_v48, %v5615_v11  ;;  %v4007_v30 = vrot.slane %v3997_v0, %v5615_v11  ;;  %v3517_v32 = vrot.slane %v3503_v23, %v5615_v11 }
 0x158   : > { %v4531_v25 = vsel %vm5980_vm3, %v5111_v15, %v4530_v5  ;;  %v3887_v27 = vcombine.low %v3386_v8, %v3400_v16  ;;  %v5070_v28 = vcombine.high %v3386_v8, %v3400_v16  ;;  %v3895_v29 = vrot.slane %v3885_v17, %v5615_v11 }
 0x159   : > { %4532 = vst [vmem:[%s5985_s15 + $0x8] sm:$0x1] %v4531_v25  ;;  %v3902_v31 = vrot.slane %v5069_v6, %v5615_v11  ;;  %v3518_v33 = vcombine.high %v3510_v24, %v3510_v24  ;;  %v3526_v35 = vrot.slane %v3510_v24, %v5615_v11  ;;  %v3335_v36 = vadd.f32 %v5958_v18, %v3317_v52 }
 0x15a   : > { %v3909_v34 = vrot.slane %v3887_v27, %v5615_v11  ;;  %v3916_v12 = vrot.slane %v5070_v28, %v5615_v11  ;;  %v4029_v37 = vcombine.low %v4007_v30, %v4014_v20  ;;  %v3519_v62 = vcombine.high %v3517_v32, %v3517_v32 }
 0x15b   : > { %v3917_v38 = vcombine.low %v3895_v29, %v3902_v31  ;;  %v4000_v13 = vcombine.low %v3502_v22, %v3526_v35  ;;  %v6004_v39 = vrot.slane %v3517_v32, %v5615_v11  ;;  %v3405_v40 = vcombine.high %v3335_v36, %v3335_v36  ;;  %v5231_v48 = vpop.f32.mrf.mxu1 }
 0x15c   : > { %v3918_v9 = vcombine.low %v3909_v34, %v3916_v12  ;;  %v1582_v41 = vadd.f32 %v5937_v54, %v5941_v56  ;;  %v3540_v43 = vrot.slane %v3518_v33, %v5615_v11  ;;  %v4021_v44 = vrot.slane %v3999_v2, %v5615_v11 }
 0x15d   : > { %v4028_v7 = vrot.slane %v4000_v13, %v5615_v11  ;;  %v1574_v14 = vadd.f32 %v5939_v55, %v5943_v58  ;;  %v4037_v26 = vrot.slane %v4029_v37, %v5615_v11  ;;  %v3412_v42 = vrot.slane %v3335_v36, %v5615_v11  ;;  %v3286_v16 = vpop.f32.mrf.mxu1 }
 0x15e   : > { %v3419_v45 = vrot.slane %v3405_v40, %v5615_v11  ;;  %v6017_v46 = vrot.slane %v3917_v38, %v5615_v11  ;;  %v6020_v54 = vrot.slane %v3519_v62, %v5615_v11  ;;  %v3548_v56 = vcombine.high %v3526_v35, %v3526_v35 }
 0x15f   : > { %v4030_v47 = vcombine.low %v4021_v44, %v4028_v7  ;;  %v6023_v21 = vrot.slane %v3918_v9, %v5615_v11  ;;  %v3549_v55 = vcombine.high %v6004_v39, %v6004_v39  ;;  %v3420_v58 = vcombine.high %v3412_v42, %v3412_v42  ;;  %v5232_v37 = vpop.f32.mrf.mxu1 }
 0x160   : > { %v5215_v49 = vpop.f32.mrf.mxu0  ;;  %v3421_v50 = vcombine.high %v3419_v45, %v3419_v45  ;;  %v3550_v51 = vcombine.high %v3540_v43, %v3540_v43  ;;  %v3428_v53 = vrot.slane %v3412_v42, %v5615_v11  ;;  %v3435_v60 = vrot.slane %v3419_v45, %v5615_v11 }
 0x161   : > { %v4044_v52 = vrot.slane %v4030_v47, %v5615_v11  ;;  %v2460_v57 = vadd.f32 %v5215_v49, %v1582_v41  ;;  %v3442_v0 = vrot.slane %v3420_v58, %v5615_v11  ;;  %v4046_v8 = vcombine.low %v3540_v43, %v3548_v56 }
 0x162   : > { %v2424_v59 = vpop.f32.mrf.mxu0  ;;  %v3449_v1 = vrot.slane %v3421_v50, %v5615_v11  ;;  %v3551_v17 = vcombine.high %v6020_v54, %v6020_v54  ;;  %v4047_v24 = vcombine.low %v3550_v51, %v6004_v39  ;;  %v3933_v34 = vcombine.low %v6017_v46, %v6023_v21  ;;  %v4540_v39 = vld [vmem:[%s5985_s15 + $0x20] sm:$0x1] }
 0x163   : > { %v2458_v2 = vadd.f32 %v2424_v59, %v1574_v14  ;;  %v4045_v5 = vcombine.low %v4037_v26, %v4044_v52  ;;  %v3322_v15 = vadd.f32 %v5231_v48, %v2460_v57  ;;  %v3934_v6 = vcombine.low %v3428_v53, %v3442_v0  ;;  %v3289_v48 = vpop.f32.mrf.mxu1 }
 0x164   : > { %v5071_v20 = vcombine.high %v3428_v53, %v3442_v0  ;;  %v3936_v22 = vcombine.low %v3435_v60, %v3449_v1  ;;  %v5072_v23 = vcombine.high %v3435_v60, %v3449_v1  ;;  %v5216_v29 = vpop.f32.mrf.mxu0  ;;  %v4056_v38 = vrot.slane %v4046_v8, %v5615_v11 }
 0x165   : > { %v5112_v25 = vpack.c.bf16 %v4045_v5, %v4045_v5  ;;  %v3340_v27 = vadd.f32 %v5958_v18, %v3322_v15  ;;  %v3320_v28 = vadd.f32 %v3286_v16, %v2458_v2  ;;  %v3944_v30 = vrot.slane %v3934_v6, %v5615_v11 }
 0x166   : > { %v3951_v31 = vrot.slane %v5071_v20, %v5615_v11  ;;  %v3958_v32 = vrot.slane %v3936_v22, %v5615_v11  ;;  %v3965_v33 = vrot.slane %v5072_v23, %v5615_v11  ;;  %v2461_v9 = vadd.f32 %v5216_v29, %v5945_v61  ;;  %v2427_v7 = vpop.f32.mrf.mxu0 }
 0x167   : > { %4533 = vst [vmem:[%s5985_s15 + $0xc] sm:$0xf] %v5112_v25  ;;  %v3650_v12 = vcombine.high %v3340_v27, %v3340_v27  ;;  %v3657_v35 = vrot.slane %v3340_v27, %v5615_v11  ;;  %v3338_v36 = vadd.f32 %v5958_v18, %v3320_v28  ;;  %v4063_v14 = vrot.slane %v4047_v24, %v5615_v11 }
 0x168   : > { %v3966_v62 = vcombine.low %v3944_v30, %v3951_v31  ;;  %v3967_v13 = vcombine.low %v3958_v32, %v3965_v33  ;;  %v3323_v57 = vadd.f32 %v5232_v37, %v2461_v9  ;;  %v4048_v60 = vcombine.low %v6020_v54, %v3549_v55 }
 0x169   : > { %v3664_v40 = vrot.slane %v3650_v12, %v5615_v11  ;;  %v3665_v41 = vcombine.high %v3657_v35, %v3657_v35  ;;  %v6049_v43 = vrot.slane %v3657_v35, %v5615_v11  ;;  %v3552_v44 = vcombine.high %v3338_v36, %v3338_v36 }
 0x16a   : > { %v3974_v26 = vrot.slane %v3966_v62, %v5615_v11  ;;  %v3981_v42 = vrot.slane %v3967_v13, %v5615_v11  ;;  %v3559_v45 = vrot.slane %v3338_v36, %v5615_v11  ;;  %v4078_v5 = vcombine.low %v4056_v38, %v4063_v14  ;;  %v4535_v62 = vld [vmem:[%s5985_s15 + $0x14] sm:$0x1] }
 0x16b   : > { %v3666_v46 = vcombine.high %v3664_v40, %v3664_v40  ;;  %v3680_v56 = vrot.slane %v3664_v40, %v5615_v11  ;;  %v6057_v61 = vrot.slane %v3665_v41, %v5615_v11  ;;  %v3695_v47 = vcombine.high %v6049_v43, %v6049_v43 }
 0x16c   : > { %v3982_v49 = vcombine.low %v3974_v26, %v3981_v42  ;;  %v3566_v21 = vrot.slane %v3552_v44, %v5615_v11  ;;  %v3567_v58 = vcombine.high %v3559_v45, %v3559_v45  ;;  %v6063_v50 = vrot.slane %v3559_v45, %v5615_v11 }
 0x16d   : > { %v3694_v51 = vrot.slane %v3666_v46, %v5615_v11  ;;  %v3696_v52 = vcombine.high %v3680_v56, %v3680_v56  ;;  %v3697_v53 = vcombine.high %v6057_v61, %v6057_v61  ;;  %v4213_v1 = vrot.slane %v3695_v47, %v5615_v11 }
 0x16e   : > { %v5219_v59 = vpop.f32.mrf.mxu0  ;;  %v5127_v0 = vpack.c.bf16 %v3982_v49, %v3933_v34  ;;  %v3568_v2 = vcombine.high %v3566_v21, %v3566_v21  ;;  %v3589_v15 = vrot.slane %v3567_v58, %v5615_v11  ;;  %v4049_v23 = vcombine.low %v3551_v17, %v6063_v50 }
 0x16f   : > { %v4221_v8 = vcombine.low %v3697_v53, %v3680_v56  ;;  %v4220_v20 = vrot.slane %v4213_v1, %v5615_v11  ;;  %v4222_v22 = vcombine.low %v3694_v51, %v3696_v52  ;;  %v3341_v24 = vadd.f32 %v5958_v18, %v3323_v57 }
 0x170   : > { %v5235_v16 = vpop.f32.mrf.mxu1  ;;  %v6074_v6 = vpop.f32.mrf.mxu0  ;;  %5128 = vst [vmem:[%s5985_s15] sm:$0xff] %v5127_v0   ;;  %v6081_v54 = vrot.slane %v3568_v2, %v5615_v11  ;;  %v4101_v55 = vrot.slane %v3589_v15, %v5615_v11  ;;  %v4070_v29 = vrot.slane %v4048_v60, %v5615_v11  ;;  %v4077_v30 = vrot.slane %v4049_v23, %v5615_v11 }
 0x171   : > { %v5117_v28 = vpack.c.bf16 %v4220_v20, %v4220_v20  ;;  %v2459_v17 = vadd.f32 %v2427_v7, %v5947_v63  ;;  %v4086_v31 = vrot.slane %v4078_v5, %v5615_v11  ;;  %v4231_v32 = vrot.slane %v4221_v8, %v5615_v11 }
 0x172   : > { %v6085_v25 = vpop.f32.mrf.mxu1  ;;  %v5220_v27 = vpop.f32.mrf.mxu0  ;;  %v6093_v33 = vrot.slane %v3566_v21, %v5615_v11  ;;  %v4108_v34 = vrot.slane %v4101_v55, %v5615_v11  ;;  %v4238_v35 = vrot.slane %v4222_v22, %v5615_v11  ;;  %v4079_v37 = vcombine.low %v4070_v29, %v4077_v30 }
 0x173   : > { %v4541_v36 = vsel %vm5980_vm3, %v5117_v28, %v4540_v39  ;;  %v5073_v38 = vcombine.high %v6063_v50, %v3589_v15  ;;  %v3699_v9 = vcombine.high %v3341_v24, %v3341_v24  ;;  %v3706_v40 = vrot.slane %v3341_v24, %v5615_v11 }
 0x174   : > { %v5236_v12 = vpop.f32.mrf.mxu1  ;;  %4542 = vst [vmem:[%s5985_s15 + $0x20] sm:$0x1] %v4541_v36  ;;  %v4110_v63 = vcombine.low %v6093_v33, %v6081_v54  ;;  %v5114_v13 = vpack.c.bf16 %v4108_v34, %v4108_v34  ;;  %v4093_v41 = vrot.slane %v4079_v37, %v5615_v11  ;;  %v3698_v44 = vcombine.high %v3694_v51, %v3694_v51 }
 0x175   : > { %v3321_v7 = vadd.f32 %v3289_v48, %v2459_v17  ;;  %v2464_v14 = vadd.f32 %v5219_v59, %v5949_v4  ;;  %v3713_v42 = vrot.slane %v3699_v9, %v5615_v11  ;;  %v3714_v45 = vcombine.high %v3706_v40, %v3706_v40 }
 0x176   : > { %v4536_v26 = vsel %vm5980_vm3, %v5114_v13, %v4535_v62  ;;  %v3722_v46 = vrot.slane %v3706_v40, %v5615_v11  ;;  %v4161_v56 = vcombine.low %v6049_v43, %v6057_v61  ;;  %v4253_v47 = vcombine.low %v4231_v32, %v4238_v35 }
 0x177   : > { %v4094_v49 = vcombine.low %v4086_v31, %v4093_v41  ;;  %4537 = vst [vmem:[%s5985_s15 + $0x14] sm:$0x1] %v4536_v26  ;;  %v3339_v21 = vadd.f32 %v5958_v18, %v3321_v7  ;;  %v4126_v48 = vrot.slane %v4110_v63, %v5615_v11  ;;  %v3736_v4 = vrot.slane %v3714_v45, %v5615_v11 }
 0x178   : > { %v3744_v58 = vcombine.high %v3722_v46, %v3722_v46  ;;  %v3326_v50 = vadd.f32 %v5235_v16, %v2464_v14  ;;  %v4223_v52 = vcombine.low %v3698_v44, %v3722_v46  ;;  %v4119_v59 = vrot.slane %v5073_v38, %v5615_v11 }
 0x179   : > { %v5113_v51 = vpack.c.bf16 %v4094_v49, %v4094_v49  ;;  %v3601_v53 = vcombine.high %v3339_v21, %v3339_v21  ;;  %v3608_v57 = vrot.slane %v3339_v21, %v5615_v11  ;;  %v3715_v43 = vcombine.high %v3713_v42, %v3713_v42 }
 0x17a   : > { %v3729_v61 = vrot.slane %v3713_v42, %v5615_v11  ;;  %v4224_v60 = vcombine.low %v3736_v4, %v3744_v58  ;;  %v5074_v0 = vcombine.high %v6093_v33, %v6081_v54  ;;  %v4245_v1 = vrot.slane %v4223_v52, %v5615_v11 }
 0x17b   : > { %4534 = vst [vmem:[%s5985_s15 + $0x10] sm:$0xf] %v5113_v51  ;;  %v3615_v2 = vrot.slane %v3601_v53, %v5615_v11  ;;  %v3616_v5 = vcombine.high %v3608_v57, %v3608_v57  ;;  %v4261_v8 = vrot.slane %v4253_v47, %v5615_v11  ;;  %v4141_v15 = vcombine.low %v4119_v59, %v4126_v48  ;;  %v2443_v48 = vpop.f32.mrf.mxu0  ;;  %v4550_v53 = vld [vmem:[%s5985_s15 + $0x38] sm:$0x1] }
 0x17c   : > { %v4252_v16 = vrot.slane %v4224_v60, %v5615_v11  ;;  %v3344_v20 = vadd.f32 %v5958_v18, %v3326_v50  ;;  %v3624_v23 = vrot.slane %v3608_v57, %v5615_v11  ;;  %v2462_v54 = vadd.f32 %v6074_v6, %v5951_v10 }
 0x17d   : > { %v3617_v22 = vcombine.high %v3615_v2, %v3615_v2  ;;  %v3638_v39 = vrot.slane %v3616_v5, %v5615_v11  ;;  %v3743_v55 = vrot.slane %v3715_v43, %v5615_v11  ;;  %v3745_v24 = vcombine.high %v3729_v61, %v3729_v61 }
 0x17e   : > { %v4254_v27 = vcombine.low %v4245_v1, %v4252_v16  ;;  %v3846_v28 = vcombine.high %v3344_v20, %v3344_v20  ;;  %v3631_v29 = vrot.slane %v3615_v2, %v5615_v11  ;;  %v3746_v32 = vcombine.high %v3736_v4, %v3736_v4 }
 0x17f   : > { %v3645_v30 = vrot.slane %v3617_v22, %v5615_v11  ;;  %v4112_v17 = vcombine.low %v3624_v23, %v3638_v39  ;;  %v5075_v31 = vcombine.high %v3624_v23, %v3638_v39  ;;  %v3324_v12 = vadd.f32 %v6085_v25, %v2462_v54  ;;  %v3305_v23 = vpop.f32.mrf.mxu1 }
 0x180   : > { %v4268_v33 = vrot.slane %v4254_v27, %v5615_v11  ;;  %v3860_v34 = vrot.slane %v3846_v28, %v5615_v11  ;;  %v4133_v10 = vrot.slane %v5074_v0, %v5615_v11  ;;  %v4189_v37 = vrot.slane %v4161_v56, %v5615_v11 }
 0x181   : > { %v4140_v6 = vrot.slane %v4112_v17, %v5615_v11  ;;  %v4159_v35 = vcombine.low %v3631_v29, %v3645_v30  ;;  %v5076_v36 = vcombine.high %v3631_v29, %v3645_v30  ;;  %v4149_v38 = vrot.slane %v4141_v15, %v5615_v11 }
 0x182   : > { %v4269_v62 = vcombine.low %v4261_v8, %v4268_v33  ;;  %v4168_v63 = vrot.slane %v5075_v31, %v5615_v11  ;;  %v3875_v25 = vrot.slane %v3860_v34, %v5615_v11  ;;  %v4270_v41 = vcombine.low %v3746_v32, %v3729_v61 }
 0x183   : > { %v4142_v13 = vcombine.low %v4133_v10, %v4140_v6  ;;  %v4175_v9 = vrot.slane %v4159_v35, %v5615_v11  ;;  %v4182_v40 = vrot.slane %v5076_v36, %v5615_v11  ;;  %v4271_v44 = vcombine.low %v3743_v55, %v3745_v24  ;;  %v4545_v35 = vld [vmem:[%s5985_s15 + $0x2c] sm:$0x1] }
 0x184   : > { %v5118_v7 = vpack.c.bf16 %v4269_v62, %v4269_v62  ;;  %v3342_v14 = vadd.f32 %v5958_v18, %v3324_v12  ;;  %v4437_v46 = vrot.slane %v3875_v25, %v5615_v11  ;;  %v3853_v56 = vrot.slane %v3344_v20, %v5615_v11 }
 0x185   : > { %v4156_v26 = vrot.slane %v4142_v13, %v5615_v11  ;;  %v4190_v42 = vcombine.low %v4168_v63, %v4175_v9  ;;  %v4191_v45 = vcombine.low %v4182_v40, %v4189_v37  ;;  %v3747_v47 = vcombine.high %v3743_v55, %v3743_v55 }
 0x186   : > { %4543 = vst [vmem:[%s5985_s15 + $0x24] sm:$0xf] %v5118_v7  ;;  %v3748_v49 = vcombine.high %v3342_v14, %v3342_v14  ;;  %v3755_v21 = vrot.slane %v3342_v14, %v5615_v11  ;;  %v4444_v51 = vrot.slane %v4437_v46, %v5615_v11  ;;  %v4280_v52 = vrot.slane %v4270_v41, %v5615_v11 }
 0x187   : > { %v4157_v4 = vcombine.low %v4149_v38, %v4156_v26  ;;  %v4198_v58 = vrot.slane %v4190_v42, %v5615_v11  ;;  %v4205_v50 = vrot.slane %v4191_v45, %v5615_v11  ;;  %v2463_v0 = vadd.f32 %v2443_v48, %v5953_v19 }
 0x188   : > { %v3762_v57 = vrot.slane %v3748_v49, %v5615_v11  ;;  %v3763_v59 = vcombine.high %v3755_v21, %v3755_v21  ;;  %v5123_v61 = vpack.c.bf16 %v4444_v51, %v4444_v51  ;;  %v3771_v60 = vrot.slane %v3755_v21, %v5615_v11 }
 0x189   : > { %v4206_v43 = vcombine.low %v4198_v58, %v4205_v50  ;;  %v4287_v1 = vrot.slane %v4271_v44, %v5615_v11  ;;  %v3861_v2 = vcombine.high %v3853_v56, %v3853_v56  ;;  %v3325_v55 = vadd.f32 %v3305_v23, %v2463_v0 }
 0x18a   : > { %v3764_v5 = vcombine.high %v3762_v57, %v3762_v57  ;;  %v3785_v8 = vrot.slane %v3763_v59, %v5615_v11  ;;  %v4551_v16 = vsel %vm5980_vm3, %v5123_v61, %v4550_v53  ;;  %v3793_v20 = vcombine.high %v3771_v60, %v3771_v60 }
 0x18b   : > { %v5132_v15 = vpack.c.bf16 %v4206_v43, %v4157_v4  ;;  %v4272_v22 = vcombine.low %v3747_v47, %v3771_v60  ;;  %4552 = vst [vmem:[%s5985_s15 + $0x38] sm:$0x1] %v4551_v16  ;;  %v3882_v24 = vrot.slane %v3861_v2, %v5615_v11  ;;  %v3778_v27 = vrot.slane %v3762_v57, %v5615_v11 }
 0x18c   : > { %v3792_v39 = vrot.slane %v3764_v5, %v5615_v11  ;;  %v3795_v54 = vcombine.high %v3785_v8, %v3785_v8  ;;  %v4273_v19 = vcombine.low %v3785_v8, %v3793_v20  ;;  %v3343_v29 = vadd.f32 %v5958_v18, %v3325_v55 }
 0x18d   : > { %5139 = vst [vmem:[%s5985_s15 + $0x18] sm:$0xff] %v5132_v15   ;;  %v4302_v30 = vcombine.low %v4280_v52, %v4287_v1  ;;  %v4294_v17 = vrot.slane %v4272_v22, %v5615_v11  ;;  %v3868_v32 = vrot.slane %v3853_v56, %v5615_v11 }
 0x18e   : > { %v4325_v28 = vrot.slane %v3795_v54, %v5615_v11  ;;  %v4301_v31 = vrot.slane %v4273_v19, %v5615_v11  ;;  %v4333_v34 = vcombine.low %v3778_v27, %v3792_v39  ;;  %v3797_v12 = vcombine.high %v3343_v29, %v3343_v29 }
 0x18f   : > { %v5077_v6 = vcombine.high %v3778_v27, %v3792_v39  ;;  %v3804_v36 = vrot.slane %v3343_v29, %v5615_v11  ;;  %v4384_v37 = vcombine.low %v3868_v32, %v3882_v24  ;;  %v5080_v38 = vcombine.high %v3868_v32, %v3882_v24 }
 0x190   : > { %v4332_v33 = vrot.slane %v4325_v28, %v5615_v11  ;;  %v4303_v10 = vcombine.low %v4294_v17, %v4301_v31  ;;  %v3811_v62 = vrot.slane %v3797_v12, %v5615_v11  ;;  %v4310_v63 = vrot.slane %v4302_v30, %v5615_v11 }
 0x191   : > { %v3812_v9 = vcombine.high %v3804_v36, %v3804_v36  ;;  %v4343_v40 = vrot.slane %v4333_v34, %v5615_v11  ;;  %v4350_v7 = vrot.slane %v5077_v6, %v5615_v11  ;;  %v3820_v14 = vrot.slane %v3804_v36, %v5615_v11 }
 0x192   : > { %v5120_v18 = vpack.c.bf16 %v4332_v33, %v4332_v33  ;;  %v4317_v13 = vrot.slane %v4303_v10, %v5615_v11  ;;  %v3813_v41 = vcombine.high %v3811_v62, %v3811_v62  ;;  %v4406_v42 = vrot.slane %v4384_v37, %v5615_v11 }
 0x193   : > { %v3834_v26 = vrot.slane %v3812_v9, %v5615_v11  ;;  %v4413_v45 = vrot.slane %v5080_v38, %v5615_v11  ;;  %v3827_v46 = vrot.slane %v3811_v62, %v5615_v11  ;;  %v4365_v4 = vcombine.low %v4343_v40, %v4350_v7 }
 0x194   : > { %v4546_v25 = vsel %vm5980_vm3, %v5120_v18, %v4545_v35  ;;  %v4318_v44 = vcombine.low %v4310_v63, %v4317_v13  ;;  %v3841_v56 = vrot.slane %v3813_v41, %v5615_v11 }
 0x195   : > { %4547 = vst [vmem:[%s5985_s15 + $0x2c] sm:$0x1] %v4546_v25  ;;  %v4335_v47 = vcombine.low %v3820_v14, %v3834_v26  ;;  %v5078_v49 = vcombine.high %v3820_v14, %v3834_v26  ;;  %v4415_v51 = vcombine.low %v4406_v42, %v4413_v45  ;;  %v4373_v43 = vrot.slane %v4365_v4, %v5615_v11 }
 0x196   : > { %v5119_v3 = vpack.c.bf16 %v4318_v44, %v4318_v44  ;;  %v4382_v21 = vcombine.low %v3827_v46, %v3841_v56  ;;  %v5079_v48 = vcombine.high %v3827_v46, %v3841_v56 }
 0x197   : > { %v4357_v58 = vrot.slane %v4335_v47, %v5615_v11  ;;  %v4364_v50 = vrot.slane %v5078_v49, %v5615_v11  ;;  %v4429_v60 = vrot.slane %v4415_v51, %v5615_v11 }
 0x198   : > { %4544 = vst [vmem:[%s5985_s15 + $0x28] sm:$0xf] %v5119_v3  ;;  %v4392_v52 = vrot.slane %v4382_v21, %v5615_v11  ;;  %v4399_v53 = vrot.slane %v5079_v48, %v5615_v11 }
 0x199   : > { %v4366_v57 = vcombine.low %v4357_v58, %v4364_v50 }
 0x19a   : > { %v4414_v59 = vcombine.low %v4392_v52, %v4399_v53 }
 0x19b   : > { %v4380_v61 = vrot.slane %v4366_v57, %v5615_v11 }
 0x19c   : > { %v4422_v0 = vrot.slane %v4414_v59, %v5615_v11 }
 0x19d   : > { %v4381_v1 = vcombine.low %v4373_v43, %v4380_v61 }
 0x19e   : > { %v4430_v2 = vcombine.low %v4422_v0, %v4429_v60  ;;  %4559 = sbr.rel (!%p5569_p5) target bundleno = 483 (0x1e3), region = 40 }
 0x1a0   : > { %v5137_v5 = vpack.c.bf16 %v4430_v2, %v4381_v1 }
 0x1a2   : > { %5140 = vst [vmem:[%s5985_s15 + $0x30] sm:$0xff] %v5137_v5  }
 0x1a3   : > { %s6319_s10 = smov (!%p4562_p11, %s4561_s10), 5 }
 0x1a4   : > { %s5097_s14 = smul.u32 192, %s6319_s10 }
 0x1a5   : > { %s4572_s26 = smul.u32 3, %s6319_s10 }
 0x1a6   : > { %p5100_p12 = scmp.eq.s32.totalorder %s5097_s14, 0 }
 0x1a7   : > { %5373 = sdivrem.u32 (!%p5100_p12), %s4572_s26, 15 }
 0x1a8   : > { %4575 = sbr.rel (%p5100_p12) target bundleno = 483 (0x1e3), region = 44 }
 0x1b0   : > { %s6217_s17 = spop.drf %5373 }
 0x1b1   : > { %p5101_p13 = scmp.le.s32.totalorder %s6217_s17, 0 }
 0x1b2   : > { %s6303_s18 = smov (!%p5101_p13), %s6212_s28  ;;  %s6304_s7 = smov (!%p5101_p13), %s5985_s15 }
 0x1b3   : > { %4815 = sbr.rel (%p5101_p13) target bundleno = 458 (0x1ca), region = 122  ;;  %s6226_s29 = smov (!%p5101_p13), 0  }
 0x1b4   : > { %s6228_s5 = smov (!%p5101_p13), 0  }
 0x1b8 LB: >> { %v4593_v11 = vld [vmem:[%s5471_s7] sm:$0xf]  ;;  %v4595_v8 = vld [vmem:[%s5471_s7 + $0x4] sm:$0xf]  ;;  %v4597_v15 = vld [vmem:[%s5471_s7 + $0x8] sm:$0xf]  ;;  %s5479_s5 = sphi %s6228_s5, %s4587_s5   ;;  %s5475_s29 = sphi %s6226_s29, %s6305_s29   ;;  %s5471_s7 = sphi %s6304_s7, %s4628_s7   ;;  %s5467_s18 = sphi %s6303_s18, %s4629_s18  }
 0x1b9   : >> { %4594 = vst [vmem:[%s5467_s18] sm:$0xf] %v4593_v11  ;;  %4596 = vst [vmem:[%s5467_s18 + $0x4] sm:$0xf] %v4595_v8  ;;  %v4599_v16 = vld [vmem:[%s5471_s7 + $0xc] sm:$0xf]  ;;  %s4623_s6 = sadd.s32 1, %s5475_s29 }
 0x1ba   : >> { %4598 = vst [vmem:[%s5467_s18 + $0x8] sm:$0xf] %v4597_v15  ;;  %v4601_v20 = vld [vmem:[%s5471_s7 + $0x10] sm:$0xf]  ;;  %v4603_v22 = vld [vmem:[%s5471_s7 + $0x14] sm:$0xf]  ;;  %p4624_p0 = scmp.ge.s32.totalorder %s4623_s6, %s6217_s17 }
 0x1bb   : >> { %4600 = vst [vmem:[%s5467_s18 + $0xc] sm:$0xf] %v4599_v16  ;;  %4602 = vst [vmem:[%s5467_s18 + $0x10] sm:$0xf] %v4601_v20  ;;  %v4605_v23 = vld [vmem:[%s5471_s7 + $0x18] sm:$0xf] }
 0x1bc   : >> { %4604 = vst [vmem:[%s5467_s18 + $0x14] sm:$0xf] %v4603_v22  ;;  %v4607_v39 = vld [vmem:[%s5471_s7 + $0x1c] sm:$0xf]  ;;  %v4609_v54 = vld [vmem:[%s5471_s7 + $0x20] sm:$0xf] }
 0x1bd   : >> { %4606 = vst [vmem:[%s5467_s18 + $0x18] sm:$0xf] %v4605_v23  ;;  %4608 = vst [vmem:[%s5467_s18 + $0x1c] sm:$0xf] %v4607_v39  ;;  %v4611_v55 = vld [vmem:[%s5471_s7 + $0x24] sm:$0xf] }
 0x1be   : >> { %4610 = vst [vmem:[%s5467_s18 + $0x20] sm:$0xf] %v4609_v54  ;;  %v4613_v19 = vld [vmem:[%s5471_s7 + $0x28] sm:$0xf]  ;;  %v4615_v24 = vld [vmem:[%s5471_s7 + $0x2c] sm:$0xf] }
 0x1bf   : >> { %4612 = vst [vmem:[%s5467_s18 + $0x24] sm:$0xf] %v4611_v55  ;;  %4614 = vst [vmem:[%s5467_s18 + $0x28] sm:$0xf] %v4613_v19  ;;  %v4617_v27 = vld [vmem:[%s5471_s7 + $0x30] sm:$0xf] }
 0x1c0   : >> { %4616 = vst [vmem:[%s5467_s18 + $0x2c] sm:$0xf] %v4615_v24  ;;  %v4619_v28 = vld [vmem:[%s5471_s7 + $0x34] sm:$0xf]  ;;  %v4621_v29 = vld [vmem:[%s5471_s7 + $0x38] sm:$0xf] }
 0x1c1   : >> { %4618 = vst [vmem:[%s5467_s18 + $0x30] sm:$0xf] %v4617_v27  ;;  %4620 = vst [vmem:[%s5467_s18 + $0x34] sm:$0xf] %v4619_v28  ;;  %s6321_s6 = smov (%p4624_p0, %s4623_s6), 0  ;;  %s4587_s5 = sadd.s32 1, %s5479_s5  }
 0x1c2   : >> { %4622 = vst [vmem:[%s5467_s18 + $0x38] sm:$0xf] %v4621_v29  ;;  %s4626_s8 = smul.u32 60, %s6321_s6  ;;  %p4586_p1 = scmp.ge.s32.totalorder %s4587_s5, %s6217_s17 }
 0x1c3   : >> { %s6305_s29 = smov %s6321_s6 }
 0x1c4   : >> { %s4628_s7 = scalar_lea.vmem %s5985_s15, %s4626_s8 [#allocation2]   ;;  %s4629_s18 = scalar_lea.vmem %s6212_s28, %s4626_s8  }
 0x1c5   : > { %4589 = sbr.rel (!%p4586_p1) target bundleno = 440 (0x1b8), region = 128 }
 0x1ca PF: > { %5375 = sdivrem.u32 %s4572_s26, 15 }
 0x1cb   : > { %s5102_s9 = smul.u32 60, %s6217_s17 }
 0x1cd   : > { %s4634_s11 = scalar_lea.vmem %s5985_s15, %s5102_s9 [#allocation2]   ;;  %s4636_s12 = scalar_lea.vmem %s6212_s28, %s5102_s9  }
 0x1d3   : > { %s5376_s13 = spop.drf %5375 }
 0x1d4   : > { %p5104_p2 = scmp.le.s32.totalorder %s5376_s13, 0 }
 0x1d5   : > { %s5481_s14 = smov (!%p5104_p2), %s4636_s12   ;;  %s5485_s24 = smov (!%p5104_p2), %s4634_s11  }
 0x1d6   : > { %4829 = sbr.rel (%p5104_p2) target bundleno = 483 (0x1e3), region = 133  ;;  %s5489_s25 = smov (!%p5104_p2), 0  }
 0x1d7   : > { %s5493_s27 = smov (!%p5104_p2), 0  }
 0x1db LB: >> { %v4646_v30 = vld [vmem:[%s5487_s24] sm:$0xf]  ;;  %s4648_s10 = sadd.s32 1, %s5491_s25  ;;  %s4640_s27 = sadd.s32 1, %s5495_s27   ;;  %s5495_s27 = sphi %s5493_s27, %s4640_s27   ;;  %s5491_s25 = sphi %s5489_s25, %s5490_s25   ;;  %s5487_s24 = sphi %s5485_s24, %s4653_s24   ;;  %s5483_s14 = sphi %s5481_s14, %s4654_s14  }
 0x1dc   : >> { %4647 = vst [vmem:[%s5483_s14] sm:$0xf] %v4646_v30  ;;  %p4649_p3 = scmp.ge.s32.totalorder %s4648_s10, %s5376_s13  ;;  %p4639_p4 = scmp.ge.s32.totalorder %s4640_s27, %s5376_s13 }
 0x1de   : >> { %s6323_s10 = smov (%p4649_p3, %s4648_s10), 0  ;;  %4642 = sbr.rel (!%p4639_p4) target bundleno = 475 (0x1db), region = 139 }
 0x1df   : >> { %s5105_s15 = sshll.u32 %s6323_s10, 2  ;;  %s5490_s25 = smov %s6323_s10  }
 0x1e0   : >> { %s4653_s24 = scalar_lea.vmem %s4634_s11, %s5105_s15 [#allocation2]   ;;  %s4654_s14 = scalar_lea.vmem %s4636_s12, %s5105_s15  }
 0x1e3 PF: > { %s14_s21 = sadd.s32 1, %s5463_s21   ;;  %s6306_s15 = smov %s5443_s16 }
 0x1e4   : > { %p11_p5 = scmp.ge.s32.totalorder %s14_s21, 10   ;;  %s6307_s16 = smov %s5580_s30 }
 0x1e5   : > { %s6308_s17 = smov %s5455_s19  ;;  %s6309_s18 = smov %s5459_s20 }
 0x1e6   : > { %s6310_s19 = smov %s6313_s22  ;;  %s6311_s20 = smov %s6317_s23 }
 0x1e7   :  { %13 = sbr.rel (!%p11_p5) target bundleno = 4 (0x4), region = 150 }

// kernel: tpu_custom_call.1
= control target key start
LH: loop header
LB: loop body
LE: loop exit
PB: predicated region body
PF: predicated region fallthrough
CT: control target
= control target key end

     0   :  { %s5523_s15 = smov 0   ;;  %s5525_s16 = smov 0   ;;  %s6295_s0 = inlined_call_operand.vmem [shape: bf16[2,17,18,32], index: 0, kind: input, shape index: {}]   ;;  %s6296_s1 = inlined_call_operand.vmem [shape: bf16[2,17,18,32], index: 1, kind: input, shape index: {}]   ;;  %s6297_s2 = inlined_call_operand.vmem [shape: bf16[4,32,128], index: 2, kind: input, shape index: {}]   ;;  %s6298_s3 = inlined_call_operand.vmem [shape: f32[1,128], index: 3, kind: input, shape index: {}]   ;;  %s6299_s4 = inlined_call_operand.vmem [shape: bf16[2,17,17,128], index: 4, kind: output, shape index: {}]  }
   0x1   :  { %s5527_s17 = smov 0   ;;  %s5529_s18 = smov 0  }
   0x2   :  { %s5531_s19 = smov 0   ;;  %s5533_s20 = smov 0  }
   0x3   :  { %s5535_s21 = smov 0  }
   0x4 LB: > { %s23_s22 = sadd.s32 1, %s5455_s19  ;;  %s26_s23 = sadd.s32 1, %s5459_s20  ;;  %s5463_s21 = sphi %s5535_s21, %s14_s21   ;;  %s5459_s20 = sphi %s5533_s20, %s6311_s20   ;;  %s5455_s19 = sphi %s5531_s19, %s6310_s19   ;;  %s5451_s18 = sphi %s5529_s18, %s6309_s18   ;;  %s5447_s17 = sphi %s5527_s17, %s6308_s17   ;;  %s5443_s16 = sphi %s5525_s16, %s6307_s16   ;;  %s5439_s15 = sphi %s5523_s15, %s6306_s15  }
   0x5   : > { %p24_p0 = scmp.ge.s32.totalorder %s23_s22, 4  ;;  %s4876_s24 = sadd.s32 4294967295, %s5463_s21  }
   0x6   : > { %p143_p1 = scmp.ne.s32.totalorder %s5443_s16, %s5439_s15  ;;  %p144_p2 = scmp.eq.s32.totalorder %s4876_s24, 7 }
   0x7   : > { %s6313_s22 = smov (%p24_p0, %s23_s22), 0  ;;  %s6315_s23 = smov (!%p24_p0, %s26_s23), %s5459_s20 }
   0x8   : > { %s129_s25 = ssub.s32 %s5455_s19, %s6313_s22  ;;  %p28_p3 = scmp.ge.s32.totalorder %s6315_s23, 2 }
   0x9   : > { %p4880_p4 = scmp.ge.s32.totalorder %s5463_s21, 1  ;;  %p5569_p5 = por %p144_p2, %p143_p1 }
   0xa   : > { %p222_p6 = scmp.lt.s32.totalorder %s5463_s21, 9  ;;  %s6317_s23 = smov (%p28_p3, %s6315_s23), 0 }
   0xb   : > { %s128_s27 = ssub.s32 %s5459_s20, %s6317_s23  ;;  %s133_s29 = sadd.s32 1, %s5443_s16 }
   0xc   : > { %p223_p7 = pnand %p4880_p4, %p222_p6  ;;  %s130_s28 = sor.u32 %s129_s25, %s128_s27 }
   0xd   : > { %p131_p8 = scmp.eq.s32.totalorder %s130_s28, 0  ;;  %s5586_s7 = smul.u32 (!%p223_p7), 5, %s5447_s17 }
   0xe   : > { %226 = sbr.rel (%p223_p7) target bundleno = 483 (0x1e3), region = 36  ;;  %p278_p9 = scmp.lt.s32.totalorder (!%p223_p7), %s5451_s18, 1 }
   0xf   : > { %s5580_s30 = scalar_select %p131_p8, %s5443_s16, %s133_s29  }
  0x10   : > { %p280_p10 = scmp.lt.s32.totalorder (!%p223_p7), %s5586_s7, 16 }
  0x13   : > { %v5365_v0 = vld [vmem:[%s6297_s2 + $0x18] sm:$0xff]   ;;  %v362_v1 = vlaneseq  ;;  %v5366_v2 = vld [vmem:[%s6297_s2 + $0x8] sm:$0xff]   ;;  %v5367_v3 = vld [vmem:[%s6297_s2 + $0x10] sm:$0xff]   ;;  %s279_s14 = scalar_select %p278_p9, %s5451_s18, 1  ;;  %v5497_v7 = vmov 1966171168  }
  0x14   : > { %5173 = vmatprep.subr.bf16.mxu0 %v5365_v0  ;;  %5189 = vmatprep.subr.bf16.mxu1 %v5366_v2  ;;  %v5368_v4 = vld [vmem:[%s6297_s2] sm:$0xff]   ;;  %s281_s24 = scalar_select %p280_p10, %s5586_s7, 16  ;;  %v5604_v6 = vld [vmem:[%s6297_s2 + $0x28] sm:$0xff]   ;;  %v360_v8 = vunpack.c.l.s4 %v5497_v7  ;;  %v5609_v9 = vld [vmem:[%s6297_s2 + $0x38] sm:$0xff]   ;;  %vm1083_vm0 = vcmask 261120   ;;  %vm4527_vm1 = vcmask 1040384  }
  0x15   : > { %5174 = vmatpush3.bf16.msra.mxu0 %v5365_v0  ;;  %5190 = vmatpush3.bf16.msra.mxu1 %v5366_v2  ;;  %v363_v5 = vshrl.u32 %v362_v1, 7  ;;  %s5239_s28 = smul.u32 51, %s279_s14  ;;  %vm4528_vm2 = vsmask.f32 256  ;;  %s4561_s10 = ssub.s32 (%p5569_p5), 17, %s5586_s7 }
  0x16   : > { %5175 = vmatprep.subr.bf16.mxu0 %v5367_v3  ;;  %5191 = vmatprep.subr.bf16.mxu1 %v5368_v4  ;;  %s5238_s6 = smul.u32 3, %s281_s24  ;;  %v361_v10 = vunpack.c.0.s8 %v360_v8  ;;  %vm5980_vm3 = vmand %vm4527_vm1, %vm4528_vm2  ;;  %p4562_p11 = scmp.lt.s32.totalorder (%p5569_p5), %s4561_s10, 5 }
  0x17   : > { %s5242_s11 = smul.u32 (%p5569_p5), 15, %s5447_s17 }
  0x18   : > { %s5611_s8 = sadd.s32 %s5239_s28, %s5238_s6  ;;  %v5615_v11 = vsub.s32 %v361_v10, %v363_v5 }
  0x19   : > { %5176 = vmatpush3.bf16.msra.mxu0 %v5367_v3  ;;  %5192 = vmatpush3.bf16.msra.mxu1 %v5368_v4  ;;  %s4881_s9 = sshll.u32 %s5611_s8, 2  ;;  %s269_s8 = sand.u32 1, %s5439_s15  }
  0x1a   : > { %5205 = vmatprep.subr.bf16.mxu0 %v5604_v6  ;;  %5221 = vmatprep.subr.bf16.mxu1 %v5609_v9  ;;  %s5623_s12 = scalar_lea.vmem %s6295_s0, %s4881_s9  ;;  %s5759_s29 = scalar_lea.vmem %s6296_s1, %s4881_s9 }
  0x1b   : > { %v4883_v12 = vld.sshfl [vmem:[%s5623_s12] sm:$0x33 pattern:$0x75316420]  ;;  %s5964_s9 = smul.u32 60, %s269_s8 }
  0x1c   : > { %v4884_v13 = vld.sshfl [vmem:[%s5623_s12 + $0x4] sm:$0x33 pattern:$0x75316420]  ;;  %v358_v14 = vcombine.high %v4883_v12, %v4883_v12  ;;  %v365_v15 = vrot.slane %v4883_v12, %v5615_v11 }
  0x1d   : > { %v382_v16 = vcombine.high %v4884_v13, %v4884_v13  ;;  %v389_v17 = vrot.slane %v4884_v13, %v5615_v11  ;;  %v4885_v18 = vld.sshfl [vmem:[%s5623_s12 + $0x8] sm:$0x1 pattern:$0x75316420]  ;;  %s5985_s15 = scalar_lea.vmem [#allocation2], %s5964_s9  }
  0x1e   : > { %v372_v19 = vrot.slane %v358_v14, %v5615_v11  ;;  %v373_v20 = vcombine.high %v365_v15, %v365_v15  ;;  %v5632_v21 = vrot.slane %v4885_v18, %v5615_v11  ;;  %v662_v22 = vunpack.i.h.s16 %v365_v15  ;;  %v4886_v23 = vld.sshfl [vmem:[%s5623_s12 + $0xc] sm:$0x33 pattern:$0x75316420] }
  0x1f   : > { %v396_v24 = vrot.slane %v382_v16, %v5615_v11  ;;  %v397_v25 = vcombine.high %v389_v17, %v389_v17  ;;  %v670_v26 = vunpack.i.h.s16 %v389_v17  ;;  %v420_v27 = vcombine.high %v4886_v23, %v4886_v23  ;;  %v4887_v52 = vld.sshfl [vmem:[%s5623_s12 + $0x10] sm:$0x33 pattern:$0x75316420] }
  0x20   : > { %v1225_v28 = vcombine.low %v365_v15, %v372_v19  ;;  %v4954_v29 = vcombine.high %v365_v15, %v372_v19  ;;  %v374_v30 = vcombine.high %v372_v19, %v372_v19  ;;  %v664_v31 = vunpack.i.h.s16 %v372_v19 }
  0x21   : > { %v1227_v32 = vcombine.low %v389_v17, %v396_v24  ;;  %v4955_v33 = vcombine.high %v389_v17, %v396_v24  ;;  %v398_v34 = vcombine.high %v396_v24, %v396_v24  ;;  %v666_v35 = vunpack.i.h.s16 %v373_v20 }
  0x22   : > { %v1235_v36 = vrot.slane %v1225_v28, %v5615_v11  ;;  %v1242_v37 = vrot.slane %v4954_v29, %v5615_v11  ;;  %v668_v38 = vunpack.i.h.s16 %v374_v30  ;;  %v672_v39 = vunpack.i.h.s16 %v396_v24 }
  0x23   : > { %v1249_v40 = vrot.slane %v1227_v32, %v5615_v11  ;;  %v1256_v41 = vrot.slane %v4955_v33, %v5615_v11  ;;  %v674_v42 = vunpack.i.h.s16 %v397_v25  ;;  %v676_v43 = vunpack.i.h.s16 %v398_v34 }
  0x24   : > { %v1257_v44 = vcombine.low %v1235_v36, %v1242_v37  ;;  %v4902_v45 = vpack.i.b16 %v372_v19, %v662_v22  ;;  %v4903_v46 = vpack.i.b16 %v373_v20, %v664_v31  ;;  %v4904_v47 = vpack.i.b16 %v374_v30, %v666_v35  ;;  %v4888_v37 = vld.sshfl [vmem:[%s5623_s12 + $0x14] sm:$0x1 pattern:$0x75316420] }
  0x25   : > { %v1258_v48 = vcombine.low %v1249_v40, %v1256_v41  ;;  %v4905_v49 = vpack.i.b16 %v389_v17, %v668_v38  ;;  %v4906_v50 = vpack.i.b16 %v396_v24, %v670_v26  ;;  %v4907_v51 = vpack.i.b16 %v397_v25, %v672_v39 }
  0x26   : > { %v1265_v53 = vrot.slane %v1257_v44, %v5615_v11  ;;  %v4908_v54 = vpack.i.b16 %v398_v34, %v674_v42  ;;  %v4909_v55 = vpack.i.b16 %v5632_v21, %v676_v43  ;;  %v803_v56 = vcombine.low %v4902_v45, %v4903_v46  ;;  %v4889_v42 = vld.sshfl [vmem:[%s5623_s12 + $0x18] sm:$0x33 pattern:$0x75316420] }
  0x27   : > { %v1272_v57 = vrot.slane %v1258_v48, %v5615_v11  ;;  %v804_v58 = vcombine.low %v4904_v47, %v4905_v49  ;;  %v805_v59 = vcombine.low %v4906_v50, %v4907_v51  ;;  %v427_v60 = vrot.slane %v4886_v23, %v5615_v11  ;;  %v4890_v47 = vld.sshfl [vmem:[%s5623_s12 + $0x1c] sm:$0x33 pattern:$0x75316420] }
  0x28   : > { %v806_v61 = vcombine.low %v4908_v54, %v4909_v55  ;;  %v813_v62 = vrot.slane %v803_v56, %v5615_v11  ;;  %v434_v63 = vrot.slane %v420_v27, %v5615_v11  ;;  %v444_v0 = vcombine.high %v4887_v52, %v4887_v52 }
  0x29   : > { %v1273_v1 = vcombine.low %v1265_v53, %v1272_v57  ;;  %v820_v2 = vrot.slane %v804_v58, %v5615_v11  ;;  %v827_v3 = vrot.slane %v805_v59, %v5615_v11  ;;  %v435_v4 = vcombine.high %v427_v60, %v427_v60 }
  0x2a   : > { %v834_v5 = vrot.slane %v806_v61, %v5615_v11  ;;  %v436_v7 = vcombine.high %v434_v63, %v434_v63  ;;  %v451_v8 = vrot.slane %v4887_v52, %v5615_v11  ;;  %v458_v10 = vrot.slane %v444_v0, %v5615_v11 }
  0x2b   : > { %5193 = vmatprep.mubr.msk.bf16.mxu1 %vm1083_vm0, %v1273_v1  ;;  %v835_v12 = vcombine.low %v813_v62, %v820_v2  ;;  %v679_v13 = vunpack.i.h.s16 %v427_v60  ;;  %v681_v14 = vunpack.i.h.s16 %v434_v63  ;;  %v683_v15 = vunpack.i.h.s16 %v435_v4 }
  0x2c   : > { %v836_v16 = vcombine.low %v827_v3, %v834_v5  ;;  %v459_v17 = vcombine.high %v451_v8, %v451_v8  ;;  %v5653_v18 = vcombine.high %v458_v10, %v458_v10  ;;  %v685_v19 = vunpack.i.h.s16 %v436_v7 }
  0x2d   : > { %v843_v20 = vrot.slane %v835_v12, %v5615_v11  ;;  %v687_v22 = vunpack.i.h.s16 %v451_v8  ;;  %v689_v23 = vunpack.i.h.s16 %v458_v10  ;;  %v4936_v24 = vpack.i.b16 %v427_v60, %v5632_v21 }
  0x2e   : > { %v850_v25 = vrot.slane %v836_v16, %v5615_v11  ;;  %v691_v26 = vunpack.i.h.s16 %v459_v17  ;;  %v4937_v27 = vpack.i.b16 %v434_v63, %v679_v13  ;;  %v4938_v28 = vpack.i.b16 %v435_v4, %v681_v14 }
  0x2f   : > { %v4939_v29 = vpack.i.b16 %v436_v7, %v683_v15  ;;  %v4940_v30 = vpack.i.b16 %v451_v8, %v685_v19  ;;  %v4941_v31 = vpack.i.b16 %v458_v10, %v687_v22  ;;  %v4942_v32 = vpack.i.b16 %v459_v17, %v689_v23  ;;  %v5372_v19 = vld [vmem:[%s6297_s2 + $0x30] sm:$0xff]  }
  0x30   : > { %v851_v33 = vcombine.low %v843_v20, %v850_v25  ;;  %v4943_v34 = vpack.i.b16 %v5653_v18, %v691_v26  ;;  %v1274_v35 = vcombine.low %v4936_v24, %v4937_v27  ;;  %v750_v36 = vunpack.i.h.s16 %v5632_v21 }
  0x31   : > { %v1275_v38 = vcombine.low %v4938_v28, %v4939_v29  ;;  %v1276_v39 = vcombine.low %v4940_v30, %v4941_v31  ;;  %v4926_v40 = vcombine.high %v427_v60, %v434_v63  ;;  %v854_v41 = vcombine.low %v451_v8, %v458_v10  ;;  %v5371_v28 = vld [vmem:[%s6297_s2 + $0x20] sm:$0xff]  }
  0x32   : > { %5177 = vmatprep.mubr.msk.bf16.mxu0 %vm1083_vm0, %v851_v33  ;;  %v1277_v43 = vcombine.low %v4942_v32, %v4943_v34  ;;  %v1284_v44 = vrot.slane %v1274_v35, %v5615_v11  ;;  %v768_v45 = vpack.i.b16 %v679_v13, %v750_v36  ;;  %v4927_v46 = vcombine.high %v451_v8, %v458_v10 }
  0x33   : > { %v1291_v48 = vrot.slane %v1275_v38, %v5615_v11  ;;  %v1298_v49 = vrot.slane %v1276_v39, %v5615_v11  ;;  %v869_v21 = vrot.slane %v4926_v40, %v5615_v11  ;;  %v876_v50 = vrot.slane %v854_v41, %v5615_v11  ;;  %v4892_v41 = vld.sshfl [vmem:[%s5623_s12 + $0x24] sm:$0x33 pattern:$0x75316420] }
  0x34   : > { %v1305_v51 = vrot.slane %v1277_v43, %v5615_v11  ;;  %v852_v52 = vcombine.low %v768_v45, %v434_v63  ;;  %v883_v53 = vrot.slane %v4927_v46, %v5615_v11  ;;  %v5672_v54 = vrot.slane %v4888_v37, %v5615_v11  ;;  %v4891_v37 = vld.sshfl [vmem:[%s5623_s12 + $0x20] sm:$0x1 pattern:$0x75316420] }
  0x35   : > { %v1306_v55 = vcombine.low %v1284_v44, %v1291_v48  ;;  %v482_v56 = vcombine.high %v4889_v42, %v4889_v42  ;;  %v489_v57 = vrot.slane %v4889_v42, %v5615_v11  ;;  %v506_v58 = vcombine.high %v4890_v47, %v4890_v47  ;;  %v4893_v46 = vld.sshfl [vmem:[%s5623_s12 + $0x28] sm:$0x33 pattern:$0x75316420] }
  0x36   : > { %v1307_v59 = vcombine.low %v1298_v49, %v1305_v51  ;;  %v862_v60 = vrot.slane %v852_v52, %v5615_v11  ;;  %v885_v61 = vcombine.low %v876_v50, %v883_v53  ;;  %v513_v62 = vrot.slane %v4890_v47, %v5615_v11 }
  0x37   : > { %v1314_v0 = vrot.slane %v1306_v55, %v5615_v11  ;;  %v496_v63 = vrot.slane %v482_v56, %v5615_v11  ;;  %v497_v1 = vcombine.high %v489_v57, %v489_v57  ;;  %v520_v2 = vrot.slane %v506_v58, %v5615_v11 }
  0x38   : > { %v1321_v3 = vrot.slane %v1307_v59, %v5615_v11  ;;  %v884_v4 = vcombine.low %v862_v60, %v869_v21  ;;  %v899_v5 = vrot.slane %v885_v61, %v5615_v11  ;;  %v521_v7 = vcombine.high %v513_v62, %v513_v62 }
  0x39   : > { %v498_v8 = vcombine.high %v496_v63, %v496_v63  ;;  %v693_v10 = vunpack.i.h.s16 %v5653_v18  ;;  %v1324_v12 = vcombine.low %v496_v63, %v497_v1  ;;  %v5683_v13 = vcombine.high %v520_v2, %v520_v2 }
  0x3a   : > { %v1322_v14 = vcombine.low %v1314_v0, %v1321_v3  ;;  %v892_v15 = vrot.slane %v884_v4, %v5615_v11  ;;  %v1326_v16 = vcombine.low %v520_v2, %v521_v7  ;;  %v696_v17 = vunpack.i.h.s16 %v489_v57 }
  0x3b   : > { %v4944_v20 = vpack.i.b16 %v5672_v54, %v693_v10  ;;  %v1325_v22 = vcombine.low %v498_v8, %v513_v62  ;;  %v1340_v23 = vrot.slane %v1324_v12, %v5615_v11  ;;  %v698_v24 = vunpack.i.h.s16 %v496_v63 }
  0x3c   : > { %5194 = vmatmul.mubr.msk.bf16.vlgmr.msra.gmra.mxu1 %vm1083_vm0, %v1322_v14  ;;  %v900_v18 = vcombine.low %v892_v15, %v899_v5  ;;  %v1354_v25 = vrot.slane %v1326_v16, %v5615_v11  ;;  %v700_v26 = vunpack.i.h.s16 %v497_v1  ;;  %v702_v27 = vunpack.i.h.s16 %v498_v8 }
  0x3d   : > { %5222 = vmatpush3.bf16.msra.mxu1 %v5609_v9  ;;  %v1323_v29 = vcombine.low %v4944_v20, %v489_v57  ;;  %v1347_v30 = vrot.slane %v1325_v22, %v5615_v11  ;;  %v704_v31 = vunpack.i.h.s16 %v513_v62  ;;  %v706_v32 = vunpack.i.h.s16 %v520_v2 }
  0x3e   : > { %5178 = vmatmul.mubr.msk.bf16.vlgmr.msra.gmra.mxu0 %vm1083_vm0, %v900_v18  ;;  %v708_v33 = vunpack.i.h.s16 %v521_v7  ;;  %v4910_v34 = vpack.i.b16 %v496_v63, %v696_v17  ;;  %v4911_v35 = vpack.i.b16 %v497_v1, %v698_v24  ;;  %v4912_v36 = vpack.i.b16 %v498_v8, %v700_v26  ;;  %5223 = vmatprep.subr.bf16.mxu1 %v5372_v19 }
  0x3f   : > { %5206 = vmatpush3.bf16.msra.mxu0 %v5604_v6  ;;  %v1333_v38 = vrot.slane %v1323_v29, %v5615_v11  ;;  %v1356_v9 = vcombine.low %v1347_v30, %v1354_v25  ;;  %v4913_v39 = vpack.i.b16 %v513_v62, %v702_v27  ;;  %v4914_v40 = vpack.i.b16 %v520_v2, %v704_v31  ;;  %v4894_v30 = vld.sshfl [vmem:[%s5623_s12 + $0x2c] sm:$0x1 pattern:$0x75316420] }
  0x40   : > { %v4915_v42 = vpack.i.b16 %v521_v7, %v706_v32  ;;  %v4916_v43 = vpack.i.b16 %v5683_v13, %v708_v33  ;;  %v901_v44 = vcombine.low %v5672_v54, %v4910_v34  ;;  %v902_v45 = vcombine.low %v4911_v35, %v4912_v36  ;;  %5207 = vmatprep.subr.bf16.mxu0 %v5371_v28  ;;  %v4895_v35 = vld.sshfl [vmem:[%s5623_s12 + $0x30] sm:$0x33 pattern:$0x75316420] }
  0x41   : > { %v1355_v47 = vcombine.low %v1333_v38, %v1340_v23  ;;  %v1370_v48 = vrot.slane %v1356_v9, %v5615_v11  ;;  %v903_v49 = vcombine.low %v4913_v39, %v4914_v40  ;;  %v536_v6 = vrot.slane %v4891_v37, %v5615_v11  ;;  %5224 = vmatpush3.bf16.msra.mxu1 %v5372_v19  ;;  %v4896_v9 = vld.sshfl [vmem:[%s5623_s12 + $0x34] sm:$0x33 pattern:$0x75316420] }
  0x42   : > { %v904_v21 = vcombine.low %v4915_v42, %v4916_v43  ;;  %v911_v50 = vrot.slane %v901_v44, %v5615_v11  ;;  %v918_v51 = vrot.slane %v902_v45, %v5615_v11  ;;  %v544_v52 = vcombine.high %v4892_v41, %v4892_v41 }
  0x43   : > { %v1363_v53 = vrot.slane %v1355_v47, %v5615_v11  ;;  %v925_v54 = vrot.slane %v903_v49, %v5615_v11  ;;  %v551_v55 = vrot.slane %v4892_v41, %v5615_v11  ;;  %v568_v56 = vcombine.high %v4893_v46, %v4893_v46  ;;  %5208 = vmatpush3.bf16.msra.mxu0 %v5371_v28 }
  0x44   : > { %v932_v57 = vrot.slane %v904_v21, %v5615_v11  ;;  %v933_v58 = vcombine.low %v911_v50, %v918_v51  ;;  %v558_v59 = vrot.slane %v544_v52, %v5615_v11  ;;  %v575_v60 = vrot.slane %v4893_v46, %v5615_v11 }
  0x45   : > { %v1371_v61 = vcombine.low %v1363_v53, %v1370_v48  ;;  %v559_v62 = vcombine.high %v551_v55, %v551_v55  ;;  %v582_v0 = vrot.slane %v568_v56, %v5615_v11  ;;  %v713_v63 = vunpack.i.h.s16 %v551_v55 }
  0x46   : > { %v934_v1 = vcombine.low %v925_v54, %v932_v57  ;;  %v941_v2 = vrot.slane %v933_v58, %v5615_v11  ;;  %v560_v3 = vcombine.high %v558_v59, %v558_v59  ;;  %v583_v4 = vcombine.high %v575_v60, %v575_v60 }
  0x47   : > { %5197 = vmatprep.mubr.msk.bf16.mxu1 %vm1083_vm0, %v1371_v61  ;;  %v715_v5 = vunpack.i.h.s16 %v558_v59  ;;  %v717_v7 = vunpack.i.h.s16 %v559_v62  ;;  %v721_v8 = vunpack.i.h.s16 %v575_v60  ;;  %v723_v10 = vunpack.i.h.s16 %v582_v0 }
  0x48   : > { %v948_v12 = vrot.slane %v934_v1, %v5615_v11  ;;  %v719_v14 = vunpack.i.h.s16 %v560_v3  ;;  %v4945_v15 = vpack.i.b16 %v551_v55, %v536_v6  ;;  %v4946_v16 = vpack.i.b16 %v558_v59, %v713_v63 }
  0x49   : > { %v4947_v17 = vpack.i.b16 %v559_v62, %v715_v5  ;;  %v4948_v19 = vpack.i.b16 %v560_v3, %v717_v7  ;;  %v4950_v20 = vpack.i.b16 %v582_v0, %v721_v8  ;;  %v4951_v22 = vpack.i.b16 %v583_v4, %v723_v10 }
  0x4a   : > { %v949_v23 = vcombine.low %v941_v2, %v948_v12  ;;  %v4949_v24 = vpack.i.b16 %v575_v60, %v719_v14  ;;  %v1372_v18 = vcombine.low %v5683_v13, %v4945_v15  ;;  %v710_v25 = vunpack.i.h.s16 %v5683_v13 }
  0x4b   : > { %v1373_v26 = vcombine.low %v4946_v16, %v4947_v17  ;;  %v1375_v27 = vcombine.low %v4950_v20, %v4951_v22  ;;  %v752_v28 = vunpack.i.h.s16 %v536_v6  ;;  %v951_v29 = vcombine.low %v558_v59, %v559_v62 }
  0x4c   : > { %5181 = vmatprep.mubr.msk.bf16.mxu0 %vm1083_vm0, %v949_v23  ;;  %v1374_v31 = vcombine.low %v4948_v19, %v4949_v24  ;;  %v1382_v32 = vrot.slane %v1372_v18, %v5615_v11  ;;  %v4917_v33 = vpack.i.b16 %v536_v6, %v710_v25  ;;  %v952_v34 = vcombine.low %v560_v3, %v575_v60 }
  0x4d   : > { %v1389_v36 = vrot.slane %v1373_v26, %v5615_v11  ;;  %v1403_v37 = vrot.slane %v1375_v27, %v5615_v11  ;;  %v785_v38 = vpack.i.b16 %v713_v63, %v752_v28  ;;  %v953_v13 = vcombine.low %v582_v0, %v583_v4  ;;  %v4897_v26 = vld.sshfl [vmem:[%s5623_s12 + $0x38] sm:$0x1 pattern:$0x75316420]  ;;  %s5241_s12 = smul.u32 (%p5569_p5), 51, %s5451_s18 }
  0x4e   : > { %v1396_v39 = vrot.slane %v1374_v31, %v5615_v11  ;;  %v967_v40 = vrot.slane %v951_v29, %v5615_v11  ;;  %v974_v41 = vrot.slane %v952_v34, %v5615_v11  ;;  %v5732_v42 = vcombine.high %v582_v0, %v582_v0 }
  0x4f   : > { %v1404_v43 = vcombine.low %v1382_v32, %v1389_v36  ;;  %v950_v44 = vcombine.low %v4917_v33, %v785_v38  ;;  %v981_v45 = vrot.slane %v953_v13, %v5615_v11  ;;  %v598_v46 = vrot.slane %v4894_v30, %v5615_v11  ;;  %s4569_s13 = sadd.s32 (%p5569_p5), %s5242_s11, %s5241_s12 }
  0x50   : > { %v1405_v47 = vcombine.low %v1396_v39, %v1403_v37  ;;  %v606_v48 = vcombine.high %v4895_v35, %v4895_v35  ;;  %v613_v49 = vrot.slane %v4895_v35, %v5615_v11  ;;  %v630_v6 = vcombine.high %v4896_v9, %v4896_v9  ;;  %s5099_s24 = sshll.u32 (%p5569_p5), %s4569_s13, 2 }
  0x51   : > { %v1412_v21 = vrot.slane %v1404_v43, %v5615_v11  ;;  %v960_v50 = vrot.slane %v950_v44, %v5615_v11  ;;  %v983_v51 = vcombine.low %v974_v41, %v981_v45  ;;  %v637_v52 = vrot.slane %v4896_v9, %v5615_v11  ;;  %v5015_v41 = vld.sshfl [vmem:[%s5759_s29] sm:$0x33 pattern:$0x75316420]  ;;  %s6212_s28 = scalar_lea.vmem (%p5569_p5), %s6299_s4, %s5099_s24  }
  0x52   : > { %v1419_v53 = vrot.slane %v1405_v47, %v5615_v11  ;;  %v620_v54 = vrot.slane %v606_v48, %v5615_v11  ;;  %v644_v55 = vrot.slane %v630_v6, %v5615_v11  ;;  %v725_v56 = vunpack.i.h.s16 %v583_v4 }
  0x53   : > { %v982_v57 = vcombine.low %v960_v50, %v967_v40  ;;  %v997_v58 = vrot.slane %v983_v51, %v5615_v11  ;;  %v727_v59 = vunpack.i.h.s16 %v5732_v42  ;;  %v621_v60 = vcombine.high %v613_v49, %v613_v49  ;;  %v5016_v51 = vld.sshfl [vmem:[%s5759_s29 + $0x4] sm:$0x33 pattern:$0x75316420] }
  0x54   : > { %v1420_v61 = vcombine.low %v1412_v21, %v1419_v53  ;;  %v4952_v62 = vpack.i.b16 %v5732_v42, %v725_v56  ;;  %v1422_v0 = vcombine.low %v613_v49, %v620_v54  ;;  %v4956_v63 = vcombine.high %v613_v49, %v620_v54  ;;  %v5017_v56 = vld.sshfl [vmem:[%s5759_s29 + $0x8] sm:$0x1 pattern:$0x75316420] }
  0x55   : > { %v990_v1 = vrot.slane %v982_v57, %v5615_v11  ;;  %v4953_v2 = vpack.i.b16 %v598_v46, %v727_v59  ;;  %v1424_v3 = vcombine.low %v637_v52, %v644_v55  ;;  %v622_v5 = vcombine.high %v620_v54, %v620_v54 }
  0x56   : > { %5198 = vmatmul.mubr.msk.bf16.gmra.mxu1 %vm1083_vm0, %v1420_v61  ;;  %v1438_v4 = vrot.slane %v1422_v0, %v5615_v11  ;;  %v1445_v7 = vrot.slane %v4956_v63, %v5615_v11  ;;  %v645_v8 = vcombine.high %v637_v52, %v637_v52  ;;  %v730_v10 = vunpack.i.h.s16 %v613_v49 }
  0x57   : > { %v998_v12 = vcombine.low %v990_v1, %v997_v58  ;;  %v1421_v14 = vcombine.low %v4952_v62, %v4953_v2  ;;  %v1452_v15 = vrot.slane %v1424_v3, %v5615_v11  ;;  %v732_v16 = vunpack.i.h.s16 %v620_v54 }
  0x58   : > { %v734_v17 = vunpack.i.h.s16 %v621_v60  ;;  %v736_v19 = vunpack.i.h.s16 %v622_v5  ;;  %v738_v20 = vunpack.i.h.s16 %v637_v52  ;;  %v740_v22 = vunpack.i.h.s16 %v644_v55 }
  0x59   : > { %5182 = vmatmul.mubr.msk.bf16.gmra.mxu0 %vm1083_vm0, %v998_v12  ;;  %v1431_v23 = vrot.slane %v1421_v14, %v5615_v11  ;;  %v1454_v24 = vcombine.low %v1445_v7, %v1452_v15  ;;  %v4918_v18 = vpack.i.b16 %v620_v54, %v730_v10  ;;  %v4919_v25 = vpack.i.b16 %v621_v60, %v732_v16 }
  0x5a   : > { %v4920_v27 = vpack.i.b16 %v622_v5, %v734_v17  ;;  %v4921_v28 = vpack.i.b16 %v637_v52, %v736_v19  ;;  %v4922_v29 = vpack.i.b16 %v644_v55, %v738_v20  ;;  %v4923_v30 = vpack.i.b16 %v645_v8, %v740_v22  ;;  %v5018_v5 = vld.sshfl [vmem:[%s5759_s29 + $0xc] sm:$0x33 pattern:$0x75316420] }
  0x5b   : > { %v1453_v31 = vcombine.low %v1431_v23, %v1438_v4  ;;  %v1468_v32 = vrot.slane %v1454_v24, %v5615_v11  ;;  %v999_v33 = vcombine.low %v5732_v42, %v598_v46  ;;  %v1000_v34 = vcombine.low %v4918_v18, %v4919_v25 }
  0x5c   : > { %v1001_v35 = vcombine.low %v4920_v27, %v4921_v28  ;;  %v1002_v36 = vcombine.low %v4922_v29, %v4923_v30  ;;  %v660_v37 = vrot.slane %v4897_v26, %v5615_v11  ;;  %v4957_v38 = vcombine.high %v637_v52, %v644_v55 }
  0x5d   : > { %v1461_v13 = vrot.slane %v1453_v31, %v5615_v11  ;;  %v1009_v9 = vrot.slane %v999_v33, %v5615_v11  ;;  %v1016_v39 = vrot.slane %v1000_v34, %v5615_v11  ;;  %v646_v40 = vcombine.high %v644_v55, %v644_v55 }
  0x5e   : > { %v1023_v43 = vrot.slane %v1001_v35, %v5615_v11  ;;  %v1030_v44 = vrot.slane %v1002_v36, %v5615_v11  ;;  %v745_v42 = vunpack.i.l.s16 %v660_v37  ;;  %v1477_v45 = vrot.slane %v4957_v38, %v5615_v11 }
  0x5f   : > { %v1469_v46 = vcombine.low %v1461_v13, %v1468_v32  ;;  %v1031_v47 = vcombine.low %v1009_v9, %v1016_v39  ;;  %v742_v48 = vunpack.i.h.s16 %v645_v8  ;;  %v744_v49 = vunpack.i.h.s16 %v646_v40 }
  0x60   : > { %v1032_v6 = vcombine.low %v1023_v43, %v1030_v44  ;;  %v1484_v21 = vrot.slane %v745_v42, %v5615_v11  ;;  %v754_v50 = vunpack.i.h.s16 %v660_v37  ;;  %v2502_v52 = vcombine.high %v5015_v41, %v5015_v41  ;;  %v5019_v43 = vld.sshfl [vmem:[%s5759_s29 + $0x10] sm:$0x33 pattern:$0x75316420] }
  0x61   : > { %5201 = vmatprep.mubr.msk.bf16.mxu1 %vm1083_vm0, %v1469_v46  ;;  %v1039_v53 = vrot.slane %v1031_v47, %v5615_v11  ;;  %v4924_v54 = vpack.i.b16 %v646_v40, %v742_v48  ;;  %v4925_v55 = vpack.i.b16 %v660_v37, %v744_v49  ;;  %v2509_v57 = vrot.slane %v5015_v41, %v5615_v11 }
  0x62   : > { %v1046_v58 = vrot.slane %v1032_v6, %v5615_v11  ;;  %v1485_v59 = vcombine.low %v1477_v45, %v1484_v21  ;;  %v1062_v60 = vrot.slane %v754_v50, %v5615_v11  ;;  %v2516_v61 = vrot.slane %v2502_v52, %v5615_v11 }
  0x63   : > { %v1048_v62 = vcombine.low %v4924_v54, %v4925_v55  ;;  %v2517_v0 = vcombine.high %v2509_v57, %v2509_v57  ;;  %v2526_v63 = vcombine.high %v5016_v51, %v5016_v51  ;;  %v2533_v1 = vrot.slane %v5016_v51, %v5615_v11 }
  0x64   : > { %v1047_v2 = vcombine.low %v1039_v53, %v1046_v58  ;;  %v1492_v3 = vrot.slane %v1485_v59, %v5615_v11  ;;  %v2518_v4 = vcombine.high %v2516_v61, %v2516_v61  ;;  %v5784_v7 = vrot.slane %v5017_v56, %v5615_v11 }
  0x65   : > { %v1055_v8 = vrot.slane %v1048_v62, %v5615_v11  ;;  %v2540_v10 = vrot.slane %v2526_v63, %v5615_v11  ;;  %v2541_v12 = vcombine.high %v2533_v1, %v2533_v1  ;;  %v5789_v14 = vrot.slane %v5018_v5, %v5615_v11 }
  0x66   : > { %5185 = vmatprep.mubr.msk.bf16.mxu0 %vm1083_vm0, %v1047_v2  ;;  %5202 = vmatmul.mubr.msk.bf16.gmra.mxu1 %vm1083_vm0, %v1492_v3  ;;  %v2805_v15 = vunpack.i.h.s16 %v2509_v57  ;;  %v2807_v16 = vunpack.i.h.s16 %v2516_v61  ;;  %v2809_v17 = vunpack.i.h.s16 %v2517_v0  ;;  %v2811_v19 = vunpack.i.h.s16 %v2518_v4 }
  0x67   : > { %v1063_v20 = vcombine.low %v1055_v8, %v1062_v60  ;;  %v2542_v22 = vcombine.high %v2540_v10, %v2540_v10  ;;  %v2813_v23 = vunpack.i.h.s16 %v2533_v1  ;;  %v2815_v24 = vunpack.i.h.s16 %v2540_v10 }
  0x68   : > { %v2817_v18 = vunpack.i.h.s16 %v2541_v12  ;;  %v2821_v25 = vunpack.i.h.s16 %v5784_v7  ;;  %v2822_v26 = vunpack.i.h.s16 %v5789_v14  ;;  %v5034_v27 = vpack.i.b16 %v2516_v61, %v2805_v15 }
  0x69   : > { %v1070_v28 = vrot.slane %v1063_v20, %v5615_v11  ;;  %v2819_v29 = vunpack.i.h.s16 %v2542_v22  ;;  %v5035_v30 = vpack.i.b16 %v2517_v0, %v2807_v16  ;;  %v5036_v31 = vpack.i.b16 %v2518_v4, %v2809_v17 }
  0x6a   : > { %v5037_v32 = vpack.i.b16 %v2533_v1, %v2811_v19  ;;  %v5038_v33 = vpack.i.b16 %v2540_v10, %v2813_v23  ;;  %v5039_v34 = vpack.i.b16 %v2541_v12, %v2815_v24  ;;  %v5040_v35 = vpack.i.b16 %v2542_v22, %v2817_v18 }
  0x6b   : > { %5186 = vmatmul.mubr.msk.bf16.gmra.mxu0 %vm1083_vm0, %v1070_v28  ;;  %v5041_v36 = vpack.i.b16 %v5784_v7, %v2819_v29  ;;  %v2903_v37 = vpack.i.b16 %v2822_v26, %v2821_v25  ;;  %v2938_v38 = vcombine.low %v5034_v27, %v5035_v30  ;;  %v2076_v13 = vcombine.low %v2509_v57, %v2516_v61  ;;  %v5020_v29 = vld.sshfl [vmem:[%s5759_s29 + $0x14] sm:$0x1 pattern:$0x75316420] }
  0x6c   : > { %v2939_v9 = vcombine.low %v5036_v31, %v5037_v32  ;;  %v2940_v39 = vcombine.low %v5038_v33, %v5039_v34  ;;  %v5003_v40 = vcombine.high %v2509_v57, %v2516_v61  ;;  %v2078_v41 = vcombine.low %v2533_v1, %v2540_v10  ;;  %v5021_v34 = vld.sshfl [vmem:[%s5759_s29 + $0x18] sm:$0x33 pattern:$0x75316420] }
  0x6d   : > { %v2941_v44 = vcombine.low %v5040_v35, %v5041_v36  ;;  %v2948_v42 = vrot.slane %v2938_v38, %v5615_v11  ;;  %v5004_v45 = vcombine.high %v2533_v1, %v2540_v10  ;;  %v2086_v46 = vrot.slane %v2076_v13, %v5615_v11 }
  0x6e   : > { %v2955_v47 = vrot.slane %v2939_v9, %v5615_v11  ;;  %v2962_v48 = vrot.slane %v2940_v39, %v5615_v11  ;;  %v2093_v49 = vrot.slane %v5003_v40, %v5615_v11  ;;  %v2100_v6 = vrot.slane %v2078_v41, %v5615_v11  ;;  %v5022_v41 = vld.sshfl [vmem:[%s5759_s29 + $0x1c] sm:$0x33 pattern:$0x75316420] }
  0x6f   : > { %v2969_v21 = vrot.slane %v2941_v44, %v5615_v11  ;;  %v2107_v50 = vrot.slane %v5004_v45, %v5615_v11  ;;  %v2564_v51 = vcombine.high %v5018_v5, %v5018_v5  ;;  %v2588_v52 = vcombine.high %v5019_v43, %v5019_v43 }
  0x70   : > { %v2970_v53 = vcombine.low %v2948_v42, %v2955_v47  ;;  %v2108_v54 = vcombine.low %v2086_v46, %v2093_v49  ;;  %v2595_v55 = vrot.slane %v5019_v43, %v5615_v11  ;;  %v1717_v56 = vcombine.high %v5789_v14, %v5789_v14 }
  0x71   : > { %v2971_v57 = vcombine.low %v2962_v48, %v2969_v21  ;;  %v2109_v58 = vcombine.low %v2100_v6, %v2107_v50  ;;  %v2578_v59 = vrot.slane %v2564_v51, %v5615_v11  ;;  %v2602_v60 = vrot.slane %v2588_v52, %v5615_v11 }
  0x72   : > { %v2978_v61 = vrot.slane %v2970_v53, %v5615_v11  ;;  %v2116_v62 = vrot.slane %v2108_v54, %v5615_v11  ;;  %v1741_v0 = vcombine.high %v2595_v55, %v2595_v55  ;;  %v1965_v63 = vunpack.i.h.s16 %v1717_v56 }
  0x73   : > { %v2985_v1 = vrot.slane %v2971_v57, %v5615_v11  ;;  %v2123_v2 = vrot.slane %v2109_v58, %v5615_v11  ;;  %v2987_v3 = vcombine.low %v2903_v37, %v2578_v59  ;;  %v5058_v5 = vcombine.high %v5789_v14, %v2578_v59 }
  0x74   : > { %v2989_v4 = vcombine.low %v2595_v55, %v2602_v60  ;;  %v5059_v8 = vcombine.high %v2595_v55, %v2602_v60  ;;  %v1718_v10 = vcombine.high %v2578_v59, %v2578_v59  ;;  %v5819_v12 = vcombine.high %v2602_v60, %v2602_v60 }
  0x75   : > { %v2986_v15 = vcombine.low %v2978_v61, %v2985_v1  ;;  %v2124_v16 = vcombine.low %v2116_v62, %v2123_v2  ;;  %v2997_v17 = vrot.slane %v2987_v3, %v5615_v11  ;;  %v3004_v19 = vrot.slane %v5058_v5, %v5615_v11 }
  0x76   : > { %v3011_v20 = vrot.slane %v2989_v4, %v5615_v11  ;;  %v3018_v22 = vrot.slane %v5059_v8, %v5615_v11  ;;  %v1963_v23 = vunpack.i.h.s16 %v2578_v59  ;;  %v1967_v24 = vunpack.i.h.s16 %v1718_v10 }
  0x77   : > { %5225 = vmatprep.mubr.msk.bf16.mxu1 %vm1083_vm0, %v2986_v15  ;;  %5209 = vmatprep.mubr.msk.bf16.mxu0 %vm1083_vm0, %v2124_v16  ;;  %v3019_v18 = vcombine.low %v2997_v17, %v3004_v19  ;;  %v1969_v25 = vunpack.i.h.s16 %v2595_v55  ;;  %v1971_v27 = vunpack.i.h.s16 %v2602_v60  ;;  %v1973_v28 = vunpack.i.h.s16 %v1741_v0 }
  0x78   : > { %v3020_v30 = vcombine.low %v3011_v20, %v3018_v22  ;;  %v4985_v31 = vpack.i.b16 %v5789_v14, %v5784_v7  ;;  %v4986_v32 = vpack.i.b16 %v2578_v59, %v2822_v26  ;;  %v4987_v33 = vpack.i.b16 %v1717_v56, %v1963_v23  ;;  %v5023_v22 = vld.sshfl [vmem:[%s5759_s29 + $0x20] sm:$0x1 pattern:$0x75316420] }
  0x79   : > { %v3027_v35 = vrot.slane %v3019_v18, %v5615_v11  ;;  %v4988_v36 = vpack.i.b16 %v1718_v10, %v1965_v63  ;;  %v4989_v37 = vpack.i.b16 %v2595_v55, %v1967_v24  ;;  %v4990_v38 = vpack.i.b16 %v2602_v60, %v1969_v25 }
  0x7a   : > { %v3034_v13 = vrot.slane %v3020_v30, %v5615_v11  ;;  %v4991_v9 = vpack.i.b16 %v1741_v0, %v1971_v27  ;;  %v4992_v39 = vpack.i.b16 %v5819_v12, %v1973_v28  ;;  %v2125_v40 = vcombine.low %v4985_v31, %v4986_v32  ;;  %v5024_v27 = vld.sshfl [vmem:[%s5759_s29 + $0x24] sm:$0x33 pattern:$0x75316420] }
  0x7b   : > { %v2126_v43 = vcombine.low %v4987_v33, %v4988_v36  ;;  %v2127_v44 = vcombine.low %v4989_v37, %v4990_v38  ;;  %v2618_v7 = vrot.slane %v5020_v29, %v5615_v11  ;;  %v2626_v14 = vcombine.high %v5021_v34, %v5021_v34  ;;  %v5025_v32 = vld.sshfl [vmem:[%s5759_s29 + $0x28] sm:$0x33 pattern:$0x75316420] }
  0x7c   : > { %v3035_v26 = vcombine.low %v3027_v35, %v3034_v13  ;;  %v2128_v42 = vcombine.low %v4991_v9, %v4992_v39  ;;  %v2135_v45 = vrot.slane %v2125_v40, %v5615_v11  ;;  %v2633_v46 = vrot.slane %v5021_v34, %v5615_v11 }
  0x7d   : > { %v2142_v47 = vrot.slane %v2126_v43, %v5615_v11  ;;  %v2149_v48 = vrot.slane %v2127_v44, %v5615_v11  ;;  %v2640_v49 = vrot.slane %v2626_v14, %v5615_v11  ;;  %v2650_v6 = vcombine.high %v5022_v41, %v5022_v41 }
  0x7e   : > { %5226 = vmatmul.mubr.msk.bf16.vlgmr.msra.gmra.mxu1 %vm1083_vm0, %v3035_v26  ;;  %v2156_v21 = vrot.slane %v2128_v42, %v5615_v11  ;;  %v2641_v50 = vcombine.high %v2633_v46, %v2633_v46  ;;  %v2657_v51 = vrot.slane %v5022_v41, %v5615_v11  ;;  %v2839_v52 = vunpack.i.h.s16 %v2633_v46 }
  0x7f   : > { %v2157_v53 = vcombine.low %v2135_v45, %v2142_v47  ;;  %v2642_v54 = vcombine.high %v2640_v49, %v2640_v49  ;;  %v2664_v55 = vrot.slane %v2650_v6, %v5615_v11  ;;  %v2841_v56 = vunpack.i.h.s16 %v2640_v49 }
  0x80   : > { %v2158_v57 = vcombine.low %v2149_v48, %v2156_v21  ;;  %v2665_v58 = vcombine.high %v2657_v51, %v2657_v51  ;;  %v2843_v59 = vunpack.i.h.s16 %v2641_v50  ;;  %v2847_v60 = vunpack.i.h.s16 %v2657_v51 }
  0x81   : > { %v2165_v61 = vrot.slane %v2157_v53, %v5615_v11  ;;  %v5848_v62 = vcombine.high %v2664_v55, %v2664_v55  ;;  %v2845_v0 = vunpack.i.h.s16 %v2642_v54  ;;  %v2849_v63 = vunpack.i.h.s16 %v2664_v55 }
  0x82   : > { %v2172_v1 = vrot.slane %v2158_v57, %v5615_v11  ;;  %v2851_v2 = vunpack.i.h.s16 %v2665_v58  ;;  %v5042_v3 = vpack.i.b16 %v2640_v49, %v2839_v52  ;;  %v5043_v5 = vpack.i.b16 %v2641_v50, %v2841_v56 }
  0x83   : > { %v5044_v4 = vpack.i.b16 %v2642_v54, %v2843_v59  ;;  %v5045_v8 = vpack.i.b16 %v2657_v51, %v2845_v0  ;;  %v5046_v10 = vpack.i.b16 %v2664_v55, %v2847_v60  ;;  %v5047_v15 = vpack.i.b16 %v2665_v58, %v2849_v63 }
  0x84   : > { %v2173_v16 = vcombine.low %v2165_v61, %v2172_v1  ;;  %v5048_v17 = vpack.i.b16 %v5848_v62, %v2851_v2  ;;  %v3036_v19 = vcombine.low %v2618_v7, %v5042_v3  ;;  %v1975_v20 = vunpack.i.h.s16 %v5819_v12 }
  0x85   : > { %v3037_v23 = vcombine.low %v5043_v5, %v5044_v4  ;;  %v3038_v24 = vcombine.low %v5045_v8, %v5046_v10  ;;  %v2175_v18 = vcombine.low %v2640_v49, %v2641_v50  ;;  %v2176_v25 = vcombine.low %v2642_v54, %v2657_v51 }
  0x86   : > { %5210 = vmatmul.mubr.msk.bf16.vlgmr.msra.gmra.mxu0 %vm1083_vm0, %v2173_v16  ;;  %v3039_v28 = vcombine.low %v5047_v15, %v5048_v17  ;;  %v3046_v29 = vrot.slane %v3036_v19, %v5615_v11  ;;  %v4993_v30 = vpack.i.b16 %v2618_v7, %v1975_v20  ;;  %v2177_v31 = vcombine.low %v2664_v55, %v2665_v58 }
  0x87   : > { %v3053_v33 = vrot.slane %v3037_v23, %v5615_v11  ;;  %v3060_v34 = vrot.slane %v3038_v24, %v5615_v11  ;;  %v2191_v12 = vrot.slane %v2175_v18, %v5615_v11  ;;  %v2198_v35 = vrot.slane %v2176_v25, %v5615_v11  ;;  %v5026_v23 = vld.sshfl [vmem:[%s5759_s29 + $0x2c] sm:$0x1 pattern:$0x75316420] }
  0x88   : > { %v3067_v36 = vrot.slane %v3039_v28, %v5615_v11  ;;  %v2174_v37 = vcombine.low %v4993_v30, %v2633_v46  ;;  %v2205_v38 = vrot.slane %v2177_v31, %v5615_v11  ;;  %v2680_v13 = vrot.slane %v5023_v22, %v5615_v11  ;;  %v5027_v28 = vld.sshfl [vmem:[%s5759_s29 + $0x30] sm:$0x33 pattern:$0x75316420] }
  0x89   : > { %v3068_v9 = vcombine.low %v3046_v29, %v3053_v33  ;;  %v2688_v39 = vcombine.high %v5024_v27, %v5024_v27  ;;  %v2695_v40 = vrot.slane %v5024_v27, %v5615_v11  ;;  %v2712_v41 = vcombine.high %v5025_v32, %v5025_v32 }
  0x8a   : > { %v3069_v43 = vcombine.low %v3060_v34, %v3067_v36  ;;  %v2184_v44 = vrot.slane %v2174_v37, %v5615_v11  ;;  %v2207_v7 = vcombine.low %v2198_v35, %v2205_v38  ;;  %v2719_v14 = vrot.slane %v5025_v32, %v5615_v11  ;;  %v5028_v32 = vld.sshfl [vmem:[%s5759_s29 + $0x34] sm:$0x33 pattern:$0x75316420] }
  0x8b   : > { %v3076_v26 = vrot.slane %v3068_v9, %v5615_v11  ;;  %v2702_v42 = vrot.slane %v2688_v39, %v5615_v11  ;;  %v2703_v45 = vcombine.high %v2695_v40, %v2695_v40  ;;  %v2726_v46 = vrot.slane %v2712_v41, %v5615_v11 }
  0x8c   : > { %v3083_v47 = vrot.slane %v3069_v43, %v5615_v11  ;;  %v2206_v48 = vcombine.low %v2184_v44, %v2191_v12  ;;  %v2221_v49 = vrot.slane %v2207_v7, %v5615_v11  ;;  %v5873_v6 = vcombine.high %v2719_v14, %v2719_v14 }
  0x8d   : > { %v2704_v21 = vcombine.high %v2702_v42, %v2702_v42  ;;  %v2853_v50 = vunpack.i.h.s16 %v5848_v62  ;;  %v2855_v51 = vunpack.i.h.s16 %v2680_v13  ;;  %v2856_v52 = vunpack.i.h.s16 %v2695_v40 }
  0x8e   : > { %v3084_v53 = vcombine.low %v3076_v26, %v3083_v47  ;;  %v2214_v54 = vrot.slane %v2206_v48, %v5615_v11  ;;  %v3086_v55 = vcombine.low %v2702_v42, %v2703_v45  ;;  %v3088_v56 = vcombine.low %v2726_v46, %v5873_v6 }
  0x8f   : > { %v5049_v57 = vpack.i.b16 %v2680_v13, %v2853_v50  ;;  %v2920_v58 = vpack.i.b16 %v2856_v52, %v2855_v51  ;;  %v3087_v59 = vcombine.low %v2704_v21, %v2719_v14  ;;  %v1997_v60 = vunpack.i.h.s16 %v2702_v42 }
  0x90   : > { %5229 = vmatprep.mubr.msk.bf16.mxu1 %vm1083_vm0, %v3084_v53  ;;  %v2222_v61 = vcombine.low %v2214_v54, %v2221_v49  ;;  %v3102_v0 = vrot.slane %v3086_v55, %v5615_v11  ;;  %v3116_v63 = vrot.slane %v3088_v56, %v5615_v11  ;;  %v1999_v1 = vunpack.i.h.s16 %v2703_v45 }
  0x91   : > { %v3085_v2 = vcombine.low %v5049_v57, %v2920_v58  ;;  %v3109_v3 = vrot.slane %v3087_v59, %v5615_v11  ;;  %v2001_v5 = vunpack.i.h.s16 %v2704_v21  ;;  %v2003_v4 = vunpack.i.h.s16 %v2719_v14 }
  0x92   : > { %5213 = vmatprep.mubr.msk.bf16.mxu0 %vm1083_vm0, %v2222_v61  ;;  %v2005_v8 = vunpack.i.h.s16 %v2726_v46  ;;  %v4994_v10 = vpack.i.b16 %v2695_v40, %v2680_v13  ;;  %v4995_v15 = vpack.i.b16 %v2702_v42, %v2856_v52  ;;  %v4996_v16 = vpack.i.b16 %v2703_v45, %v1997_v60 }
  0x93   : > { %v3095_v17 = vrot.slane %v3085_v2, %v5615_v11  ;;  %v3118_v19 = vcombine.low %v3109_v3, %v3116_v63  ;;  %v4997_v20 = vpack.i.b16 %v2704_v21, %v1999_v1  ;;  %v4998_v22 = vpack.i.b16 %v2719_v14, %v2001_v5 }
  0x94   : > { %v4999_v24 = vpack.i.b16 %v2726_v46, %v2003_v4  ;;  %v5000_v18 = vpack.i.b16 %v5873_v6, %v2005_v8  ;;  %v2223_v25 = vcombine.low %v5848_v62, %v4994_v10  ;;  %v2224_v27 = vcombine.low %v4995_v15, %v4996_v16  ;;  %v5029_v10 = vld.sshfl [vmem:[%s5759_s29 + $0x38] sm:$0x1 pattern:$0x75316420] }
  0x95   : > { %v3117_v29 = vcombine.low %v3095_v17, %v3102_v0  ;;  %v3132_v30 = vrot.slane %v3118_v19, %v5615_v11  ;;  %v2225_v31 = vcombine.low %v4997_v20, %v4998_v22  ;;  %v2728_v33 = vcombine.high %v2726_v46, %v2726_v46 }
  0x96   : > { %v2226_v34 = vcombine.low %v4999_v24, %v5000_v18  ;;  %v2233_v12 = vrot.slane %v2223_v25, %v5615_v11  ;;  %v2240_v35 = vrot.slane %v2224_v27, %v5615_v11  ;;  %v2742_v36 = vrot.slane %v5026_v23, %v5615_v11 }
  0x97   : > { %v3125_v37 = vrot.slane %v3117_v29, %v5615_v11  ;;  %v2247_v38 = vrot.slane %v2225_v31, %v5615_v11  ;;  %v2750_v62 = vcombine.high %v5027_v28, %v5027_v28  ;;  %v2757_v13 = vrot.slane %v5027_v28, %v5615_v11 }
  0x98   : > { %v2254_v9 = vrot.slane %v2226_v34, %v5615_v11  ;;  %v2255_v39 = vcombine.low %v2233_v12, %v2240_v35  ;;  %v2774_v40 = vcombine.high %v5028_v32, %v5028_v32  ;;  %v5898_v41 = vrot.slane %v5028_v32, %v5615_v11 }
  0x99   : > { %v3133_v43 = vcombine.low %v3125_v37, %v3132_v30  ;;  %v2764_v44 = vrot.slane %v2750_v62, %v5615_v11  ;;  %v2765_v7 = vcombine.high %v2757_v13, %v2757_v13  ;;  %v2873_v14 = vunpack.i.h.s16 %v2757_v13 }
  0x9a   : > { %v2256_v26 = vcombine.low %v2247_v38, %v2254_v9  ;;  %v2263_v42 = vrot.slane %v2255_v39, %v5615_v11  ;;  %v2788_v45 = vrot.slane %v2774_v40, %v5615_v11  ;;  %v2789_v46 = vcombine.high %v5898_v41, %v5898_v41 }
  0x9b   : > { %5230 = vmatmul.mubr.msk.bf16.gmra.mxu1 %vm1083_vm0, %v3133_v43  ;;  %v2766_v47 = vcombine.high %v2764_v44, %v2764_v44  ;;  %v2875_v48 = vunpack.i.h.s16 %v2764_v44  ;;  %v2877_v49 = vunpack.i.h.s16 %v2765_v7  ;;  %v2881_v21 = vunpack.i.h.s16 %v5898_v41 }
  0x9c   : > { %v2270_v50 = vrot.slane %v2256_v26, %v5615_v11  ;;  %v2883_v51 = vunpack.i.h.s16 %v2788_v45  ;;  %v5050_v52 = vpack.i.b16 %v2764_v44, %v2873_v14  ;;  %v3134_v53 = vcombine.low %v2728_v33, %v2742_v36 }
  0x9d   : > { %v2879_v54 = vunpack.i.h.s16 %v2766_v47  ;;  %v5051_v55 = vpack.i.b16 %v2765_v7, %v2875_v48  ;;  %v5052_v56 = vpack.i.b16 %v2766_v47, %v2877_v49  ;;  %v5054_v57 = vpack.i.b16 %v2788_v45, %v2881_v21 }
  0x9e   : > { %v2271_v58 = vcombine.low %v2263_v42, %v2270_v50  ;;  %v5055_v59 = vpack.i.b16 %v2789_v46, %v2883_v51  ;;  %v3144_v60 = vrot.slane %v3134_v53, %v5615_v11  ;;  %v2007_v61 = vunpack.i.h.s16 %v5873_v6 }
  0x9f   : > { %v5053_v0 = vpack.i.b16 %v5898_v41, %v2879_v54  ;;  %v3135_v63 = vcombine.low %v5050_v52, %v5051_v55  ;;  %v2009_v1 = vunpack.i.h.s16 %v2728_v33  ;;  %v2273_v2 = vcombine.low %v2757_v13, %v2764_v44 }
  0xa0   : > { %5214 = vmatmul.mubr.msk.bf16.gmra.mxu0 %vm1083_vm0, %v2271_v58  ;;  %v3137_v3 = vcombine.low %v5054_v57, %v5055_v59  ;;  %v5001_v5 = vpack.i.b16 %v2728_v33, %v2007_v61  ;;  %v5005_v4 = vcombine.high %v2757_v13, %v2764_v44  ;;  %v2275_v8 = vcombine.low %v5898_v41, %v2788_v45 }
  0xa1   : > { %v3136_v15 = vcombine.low %v5052_v56, %v5053_v0  ;;  %v3151_v16 = vrot.slane %v3135_v63, %v5615_v11  ;;  %v5002_v17 = vpack.i.b16 %v2742_v36, %v2009_v1  ;;  %v2289_v19 = vrot.slane %v2273_v2, %v5615_v11 }
  0xa2   : > { %v3165_v6 = vrot.slane %v3137_v3, %v5615_v11  ;;  %v2296_v20 = vrot.slane %v5005_v4, %v5615_v11  ;;  %v2303_v22 = vrot.slane %v2275_v8, %v5615_v11  ;;  %v2790_v23 = vcombine.high %v2788_v45, %v2788_v45 }
  0xa3   : > { %v3158_v24 = vrot.slane %v3136_v15, %v5615_v11  ;;  %v3166_v18 = vcombine.low %v3144_v60, %v3151_v16  ;;  %v2272_v25 = vcombine.low %v5001_v5, %v5002_v17  ;;  %v2804_v27 = vrot.slane %v5029_v10, %v5615_v11 }
  0xa4   : > { %v2305_v28 = vcombine.low %v2296_v20, %v2303_v22  ;;  %v2885_v29 = vunpack.i.h.s16 %v2789_v46  ;;  %v2887_v30 = vunpack.i.h.s16 %v2790_v23  ;;  %v5006_v31 = vcombine.high %v5898_v41, %v2788_v45 }
  0xa5   : > { %v3167_v32 = vcombine.low %v3158_v24, %v3165_v6  ;;  %v3174_v33 = vrot.slane %v3166_v18, %v5615_v11  ;;  %v2282_v34 = vrot.slane %v2272_v25, %v5615_v11  ;;  %v2889_v12 = vunpack.i.h.s16 %v2804_v27  ;;  %v5958_v18 = vld [vmem:[%s6298_s3] ss:$0 sm:$0xff] }
  0xa6   : > { %v5056_v35 = vpack.i.b16 %v2790_v23, %v2885_v29  ;;  %v5057_v36 = vpack.i.b16 %v2804_v27, %v2887_v30  ;;  %v2027_v37 = vunpack.i.l.s16 %v2804_v27  ;;  %v2319_v13 = vrot.slane %v2305_v28, %v5615_v11 }
  0xa7   : > { %v3181_v38 = vrot.slane %v3167_v32, %v5615_v11  ;;  %v2304_v62 = vcombine.low %v2282_v34, %v2289_v19  ;;  %v2328_v9 = vrot.slane %v5006_v31, %v5615_v11  ;;  %v3197_v40 = vrot.slane %v2889_v12, %v5615_v11 }
  0xa8   : > { %v3183_v39 = vcombine.low %v5056_v35, %v5057_v36  ;;  %v2335_v41 = vrot.slane %v2027_v37, %v5615_v11 }
  0xa9   : > { %v3182_v43 = vcombine.low %v3174_v33, %v3181_v38  ;;  %v2312_v44 = vrot.slane %v2304_v62, %v5615_v11 }
  0xaa   : > { %v3190_v7 = vrot.slane %v3183_v39, %v5615_v11  ;;  %v2336_v14 = vcombine.low %v2328_v9, %v2335_v41 }
  0xab   : > { %5233 = vmatprep.mubr.msk.bf16.mxu1 %vm1083_vm0, %v3182_v43  ;;  %v2320_v26 = vcombine.low %v2312_v44, %v2319_v13 }
  0xac   : > { %v3198_v42 = vcombine.low %v3190_v7, %v3197_v40  ;;  %v2343_v45 = vrot.slane %v2336_v14, %v5615_v11 }
  0xad   : > { %5217 = vmatprep.mubr.msk.bf16.mxu0 %vm1083_vm0, %v2320_v26 }
  0xae   : > { %v3205_v46 = vrot.slane %v3198_v42, %v5615_v11  ;;  %5218 = vmatmul.mubr.msk.bf16.gmra.mxu0 %vm1083_vm0, %v2343_v45 }
  0xb0   : > { %5234 = vmatmul.mubr.msk.bf16.gmra.mxu1 %vm1083_vm0, %v3205_v46 }
  0xfc   : > { %v5195_v47 = vpop.f32.mrf.mxu1 }
  0xfe   : > { %v5179_v48 = vpop.f32.mrf.mxu0  ;;  %v1557_v49 = vpop.f32.mrf.mxu1 }
  0xff   : > { %v1566_v6 = vadd.f32 %v5195_v47, %v5179_v48 }
 0x100   : > { %v1136_v21 = vpop.f32.mrf.mxu0  ;;  %v5196_v50 = vpop.f32.mrf.mxu1 }
 0x101   : > { %v1558_v23 = vadd.f32 %v1557_v49, %v1136_v21 }
 0x102   : > { %v5180_v51 = vpop.f32.mrf.mxu0  ;;  %v1560_v52 = vpop.f32.mrf.mxu1 }
 0x103   : > { %v1569_v27 = vadd.f32 %v5196_v50, %v5180_v51 }
 0x104   : > { %v1139_v53 = vpop.f32.mrf.mxu0 }
 0x105   : > { %v1561_v12 = vadd.f32 %v1560_v52, %v1139_v53 }
 0x116   : > { %v5937_v54 = vpop.f32.mrf.mxu1 }
 0x118   : > { %v5939_v55 = vpop.f32.mrf.mxu1 }
 0x119   : > { %v5941_v56 = vpop.f32.mrf.mxu0 }
 0x11a   : > { %v5200_v57 = vpop.f32.mrf.mxu1 }
 0x11b   : > { %v5943_v58 = vpop.f32.mrf.mxu0 }
 0x11c   : > { %v1576_v60 = vpop.f32.mrf.mxu1 }
 0x11d   : > { %v5184_v59 = vpop.f32.mrf.mxu0 }
 0x11e   : > { %v5945_v61 = vadd.f32 %v5200_v57, %v5184_v59 }
 0x11f   : > { %v1155_v0 = vpop.f32.mrf.mxu0 }
 0x120   : > { %v5947_v63 = vadd.f32 %v1576_v60, %v1155_v0 }
 0x126   : > { %v5203_v1 = vpop.f32.mrf.mxu1 }
 0x128   : > { %v1589_v2 = vpop.f32.mrf.mxu1 }
 0x12a   : > { %v5204_v3 = vpop.f32.mrf.mxu1 }
 0x12b   : > { %v5187_v5 = vpop.f32.mrf.mxu0 }
 0x12c   : > { %v5949_v4 = vadd.f32 %v5203_v1, %v5187_v5  ;;  %v1592_v16 = vpop.f32.mrf.mxu1  ;;  %v4530_v5 = vld [vmem:[%s5985_s15 + $0x8] sm:$0x1] }
 0x12d   : > { %v1168_v8 = vpop.f32.mrf.mxu0 }
 0x12e   : > { %v5951_v10 = vadd.f32 %v1589_v2, %v1168_v8 }
 0x12f   : > { %v5188_v15 = vpop.f32.mrf.mxu0 }
 0x131   : > { %v1171_v17 = vpop.f32.mrf.mxu0 }
 0x132   : > { %v5953_v19 = vadd.f32 %v1592_v16, %v1171_v17 }
 0x13e   : > { %v5227_v20 = vpop.f32.mrf.mxu1 }
 0x140   : > { %v3270_v29 = vpop.f32.mrf.mxu1 }
 0x142   : > { %v5228_v62 = vpop.f32.mrf.mxu1 }
 0x144   : > { %v3273_v49 = vpop.f32.mrf.mxu1 }
 0x146   : > { %v5211_v22 = vpop.f32.mrf.mxu0 }
 0x147   : > { %v2456_v24 = vadd.f32 %v5211_v22, %v1566_v6 }
 0x148   : > { %v2408_v25 = vpop.f32.mrf.mxu0 }
 0x149   : > { %v3318_v28 = vadd.f32 %v5227_v20, %v2456_v24  ;;  %v2454_v30 = vadd.f32 %v2408_v25, %v1558_v23 }
 0x14a   : > { %v5212_v31 = vpop.f32.mrf.mxu0 }
 0x14b   : > { %v3336_v32 = vadd.f32 %v5958_v18, %v3318_v28  ;;  %v3316_v33 = vadd.f32 %v3270_v29, %v2454_v30  ;;  %v2457_v34 = vadd.f32 %v5212_v31, %v1569_v27 }
 0x14c   : > { %v2411_v35 = vpop.f32.mrf.mxu0 }
 0x14d   : > { %v3454_v36 = vcombine.high %v3336_v32, %v3336_v32  ;;  %v3461_v37 = vrot.slane %v3336_v32, %v5615_v11  ;;  %v3334_v38 = vadd.f32 %v5958_v18, %v3316_v33  ;;  %v3319_v13 = vadd.f32 %v5228_v62, %v2457_v34 }
 0x14e   : > { %v2455_v9 = vadd.f32 %v2411_v35, %v1561_v12 }
 0x14f   : > { %v3468_v39 = vrot.slane %v3454_v36, %v5615_v11  ;;  %v3469_v40 = vcombine.high %v3461_v37, %v3461_v37  ;;  %v3477_v41 = vrot.slane %v3461_v37, %v5615_v11  ;;  %v3356_v43 = vcombine.high %v3334_v38, %v3334_v38 }
 0x150   : > { %v3363_v44 = vrot.slane %v3334_v38, %v5615_v11  ;;  %v3337_v48 = vadd.f32 %v5958_v18, %v3319_v13  ;;  %v3317_v52 = vadd.f32 %v3273_v49, %v2455_v9 }
 0x151   : > { %v3470_v7 = vcombine.high %v3468_v39, %v3468_v39  ;;  %v3484_v14 = vrot.slane %v3468_v39, %v5615_v11  ;;  %v3491_v26 = vrot.slane %v3469_v40, %v5615_v11  ;;  %v3499_v42 = vcombine.high %v3477_v41, %v3477_v41 }
 0x152   : > { %v3989_v45 = vrot.slane %v3477_v41, %v5615_v11  ;;  %v3370_v46 = vrot.slane %v3356_v43, %v5615_v11  ;;  %v3371_v47 = vcombine.high %v3363_v44, %v3363_v44  ;;  %v3379_v59 = vrot.slane %v3363_v44, %v5615_v11 }
 0x153   : > { %v3498_v21 = vrot.slane %v3470_v7, %v5615_v11  ;;  %v3500_v50 = vcombine.high %v3484_v14, %v3484_v14  ;;  %v3501_v51 = vcombine.high %v3491_v26, %v3491_v26  ;;  %v3997_v0 = vcombine.low %v3491_v26, %v3499_v42 }
 0x154   : > { %v3996_v53 = vrot.slane %v3989_v45, %v5615_v11  ;;  %v3372_v57 = vcombine.high %v3370_v46, %v3370_v46  ;;  %v3393_v60 = vrot.slane %v3371_v47, %v5615_v11  ;;  %v3386_v8 = vrot.slane %v3370_v46, %v5615_v11 }
 0x155   : > { %v3998_v1 = vcombine.low %v3501_v51, %v3484_v14  ;;  %v3999_v2 = vcombine.low %v3498_v21, %v3500_v50  ;;  %v3502_v22 = vcombine.high %v3498_v21, %v3498_v21  ;;  %v3503_v23 = vcombine.high %v3337_v48, %v3337_v48 }
 0x156   : > { %v5111_v15 = vpack.c.bf16 %v3996_v53, %v3996_v53  ;;  %v3400_v16 = vrot.slane %v3372_v57, %v5615_v11  ;;  %v3885_v17 = vcombine.low %v3379_v59, %v3393_v60  ;;  %v5069_v6 = vcombine.high %v3379_v59, %v3393_v60 }
 0x157   : > { %v4014_v20 = vrot.slane %v3998_v1, %v5615_v11  ;;  %v3510_v24 = vrot.slane %v3337_v48, %v5615_v11  ;;  %v4007_v30 = vrot.slane %v3997_v0, %v5615_v11  ;;  %v3517_v32 = vrot.slane %v3503_v23, %v5615_v11 }
 0x158   : > { %v4531_v25 = vsel %vm5980_vm3, %v5111_v15, %v4530_v5  ;;  %v3887_v27 = vcombine.low %v3386_v8, %v3400_v16  ;;  %v5070_v28 = vcombine.high %v3386_v8, %v3400_v16  ;;  %v3895_v29 = vrot.slane %v3885_v17, %v5615_v11 }
 0x159   : > { %4532 = vst [vmem:[%s5985_s15 + $0x8] sm:$0x1] %v4531_v25  ;;  %v3902_v31 = vrot.slane %v5069_v6, %v5615_v11  ;;  %v3518_v33 = vcombine.high %v3510_v24, %v3510_v24  ;;  %v3526_v35 = vrot.slane %v3510_v24, %v5615_v11  ;;  %v3335_v36 = vadd.f32 %v5958_v18, %v3317_v52 }
 0x15a   : > { %v3909_v34 = vrot.slane %v3887_v27, %v5615_v11  ;;  %v3916_v12 = vrot.slane %v5070_v28, %v5615_v11  ;;  %v4029_v37 = vcombine.low %v4007_v30, %v4014_v20  ;;  %v3519_v62 = vcombine.high %v3517_v32, %v3517_v32 }
 0x15b   : > { %v3917_v38 = vcombine.low %v3895_v29, %v3902_v31  ;;  %v4000_v13 = vcombine.low %v3502_v22, %v3526_v35  ;;  %v6004_v39 = vrot.slane %v3517_v32, %v5615_v11  ;;  %v3405_v40 = vcombine.high %v3335_v36, %v3335_v36  ;;  %v5231_v48 = vpop.f32.mrf.mxu1 }
 0x15c   : > { %v3918_v9 = vcombine.low %v3909_v34, %v3916_v12  ;;  %v1582_v41 = vadd.f32 %v5937_v54, %v5941_v56  ;;  %v3540_v43 = vrot.slane %v3518_v33, %v5615_v11  ;;  %v4021_v44 = vrot.slane %v3999_v2, %v5615_v11 }
 0x15d   : > { %v4028_v7 = vrot.slane %v4000_v13, %v5615_v11  ;;  %v1574_v14 = vadd.f32 %v5939_v55, %v5943_v58  ;;  %v4037_v26 = vrot.slane %v4029_v37, %v5615_v11  ;;  %v3412_v42 = vrot.slane %v3335_v36, %v5615_v11  ;;  %v3286_v16 = vpop.f32.mrf.mxu1 }
 0x15e   : > { %v3419_v45 = vrot.slane %v3405_v40, %v5615_v11  ;;  %v6017_v46 = vrot.slane %v3917_v38, %v5615_v11  ;;  %v6020_v54 = vrot.slane %v3519_v62, %v5615_v11  ;;  %v3548_v56 = vcombine.high %v3526_v35, %v3526_v35 }
 0x15f   : > { %v4030_v47 = vcombine.low %v4021_v44, %v4028_v7  ;;  %v6023_v21 = vrot.slane %v3918_v9, %v5615_v11  ;;  %v3549_v55 = vcombine.high %v6004_v39, %v6004_v39  ;;  %v3420_v58 = vcombine.high %v3412_v42, %v3412_v42  ;;  %v5232_v37 = vpop.f32.mrf.mxu1 }
 0x160   : > { %v5215_v49 = vpop.f32.mrf.mxu0  ;;  %v3421_v50 = vcombine.high %v3419_v45, %v3419_v45  ;;  %v3550_v51 = vcombine.high %v3540_v43, %v3540_v43  ;;  %v3428_v53 = vrot.slane %v3412_v42, %v5615_v11  ;;  %v3435_v60 = vrot.slane %v3419_v45, %v5615_v11 }
 0x161   : > { %v4044_v52 = vrot.slane %v4030_v47, %v5615_v11  ;;  %v2460_v57 = vadd.f32 %v5215_v49, %v1582_v41  ;;  %v3442_v0 = vrot.slane %v3420_v58, %v5615_v11  ;;  %v4046_v8 = vcombine.low %v3540_v43, %v3548_v56 }
 0x162   : > { %v2424_v59 = vpop.f32.mrf.mxu0  ;;  %v3449_v1 = vrot.slane %v3421_v50, %v5615_v11  ;;  %v3551_v17 = vcombine.high %v6020_v54, %v6020_v54  ;;  %v4047_v24 = vcombine.low %v3550_v51, %v6004_v39  ;;  %v3933_v34 = vcombine.low %v6017_v46, %v6023_v21  ;;  %v4540_v39 = vld [vmem:[%s5985_s15 + $0x20] sm:$0x1] }
 0x163   : > { %v2458_v2 = vadd.f32 %v2424_v59, %v1574_v14  ;;  %v4045_v5 = vcombine.low %v4037_v26, %v4044_v52  ;;  %v3322_v15 = vadd.f32 %v5231_v48, %v2460_v57  ;;  %v3934_v6 = vcombine.low %v3428_v53, %v3442_v0  ;;  %v3289_v48 = vpop.f32.mrf.mxu1 }
 0x164   : > { %v5071_v20 = vcombine.high %v3428_v53, %v3442_v0  ;;  %v3936_v22 = vcombine.low %v3435_v60, %v3449_v1  ;;  %v5072_v23 = vcombine.high %v3435_v60, %v3449_v1  ;;  %v5216_v29 = vpop.f32.mrf.mxu0  ;;  %v4056_v38 = vrot.slane %v4046_v8, %v5615_v11 }
 0x165   : > { %v5112_v25 = vpack.c.bf16 %v4045_v5, %v4045_v5  ;;  %v3340_v27 = vadd.f32 %v5958_v18, %v3322_v15  ;;  %v3320_v28 = vadd.f32 %v3286_v16, %v2458_v2  ;;  %v3944_v30 = vrot.slane %v3934_v6, %v5615_v11 }
 0x166   : > { %v3951_v31 = vrot.slane %v5071_v20, %v5615_v11  ;;  %v3958_v32 = vrot.slane %v3936_v22, %v5615_v11  ;;  %v3965_v33 = vrot.slane %v5072_v23, %v5615_v11  ;;  %v2461_v9 = vadd.f32 %v5216_v29, %v5945_v61  ;;  %v2427_v7 = vpop.f32.mrf.mxu0 }
 0x167   : > { %4533 = vst [vmem:[%s5985_s15 + $0xc] sm:$0xf] %v5112_v25  ;;  %v3650_v12 = vcombine.high %v3340_v27, %v3340_v27  ;;  %v3657_v35 = vrot.slane %v3340_v27, %v5615_v11  ;;  %v3338_v36 = vadd.f32 %v5958_v18, %v3320_v28  ;;  %v4063_v14 = vrot.slane %v4047_v24, %v5615_v11 }
 0x168   : > { %v3966_v62 = vcombine.low %v3944_v30, %v3951_v31  ;;  %v3967_v13 = vcombine.low %v3958_v32, %v3965_v33  ;;  %v3323_v57 = vadd.f32 %v5232_v37, %v2461_v9  ;;  %v4048_v60 = vcombine.low %v6020_v54, %v3549_v55 }
 0x169   : > { %v3664_v40 = vrot.slane %v3650_v12, %v5615_v11  ;;  %v3665_v41 = vcombine.high %v3657_v35, %v3657_v35  ;;  %v6049_v43 = vrot.slane %v3657_v35, %v5615_v11  ;;  %v3552_v44 = vcombine.high %v3338_v36, %v3338_v36 }
 0x16a   : > { %v3974_v26 = vrot.slane %v3966_v62, %v5615_v11  ;;  %v3981_v42 = vrot.slane %v3967_v13, %v5615_v11  ;;  %v3559_v45 = vrot.slane %v3338_v36, %v5615_v11  ;;  %v4078_v5 = vcombine.low %v4056_v38, %v4063_v14  ;;  %v4535_v62 = vld [vmem:[%s5985_s15 + $0x14] sm:$0x1] }
 0x16b   : > { %v3666_v46 = vcombine.high %v3664_v40, %v3664_v40  ;;  %v3680_v56 = vrot.slane %v3664_v40, %v5615_v11  ;;  %v6057_v61 = vrot.slane %v3665_v41, %v5615_v11  ;;  %v3695_v47 = vcombine.high %v6049_v43, %v6049_v43 }
 0x16c   : > { %v3982_v49 = vcombine.low %v3974_v26, %v3981_v42  ;;  %v3566_v21 = vrot.slane %v3552_v44, %v5615_v11  ;;  %v3567_v58 = vcombine.high %v3559_v45, %v3559_v45  ;;  %v6063_v50 = vrot.slane %v3559_v45, %v5615_v11 }
 0x16d   : > { %v3694_v51 = vrot.slane %v3666_v46, %v5615_v11  ;;  %v3696_v52 = vcombine.high %v3680_v56, %v3680_v56  ;;  %v3697_v53 = vcombine.high %v6057_v61, %v6057_v61  ;;  %v4213_v1 = vrot.slane %v3695_v47, %v5615_v11 }
 0x16e   : > { %v5219_v59 = vpop.f32.mrf.mxu0  ;;  %v5127_v0 = vpack.c.bf16 %v3982_v49, %v3933_v34  ;;  %v3568_v2 = vcombine.high %v3566_v21, %v3566_v21  ;;  %v3589_v15 = vrot.slane %v3567_v58, %v5615_v11  ;;  %v4049_v23 = vcombine.low %v3551_v17, %v6063_v50 }
 0x16f   : > { %v4221_v8 = vcombine.low %v3697_v53, %v3680_v56  ;;  %v4220_v20 = vrot.slane %v4213_v1, %v5615_v11  ;;  %v4222_v22 = vcombine.low %v3694_v51, %v3696_v52  ;;  %v3341_v24 = vadd.f32 %v5958_v18, %v3323_v57 }
 0x170   : > { %v5235_v16 = vpop.f32.mrf.mxu1  ;;  %v6074_v6 = vpop.f32.mrf.mxu0  ;;  %5128 = vst [vmem:[%s5985_s15] sm:$0xff] %v5127_v0   ;;  %v6081_v54 = vrot.slane %v3568_v2, %v5615_v11  ;;  %v4101_v55 = vrot.slane %v3589_v15, %v5615_v11  ;;  %v4070_v29 = vrot.slane %v4048_v60, %v5615_v11  ;;  %v4077_v30 = vrot.slane %v4049_v23, %v5615_v11 }
 0x171   : > { %v5117_v28 = vpack.c.bf16 %v4220_v20, %v4220_v20  ;;  %v2459_v17 = vadd.f32 %v2427_v7, %v5947_v63  ;;  %v4086_v31 = vrot.slane %v4078_v5, %v5615_v11  ;;  %v4231_v32 = vrot.slane %v4221_v8, %v5615_v11 }
 0x172   : > { %v6085_v25 = vpop.f32.mrf.mxu1  ;;  %v5220_v27 = vpop.f32.mrf.mxu0  ;;  %v6093_v33 = vrot.slane %v3566_v21, %v5615_v11  ;;  %v4108_v34 = vrot.slane %v4101_v55, %v5615_v11  ;;  %v4238_v35 = vrot.slane %v4222_v22, %v5615_v11  ;;  %v4079_v37 = vcombine.low %v4070_v29, %v4077_v30 }
 0x173   : > { %v4541_v36 = vsel %vm5980_vm3, %v5117_v28, %v4540_v39  ;;  %v5073_v38 = vcombine.high %v6063_v50, %v3589_v15  ;;  %v3699_v9 = vcombine.high %v3341_v24, %v3341_v24  ;;  %v3706_v40 = vrot.slane %v3341_v24, %v5615_v11 }
 0x174   : > { %v5236_v12 = vpop.f32.mrf.mxu1  ;;  %4542 = vst [vmem:[%s5985_s15 + $0x20] sm:$0x1] %v4541_v36  ;;  %v4110_v63 = vcombine.low %v6093_v33, %v6081_v54  ;;  %v5114_v13 = vpack.c.bf16 %v4108_v34, %v4108_v34  ;;  %v4093_v41 = vrot.slane %v4079_v37, %v5615_v11  ;;  %v3698_v44 = vcombine.high %v3694_v51, %v3694_v51 }
 0x175   : > { %v3321_v7 = vadd.f32 %v3289_v48, %v2459_v17  ;;  %v2464_v14 = vadd.f32 %v5219_v59, %v5949_v4  ;;  %v3713_v42 = vrot.slane %v3699_v9, %v5615_v11  ;;  %v3714_v45 = vcombine.high %v3706_v40, %v3706_v40 }
 0x176   : > { %v4536_v26 = vsel %vm5980_vm3, %v5114_v13, %v4535_v62  ;;  %v3722_v46 = vrot.slane %v3706_v40, %v5615_v11  ;;  %v4161_v56 = vcombine.low %v6049_v43, %v6057_v61  ;;  %v4253_v47 = vcombine.low %v4231_v32, %v4238_v35 }
 0x177   : > { %v4094_v49 = vcombine.low %v4086_v31, %v4093_v41  ;;  %4537 = vst [vmem:[%s5985_s15 + $0x14] sm:$0x1] %v4536_v26  ;;  %v3339_v21 = vadd.f32 %v5958_v18, %v3321_v7  ;;  %v4126_v48 = vrot.slane %v4110_v63, %v5615_v11  ;;  %v3736_v4 = vrot.slane %v3714_v45, %v5615_v11 }
 0x178   : > { %v3744_v58 = vcombine.high %v3722_v46, %v3722_v46  ;;  %v3326_v50 = vadd.f32 %v5235_v16, %v2464_v14  ;;  %v4223_v52 = vcombine.low %v3698_v44, %v3722_v46  ;;  %v4119_v59 = vrot.slane %v5073_v38, %v5615_v11 }
 0x179   : > { %v5113_v51 = vpack.c.bf16 %v4094_v49, %v4094_v49  ;;  %v3601_v53 = vcombine.high %v3339_v21, %v3339_v21  ;;  %v3608_v57 = vrot.slane %v3339_v21, %v5615_v11  ;;  %v3715_v43 = vcombine.high %v3713_v42, %v3713_v42 }
 0x17a   : > { %v3729_v61 = vrot.slane %v3713_v42, %v5615_v11  ;;  %v4224_v60 = vcombine.low %v3736_v4, %v3744_v58  ;;  %v5074_v0 = vcombine.high %v6093_v33, %v6081_v54  ;;  %v4245_v1 = vrot.slane %v4223_v52, %v5615_v11 }
 0x17b   : > { %4534 = vst [vmem:[%s5985_s15 + $0x10] sm:$0xf] %v5113_v51  ;;  %v3615_v2 = vrot.slane %v3601_v53, %v5615_v11  ;;  %v3616_v5 = vcombine.high %v3608_v57, %v3608_v57  ;;  %v4261_v8 = vrot.slane %v4253_v47, %v5615_v11  ;;  %v4141_v15 = vcombine.low %v4119_v59, %v4126_v48  ;;  %v2443_v48 = vpop.f32.mrf.mxu0  ;;  %v4550_v53 = vld [vmem:[%s5985_s15 + $0x38] sm:$0x1] }
 0x17c   : > { %v4252_v16 = vrot.slane %v4224_v60, %v5615_v11  ;;  %v3344_v20 = vadd.f32 %v5958_v18, %v3326_v50  ;;  %v3624_v23 = vrot.slane %v3608_v57, %v5615_v11  ;;  %v2462_v54 = vadd.f32 %v6074_v6, %v5951_v10 }
 0x17d   : > { %v3617_v22 = vcombine.high %v3615_v2, %v3615_v2  ;;  %v3638_v39 = vrot.slane %v3616_v5, %v5615_v11  ;;  %v3743_v55 = vrot.slane %v3715_v43, %v5615_v11  ;;  %v3745_v24 = vcombine.high %v3729_v61, %v3729_v61 }
 0x17e   : > { %v4254_v27 = vcombine.low %v4245_v1, %v4252_v16  ;;  %v3846_v28 = vcombine.high %v3344_v20, %v3344_v20  ;;  %v3631_v29 = vrot.slane %v3615_v2, %v5615_v11  ;;  %v3746_v32 = vcombine.high %v3736_v4, %v3736_v4 }
 0x17f   : > { %v3645_v30 = vrot.slane %v3617_v22, %v5615_v11  ;;  %v4112_v17 = vcombine.low %v3624_v23, %v3638_v39  ;;  %v5075_v31 = vcombine.high %v3624_v23, %v3638_v39  ;;  %v3324_v12 = vadd.f32 %v6085_v25, %v2462_v54  ;;  %v3305_v23 = vpop.f32.mrf.mxu1 }
 0x180   : > { %v4268_v33 = vrot.slane %v4254_v27, %v5615_v11  ;;  %v3860_v34 = vrot.slane %v3846_v28, %v5615_v11  ;;  %v4133_v10 = vrot.slane %v5074_v0, %v5615_v11  ;;  %v4189_v37 = vrot.slane %v4161_v56, %v5615_v11 }
 0x181   : > { %v4140_v6 = vrot.slane %v4112_v17, %v5615_v11  ;;  %v4159_v35 = vcombine.low %v3631_v29, %v3645_v30  ;;  %v5076_v36 = vcombine.high %v3631_v29, %v3645_v30  ;;  %v4149_v38 = vrot.slane %v4141_v15, %v5615_v11 }
 0x182   : > { %v4269_v62 = vcombine.low %v4261_v8, %v4268_v33  ;;  %v4168_v63 = vrot.slane %v5075_v31, %v5615_v11  ;;  %v3875_v25 = vrot.slane %v3860_v34, %v5615_v11  ;;  %v4270_v41 = vcombine.low %v3746_v32, %v3729_v61 }
 0x183   : > { %v4142_v13 = vcombine.low %v4133_v10, %v4140_v6  ;;  %v4175_v9 = vrot.slane %v4159_v35, %v5615_v11  ;;  %v4182_v40 = vrot.slane %v5076_v36, %v5615_v11  ;;  %v4271_v44 = vcombine.low %v3743_v55, %v3745_v24  ;;  %v4545_v35 = vld [vmem:[%s5985_s15 + $0x2c] sm:$0x1] }
 0x184   : > { %v5118_v7 = vpack.c.bf16 %v4269_v62, %v4269_v62  ;;  %v3342_v14 = vadd.f32 %v5958_v18, %v3324_v12  ;;  %v4437_v46 = vrot.slane %v3875_v25, %v5615_v11  ;;  %v3853_v56 = vrot.slane %v3344_v20, %v5615_v11 }
 0x185   : > { %v4156_v26 = vrot.slane %v4142_v13, %v5615_v11  ;;  %v4190_v42 = vcombine.low %v4168_v63, %v4175_v9  ;;  %v4191_v45 = vcombine.low %v4182_v40, %v4189_v37  ;;  %v3747_v47 = vcombine.high %v3743_v55, %v3743_v55 }
 0x186   : > { %4543 = vst [vmem:[%s5985_s15 + $0x24] sm:$0xf] %v5118_v7  ;;  %v3748_v49 = vcombine.high %v3342_v14, %v3342_v14  ;;  %v3755_v21 = vrot.slane %v3342_v14, %v5615_v11  ;;  %v4444_v51 = vrot.slane %v4437_v46, %v5615_v11  ;;  %v4280_v52 = vrot.slane %v4270_v41, %v5615_v11 }
 0x187   : > { %v4157_v4 = vcombine.low %v4149_v38, %v4156_v26  ;;  %v4198_v58 = vrot.slane %v4190_v42, %v5615_v11  ;;  %v4205_v50 = vrot.slane %v4191_v45, %v5615_v11  ;;  %v2463_v0 = vadd.f32 %v2443_v48, %v5953_v19 }
 0x188   : > { %v3762_v57 = vrot.slane %v3748_v49, %v5615_v11  ;;  %v3763_v59 = vcombine.high %v3755_v21, %v3755_v21  ;;  %v5123_v61 = vpack.c.bf16 %v4444_v51, %v4444_v51  ;;  %v3771_v60 = vrot.slane %v3755_v21, %v5615_v11 }
 0x189   : > { %v4206_v43 = vcombine.low %v4198_v58, %v4205_v50  ;;  %v4287_v1 = vrot.slane %v4271_v44, %v5615_v11  ;;  %v3861_v2 = vcombine.high %v3853_v56, %v3853_v56  ;;  %v3325_v55 = vadd.f32 %v3305_v23, %v2463_v0 }
 0x18a   : > { %v3764_v5 = vcombine.high %v3762_v57, %v3762_v57  ;;  %v3785_v8 = vrot.slane %v3763_v59, %v5615_v11  ;;  %v4551_v16 = vsel %vm5980_vm3, %v5123_v61, %v4550_v53  ;;  %v3793_v20 = vcombine.high %v3771_v60, %v3771_v60 }
 0x18b   : > { %v5132_v15 = vpack.c.bf16 %v4206_v43, %v4157_v4  ;;  %v4272_v22 = vcombine.low %v3747_v47, %v3771_v60  ;;  %4552 = vst [vmem:[%s5985_s15 + $0x38] sm:$0x1] %v4551_v16  ;;  %v3882_v24 = vrot.slane %v3861_v2, %v5615_v11  ;;  %v3778_v27 = vrot.slane %v3762_v57, %v5615_v11 }
 0x18c   : > { %v3792_v39 = vrot.slane %v3764_v5, %v5615_v11  ;;  %v3795_v54 = vcombine.high %v3785_v8, %v3785_v8  ;;  %v4273_v19 = vcombine.low %v3785_v8, %v3793_v20  ;;  %v3343_v29 = vadd.f32 %v5958_v18, %v3325_v55 }
 0x18d   : > { %5139 = vst [vmem:[%s5985_s15 + $0x18] sm:$0xff] %v5132_v15   ;;  %v4302_v30 = vcombine.low %v4280_v52, %v4287_v1  ;;  %v4294_v17 = vrot.slane %v4272_v22, %v5615_v11  ;;  %v3868_v32 = vrot.slane %v3853_v56, %v5615_v11 }
 0x18e   : > { %v4325_v28 = vrot.slane %v3795_v54, %v5615_v11  ;;  %v4301_v31 = vrot.slane %v4273_v19, %v5615_v11  ;;  %v4333_v34 = vcombine.low %v3778_v27, %v3792_v39  ;;  %v3797_v12 = vcombine.high %v3343_v29, %v3343_v29 }
 0x18f   : > { %v5077_v6 = vcombine.high %v3778_v27, %v3792_v39  ;;  %v3804_v36 = vrot.slane %v3343_v29, %v5615_v11  ;;  %v4384_v37 = vcombine.low %v3868_v32, %v3882_v24  ;;  %v5080_v38 = vcombine.high %v3868_v32, %v3882_v24 }
 0x190   : > { %v4332_v33 = vrot.slane %v4325_v28, %v5615_v11  ;;  %v4303_v10 = vcombine.low %v4294_v17, %v4301_v31  ;;  %v3811_v62 = vrot.slane %v3797_v12, %v5615_v11  ;;  %v4310_v63 = vrot.slane %v4302_v30, %v5615_v11 }
 0x191   : > { %v3812_v9 = vcombine.high %v3804_v36, %v3804_v36  ;;  %v4343_v40 = vrot.slane %v4333_v34, %v5615_v11  ;;  %v4350_v7 = vrot.slane %v5077_v6, %v5615_v11  ;;  %v3820_v14 = vrot.slane %v3804_v36, %v5615_v11 }
 0x192   : > { %v5120_v18 = vpack.c.bf16 %v4332_v33, %v4332_v33  ;;  %v4317_v13 = vrot.slane %v4303_v10, %v5615_v11  ;;  %v3813_v41 = vcombine.high %v3811_v62, %v3811_v62  ;;  %v4406_v42 = vrot.slane %v4384_v37, %v5615_v11 }
 0x193   : > { %v3834_v26 = vrot.slane %v3812_v9, %v5615_v11  ;;  %v4413_v45 = vrot.slane %v5080_v38, %v5615_v11  ;;  %v3827_v46 = vrot.slane %v3811_v62, %v5615_v11  ;;  %v4365_v4 = vcombine.low %v4343_v40, %v4350_v7 }
 0x194   : > { %v4546_v25 = vsel %vm5980_vm3, %v5120_v18, %v4545_v35  ;;  %v4318_v44 = vcombine.low %v4310_v63, %v4317_v13  ;;  %v3841_v56 = vrot.slane %v3813_v41, %v5615_v11 }
 0x195   : > { %4547 = vst [vmem:[%s5985_s15 + $0x2c] sm:$0x1] %v4546_v25  ;;  %v4335_v47 = vcombine.low %v3820_v14, %v3834_v26  ;;  %v5078_v49 = vcombine.high %v3820_v14, %v3834_v26  ;;  %v4415_v51 = vcombine.low %v4406_v42, %v4413_v45  ;;  %v4373_v43 = vrot.slane %v4365_v4, %v5615_v11 }
 0x196   : > { %v5119_v3 = vpack.c.bf16 %v4318_v44, %v4318_v44  ;;  %v4382_v21 = vcombine.low %v3827_v46, %v3841_v56  ;;  %v5079_v48 = vcombine.high %v3827_v46, %v3841_v56 }
 0x197   : > { %v4357_v58 = vrot.slane %v4335_v47, %v5615_v11  ;;  %v4364_v50 = vrot.slane %v5078_v49, %v5615_v11  ;;  %v4429_v60 = vrot.slane %v4415_v51, %v5615_v11 }
 0x198   : > { %4544 = vst [vmem:[%s5985_s15 + $0x28] sm:$0xf] %v5119_v3  ;;  %v4392_v52 = vrot.slane %v4382_v21, %v5615_v11  ;;  %v4399_v53 = vrot.slane %v5079_v48, %v5615_v11 }
 0x199   : > { %v4366_v57 = vcombine.low %v4357_v58, %v4364_v50 }
 0x19a   : > { %v4414_v59 = vcombine.low %v4392_v52, %v4399_v53 }
 0x19b   : > { %v4380_v61 = vrot.slane %v4366_v57, %v5615_v11 }
 0x19c   : > { %v4422_v0 = vrot.slane %v4414_v59, %v5615_v11 }
 0x19d   : > { %v4381_v1 = vcombine.low %v4373_v43, %v4380_v61 }
 0x19e   : > { %v4430_v2 = vcombine.low %v4422_v0, %v4429_v60  ;;  %4559 = sbr.rel (!%p5569_p5) target bundleno = 483 (0x1e3), region = 40 }
 0x1a0   : > { %v5137_v5 = vpack.c.bf16 %v4430_v2, %v4381_v1 }
 0x1a2   : > { %5140 = vst [vmem:[%s5985_s15 + $0x30] sm:$0xff] %v5137_v5  }
 0x1a3   : > { %s6319_s10 = smov (!%p4562_p11, %s4561_s10), 5 }
 0x1a4   : > { %s5097_s14 = smul.u32 192, %s6319_s10 }
 0x1a5   : > { %s4572_s26 = smul.u32 3, %s6319_s10 }
 0x1a6   : > { %p5100_p12 = scmp.eq.s32.totalorder %s5097_s14, 0 }
 0x1a7   : > { %5373 = sdivrem.u32 (!%p5100_p12), %s4572_s26, 15 }
 0x1a8   : > { %4575 = sbr.rel (%p5100_p12) target bundleno = 483 (0x1e3), region = 44 }
 0x1b0   : > { %s6217_s17 = spop.drf %5373 }
 0x1b1   : > { %p5101_p13 = scmp.le.s32.totalorder %s6217_s17, 0 }
 0x1b2   : > { %s6303_s18 = smov (!%p5101_p13), %s6212_s28  ;;  %s6304_s7 = smov (!%p5101_p13), %s5985_s15 }
 0x1b3   : > { %4815 = sbr.rel (%p5101_p13) target bundleno = 458 (0x1ca), region = 122  ;;  %s6226_s29 = smov (!%p5101_p13), 0  }
 0x1b4   : > { %s6228_s5 = smov (!%p5101_p13), 0  }
 0x1b8 LB: >> { %v4593_v11 = vld [vmem:[%s5471_s7] sm:$0xf]  ;;  %v4595_v8 = vld [vmem:[%s5471_s7 + $0x4] sm:$0xf]  ;;  %v4597_v15 = vld [vmem:[%s5471_s7 + $0x8] sm:$0xf]  ;;  %s5479_s5 = sphi %s6228_s5, %s4587_s5   ;;  %s5475_s29 = sphi %s6226_s29, %s6305_s29   ;;  %s5471_s7 = sphi %s6304_s7, %s4628_s7   ;;  %s5467_s18 = sphi %s6303_s18, %s4629_s18  }
 0x1b9   : >> { %4594 = vst [vmem:[%s5467_s18] sm:$0xf] %v4593_v11  ;;  %4596 = vst [vmem:[%s5467_s18 + $0x4] sm:$0xf] %v4595_v8  ;;  %v4599_v16 = vld [vmem:[%s5471_s7 + $0xc] sm:$0xf]  ;;  %s4623_s6 = sadd.s32 1, %s5475_s29 }
 0x1ba   : >> { %4598 = vst [vmem:[%s5467_s18 + $0x8] sm:$0xf] %v4597_v15  ;;  %v4601_v20 = vld [vmem:[%s5471_s7 + $0x10] sm:$0xf]  ;;  %v4603_v22 = vld [vmem:[%s5471_s7 + $0x14] sm:$0xf]  ;;  %p4624_p0 = scmp.ge.s32.totalorder %s4623_s6, %s6217_s17 }
 0x1bb   : >> { %4600 = vst [vmem:[%s5467_s18 + $0xc] sm:$0xf] %v4599_v16  ;;  %4602 = vst [vmem:[%s5467_s18 + $0x10] sm:$0xf] %v4601_v20  ;;  %v4605_v23 = vld [vmem:[%s5471_s7 + $0x18] sm:$0xf] }
 0x1bc   : >> { %4604 = vst [vmem:[%s5467_s18 + $0x14] sm:$0xf] %v4603_v22  ;;  %v4607_v39 = vld [vmem:[%s5471_s7 + $0x1c] sm:$0xf]  ;;  %v4609_v54 = vld [vmem:[%s5471_s7 + $0x20] sm:$0xf] }
 0x1bd   : >> { %4606 = vst [vmem:[%s5467_s18 + $0x18] sm:$0xf] %v4605_v23  ;;  %4608 = vst [vmem:[%s5467_s18 + $0x1c] sm:$0xf] %v4607_v39  ;;  %v4611_v55 = vld [vmem:[%s5471_s7 + $0x24] sm:$0xf] }
 0x1be   : >> { %4610 = vst [vmem:[%s5467_s18 + $0x20] sm:$0xf] %v4609_v54  ;;  %v4613_v19 = vld [vmem:[%s5471_s7 + $0x28] sm:$0xf]  ;;  %v4615_v24 = vld [vmem:[%s5471_s7 + $0x2c] sm:$0xf] }
 0x1bf   : >> { %4612 = vst [vmem:[%s5467_s18 + $0x24] sm:$0xf] %v4611_v55  ;;  %4614 = vst [vmem:[%s5467_s18 + $0x28] sm:$0xf] %v4613_v19  ;;  %v4617_v27 = vld [vmem:[%s5471_s7 + $0x30] sm:$0xf] }
 0x1c0   : >> { %4616 = vst [vmem:[%s5467_s18 + $0x2c] sm:$0xf] %v4615_v24  ;;  %v4619_v28 = vld [vmem:[%s5471_s7 + $0x34] sm:$0xf]  ;;  %v4621_v29 = vld [vmem:[%s5471_s7 + $0x38] sm:$0xf] }
 0x1c1   : >> { %4618 = vst [vmem:[%s5467_s18 + $0x30] sm:$0xf] %v4617_v27  ;;  %4620 = vst [vmem:[%s5467_s18 + $0x34] sm:$0xf] %v4619_v28  ;;  %s6321_s6 = smov (%p4624_p0, %s4623_s6), 0  ;;  %s4587_s5 = sadd.s32 1, %s5479_s5  }
 0x1c2   : >> { %4622 = vst [vmem:[%s5467_s18 + $0x38] sm:$0xf] %v4621_v29  ;;  %s4626_s8 = smul.u32 60, %s6321_s6  ;;  %p4586_p1 = scmp.ge.s32.totalorder %s4587_s5, %s6217_s17 }
 0x1c3   : >> { %s6305_s29 = smov %s6321_s6 }
 0x1c4   : >> { %s4628_s7 = scalar_lea.vmem %s5985_s15, %s4626_s8 [#allocation2]   ;;  %s4629_s18 = scalar_lea.vmem %s6212_s28, %s4626_s8  }
 0x1c5   : > { %4589 = sbr.rel (!%p4586_p1) target bundleno = 440 (0x1b8), region = 128 }
 0x1ca PF: > { %5375 = sdivrem.u32 %s4572_s26, 15 }
 0x1cb   : > { %s5102_s9 = smul.u32 60, %s6217_s17 }
 0x1cd   : > { %s4634_s11 = scalar_lea.vmem %s5985_s15, %s5102_s9 [#allocation2]   ;;  %s4636_s12 = scalar_lea.vmem %s6212_s28, %s5102_s9  }
 0x1d3   : > { %s5376_s13 = spop.drf %5375 }
 0x1d4   : > { %p5104_p2 = scmp.le.s32.totalorder %s5376_s13, 0 }
 0x1d5   : > { %s5481_s14 = smov (!%p5104_p2), %s4636_s12   ;;  %s5485_s24 = smov (!%p5104_p2), %s4634_s11  }
 0x1d6   : > { %4829 = sbr.rel (%p5104_p2) target bundleno = 483 (0x1e3), region = 133  ;;  %s5489_s25 = smov (!%p5104_p2), 0  }
 0x1d7   : > { %s5493_s27 = smov (!%p5104_p2), 0  }
 0x1db LB: >> { %v4646_v30 = vld [vmem:[%s5487_s24] sm:$0xf]  ;;  %s4648_s10 = sadd.s32 1, %s5491_s25  ;;  %s4640_s27 = sadd.s32 1, %s5495_s27   ;;  %s5495_s27 = sphi %s5493_s27, %s4640_s27   ;;  %s5491_s25 = sphi %s5489_s25, %s5490_s25   ;;  %s5487_s24 = sphi %s5485_s24, %s4653_s24   ;;  %s5483_s14 = sphi %s5481_s14, %s4654_s14  }
 0x1dc   : >> { %4647 = vst [vmem:[%s5483_s14] sm:$0xf] %v4646_v30  ;;  %p4649_p3 = scmp.ge.s32.totalorder %s4648_s10, %s5376_s13  ;;  %p4639_p4 = scmp.ge.s32.totalorder %s4640_s27, %s5376_s13 }
 0x1de   : >> { %s6323_s10 = smov (%p4649_p3, %s4648_s10), 0  ;;  %4642 = sbr.rel (!%p4639_p4) target bundleno = 475 (0x1db), region = 139 }
 0x1df   : >> { %s5105_s15 = sshll.u32 %s6323_s10, 2  ;;  %s5490_s25 = smov %s6323_s10  }
 0x1e0   : >> { %s4653_s24 = scalar_lea.vmem %s4634_s11, %s5105_s15 [#allocation2]   ;;  %s4654_s14 = scalar_lea.vmem %s4636_s12, %s5105_s15  }
 0x1e3 PF: > { %s14_s21 = sadd.s32 1, %s5463_s21   ;;  %s6306_s15 = smov %s5443_s16 }
 0x1e4   : > { %p11_p5 = scmp.ge.s32.totalorder %s14_s21, 10   ;;  %s6307_s16 = smov %s5580_s30 }
 0x1e5   : > { %s6308_s17 = smov %s5455_s19  ;;  %s6309_s18 = smov %s5459_s20 }
 0x1e6   : > { %s6310_s19 = smov %s6313_s22  ;;  %s6311_s20 = smov %s6317_s23 }
 0x1e7   :  { %13 = sbr.rel (!%p11_p5) target bundleno = 4 (0x4), region = 150 }

// kernel: tpu_custom_call.1
= control target key start
LH: loop header
LB: loop body
LE: loop exit
PB: predicated region body
PF: predicated region fallthrough
CT: control target
= control target key end

     0   :  { %8 = vsyncpa [#allocation3], 0  ;;  %s2364_s0 = inlined_call_operand.hbm [shape: bf16[578,128], index: 0, kind: input, shape index: {}]   ;;  %s2365_s1 = inlined_call_operand.hbm [shape: bf16[128,128], index: 1, kind: input, shape index: {}]   ;;  %s2366_s2 = inlined_call_operand.vmem [shape: f32[1,128], index: 2, kind: input, shape index: {}]   ;;  %s2367_s3 = inlined_call_operand.hbm [shape: bf16[578,128], index: 3, kind: output, shape index: {}]  }
   0x1   :  { %10 = vsyncpa [#allocation3 + $0x1], 0 }
   0x2   :  { %11 = vsyncpa [#allocation6], 0 }
   0x3   :  { %12 = vsyncpa [#allocation4], 0 }
   0x4   :  { %14 = vsyncpa [#allocation4 + $0x1], 0  ;;  %s2029_s12 = smov 0   ;;  %s2031_s13 = smov 0  }
   0x5   :  { %s2033_s14 = smov 0   ;;  %s2035_s15 = smov 0  }
   0x6 LB: > { %s2050_s16 = sadd.s32 4294967295, %s1998_s15   ;;  %s1260_s17 = sadd.s32 4294967294, %s1998_s15   ;;  %s1998_s15 = sphi %s2035_s15, %s2382_s15   ;;  %s1994_s14 = sphi %s2033_s14, %s2381_s14   ;;  %s1990_s13 = sphi %s2031_s13, %s2380_s13   ;;  %s1986_s12 = sphi %s2029_s12, %s2379_s12  }
   0x7   : > { %s2054_s18 = sadd.s32 1, %s1998_s15   ;;  %s27_s19 = sadd.s32 1, %s1994_s14 }
   0x8   : > { %s24_s20 = ssub.s32 %s1998_s15, %s2054_s18  ;;  %p34_p0 = scmp.ne.s32.totalorder %s1994_s14, %s1990_s13 }
   0x9   : > { %p25_p1 = scmp.eq.s32.totalorder %s24_s20, 0  ;;  %p35_p2 = scmp.eq.s32.totalorder %s1998_s15, 0 }
   0xa   : > { %p40_p3 = scmp.ne.s32.totalorder %s1990_s13, %s1986_s12  ;;  %p41_p4 = scmp.eq.s32.totalorder %s2050_s16, 0 }
   0xb   : > { %s2066_s21 = scalar_select %p25_p1, %s1994_s14, %s27_s19  }
   0xc   : > { %p2068_p5 = por %p35_p2, %p34_p0  ;;  %p2074_p6 = por %p41_p4, %p40_p3 }
   0xd   : > { %p106_p7 = scmp.eq.s32.totalorder %s2050_s16, 1  ;;  %p112_p8 = scmp.eq.s32.totalorder %s1260_s17, 1 }
   0xe   : > { %s2371_s23 = scalar_select %p2074_p6, 1, 0 }
   0xf   : > { %p1261_p9 = scmp.ge.s32.totalorder %s1998_s15, 1  ;;  %p119_p10 = scmp.lt.s32.totalorder %s1998_s15, 3 }
  0x10   : > { %p2081_p11 = por %p106_p7, %p34_p0  ;;  %p2085_p12 = por %p112_p8, %p40_p3 }
  0x11   : > { %p2089_p13 = pnand %p1261_p9, %p119_p10  ;;  %s2000_s27 = smov [#allocation5]  }
  0x12   : > { %s2372_s24 = scalar_select %p2081_p11, 1, 0 }
  0x13   : > { %s2373_s25 = scalar_select %p2085_p12, 1, 0 }
  0x14   : > { %p1788_p1 = pneg %p2089_p13  ;;  %s131_s28 = sshll.u32 %s2000_s27, 4  ;;  %s132_s28 = int_to_ptr.vmem [resolvable:$true] %s131_s28 }
  0x15   : > { %s1889_s29 = scalar_lea.vmem %s132_s28, 1024  ;;  %p1897_p8 = scmp.lt.s32.totalorder %s132_s28, %s132_s28 }
  0x16   : > { %p1789_p2 = pnand %p1788_p1, %p41_p4  ;;  %p1890_p7 = scmp.ne.s32.totalorder %s132_s28, %s1889_s29 }
  0x17   : > { %p1898_p6 = scmp.lt.s32.totalorder %s1889_s29, %s1889_s29 }
  0x18   : > { %p1880_p0 = pneg %p1789_p2 }
  0x19   : > { %p1899_p12 = por %p1898_p6, %p1897_p8 }
  0x1a   : > { %p1892_p11 = pnand %p1890_p7, %p1880_p0 }
  0x1c   : > { %p1893_p3 = pneg %p1892_p11 }
  0x1e   : > { %p1900_p9 = pnand %p1899_p12, %p1893_p3 }
  0x20   : > { %1903 = shalt.err (!%p1900_p9)
}
  0x21   : > { %s2001_s30 = smov 64   ;;  %s2002_s4 = smov 4  }
  0x22   : > { %1791 = dma.hbm_to_vmem [thread:$0]  (!%p1789_p2), %s2365_s1, 1024, %s132_s28, [#allocation6], %s2001_s30, %s2001_s30, %s2002_s4  }
  0x23   : > { %p2369_p10 = scmp.ge.s32.totalorder %s1998_s15, 2 }
  0x25   : > { %144 = sbr.rel (%p2369_p10) target bundleno = 74 (0x4a), region = 24 }
  0x2a   : > { %147 = sbr.rel (!%p2068_p5) target bundleno = 74 (0x4a), region = 28  ;;  %s148_s7 = sand.u32 (%p2068_p5), 1, %s1994_s14  }
  0x2b   : > { %s1265_s8 = sshll.u32 (%p2068_p5), %s1998_s15, 6  ;;  %s1264_s9 = sshll.u32 (%p2068_p5), %s148_s7, 8 }
  0x2c   : > { %s154_s10 = ssub.s32 (%p2068_p5), 73, %s1265_s8  ;;  %s2110_s19 = scalar_lea.sflag (%p2068_p5), [#allocation3], %s148_s7 }
  0x2d   : > { %p155_p6 = scmp.lt.s32.totalorder (%p2068_p5), %s154_s10, 64  ;;  %s152_s20 = scalar_lea.vmem (%p2068_p5), [#allocation2], %s1264_s9 }
  0x2f   : > { %s2384_s10 = smov (!%p155_p6, %s154_s10), 64 }
  0x30   : > { %s2107_s11 = sshll.u32 %s2384_s10, 6 }
  0x31   : > { %s159_s17 = ssub.s32 4096, %s2107_s11 }
  0x32   : > { %160 = vsyncadd %s2110_s19, %s159_s17  ;;  %p1267_p5 = scmp.ne.s32.totalorder %s2107_s11, 0  ;;  %s1389_s22 = sshll.u32 %s1998_s15, 12 }
  0x33   : > { %s2118_s29 = scalar_lea.hbm %s2364_s0, %s1389_s22  ;;  %s165_s30 = sshll.u32 %s152_s20, 4  ;;  %s2120_s30 = int_to_ptr.vmem [resolvable:$true] %s165_s30 }
  0x34   : > { %s1904_s4 = scalar_lea.hbm %s2118_s29, %s2107_s11  ;;  %s1908_s7 = scalar_lea.hbm %s2364_s0, 4672 }
  0x35   : > { %p1905_p11 = scmp.ne.s32.totalorder %s2118_s29, %s1904_s4  ;;  %p1909_p2 = scmp.lt.s32.totalorder %s2118_s29, %s2364_s0 }
  0x36   : > { %p1910_p0 = scmp.lt.s32.totalorder %s1908_s7, %s1904_s4 }
  0x37   : > { %p1906_p12 = pnand %p1905_p11, %p1267_p5 }
  0x38   : > { %p1911_p7 = por %p1910_p0, %p1909_p2 }
  0x39   : > { %p1907_p1 = pneg %p1906_p12 }
  0x3b   : > { %p1912_p3 = pnand %p1911_p7, %p1907_p1 }
  0x3d   : > { %1915 = shalt.err (!%p1912_p3)
}
  0x3e   : > { %s1916_s10 = scalar_lea.vmem %s2120_s30, %s2107_s11  ;;  %s2003_s17 = smov [#allocation2]  }
  0x3f   : > { %p1917_p8 = scmp.ne.s32.totalorder %s2120_s30, %s1916_s10  ;;  %s1920_s20 = sshll.u32 %s2003_s17, 4  ;;  %s1921_s20 = int_to_ptr.vmem [resolvable:$false] %s1920_s20 }
  0x40   : > { %s1922_s22 = scalar_lea.vmem %s1921_s20, 8192  ;;  %p1923_p11 = scmp.lt.s32.totalorder %s2120_s30, %s1921_s20 }
  0x41   : > { %p1918_p9 = pnand %p1917_p8, %p1267_p5  ;;  %p1924_p12 = scmp.lt.s32.totalorder %s1922_s22, %s1916_s10 }
  0x43   : > { %p1919_p6 = pneg %p1918_p9  ;;  %p1925_p10 = por %p1924_p12, %p1923_p11 }
  0x45   : > { %p1926_p2 = pnand %p1925_p10, %p1919_p6 }
  0x47   : > { %1929 = shalt.err (!%p1926_p2)
}
  0x48   : > { %s2004_s27 = smov 64   ;;  %s2005_s28 = smov 4  }
  0x49   : > { %171 = dma.hbm_to_vmem [thread:$0]  (%p1267_p5), %s2118_s29, %s2107_s11, %s2120_s30, %s2110_s19, %s2004_s27, %s2004_s27, %s2005_s28  }
  0x4a PF: > { %177 = sbr.rel (%p2089_p13) target bundleno = 402 (0x192), region = 32  ;;  %s2149_s4 = sand.u32 (!%p2089_p13), 1, %s1990_s13  }
  0x4b   : > { %s1272_s5 = sshll.u32 (!%p2089_p13), %s2149_s4, 8  ;;  %s180_s6 = scalar_lea.sflag (!%p2089_p13), [#allocation3], %s2149_s4 }
  0x4c   : > { %s2155_s7 = scalar_lea.vmem (!%p2089_p13), [#allocation2], %s1272_s5  ;;  %p2375_p10 = scmp.ne.s32.totalorder (!%p2089_p13), %s2371_s23, 0 }
  0x4f   : > { %1973 = dma.done.wait (%p2375_p10), %s180_s6, 4096  }
  0x50   : > { %1975 = vsyncadd (%p2375_p10), %s180_s6, 4294963200 }
  0x51   : > { %1977 = dma.done.wait (%p41_p4), [#allocation6], 1024  }
  0x52   : > { %1979 = vsyncadd (%p41_p4), [#allocation6], 4294966272  ;;  %v1838_v0 = vld [vmem:[#allocation5 + $0x38] sm:$0xff]   ;;  %v1839_v1 = vld [vmem:[#allocation5 + $0x30] sm:$0xff]   ;;  %s2212_s11 = scalar_lea.vmem [#allocation7], %s1272_s5  ;;  %s1158_s19 = scalar_lea.sflag [#allocation4], %s2149_s4 }
  0x53   : > { %1686 = vmatprep.subr.bf16.mxu0 %v1838_v0  ;;  %1766 = vmatprep.subr.bf16.mxu1 %v1838_v0  ;;  %v1840_v2 = vld [vmem:[#allocation5 + $0x28] sm:$0xff]   ;;  %v1841_v3 = vld [vmem:[#allocation5 + $0x20] sm:$0xff]   ;;  %v1842_v6 = vld [vmem:[#allocation5 + $0x18] sm:$0xff]   ;;  %p2376_p4 = scmp.ne.s32.totalorder %s2372_s24, 0 }
  0x54   : > { %1687 = vmatpush3.bf16.msra.mxu0 %v1838_v0  ;;  %1774 = vmatpush3.bf16.msra.mxu1 %v1838_v0  ;;  %v1846_v4 = vld [vmem:[%s2155_s7] sm:$0xff]   ;;  %v1843_v7 = vld [vmem:[#allocation5 + $0x10] sm:$0xff]   ;;  %v1844_v8 = vld [vmem:[#allocation5 + $0x8] sm:$0xff]   ;;  %s1381_s29 = sshll.u32 (%p2376_p4), %s2050_s16, 6 }
  0x55   : > { %1688 = vmatprep.subr.bf16.mxu0 %v1839_v1  ;;  %1767 = vmatprep.subr.bf16.mxu1 %v1839_v1  ;;  %v1847_v5 = vld [vmem:[%s2155_s7 + $0x80] sm:$0xff]   ;;  %v1848_v10 = vld [vmem:[%s2155_s7 + $0x8] sm:$0xff]   ;;  %v1850_v12 = vld [vmem:[%s2155_s7 + $0x10] sm:$0xff]   ;;  %s1166_s30 = ssub.s32 (%p2376_p4), 73, %s1381_s29 }
  0x56   : > { %1702 = vmatprep.mubr.bf16.mxu0 %v1846_v4  ;;  %1734 = vmatprep.mubr.bf16.mxu1 %v1847_v5  ;;  %v1845_v9 = vld [vmem:[#allocation5] sm:$0xff]   ;;  %v1849_v11 = vld [vmem:[%s2155_s7 + $0x88] sm:$0xff]   ;;  %v1851_v13 = vld [vmem:[%s2155_s7 + $0x90] sm:$0xff]   ;;  %p1167_p13 = scmp.lt.s32.totalorder (%p2376_p4), %s1166_s30, 64 }
  0x57   : > { %v1852_v14 = vld [vmem:[%s2155_s7 + $0x18] sm:$0xff]   ;;  %v1854_v16 = vld [vmem:[%s2155_s7 + $0x20] sm:$0xff]   ;;  %v1856_v18 = vld [vmem:[%s2155_s7 + $0x28] sm:$0xff]  }
  0x58   : > { %1689 = vmatpush3.bf16.msra.mxu0 %v1839_v1  ;;  %1775 = vmatpush3.bf16.msra.mxu1 %v1839_v1  ;;  %v1853_v15 = vld [vmem:[%s2155_s7 + $0x98] sm:$0xff]   ;;  %v1855_v17 = vld [vmem:[%s2155_s7 + $0xa0] sm:$0xff]   ;;  %v1857_v19 = vld [vmem:[%s2155_s7 + $0xa8] sm:$0xff]  }
  0x59   : > { %1690 = vmatprep.subr.bf16.mxu0 %v1840_v2  ;;  %1768 = vmatprep.subr.bf16.mxu1 %v1840_v2  ;;  %v1858_v20 = vld [vmem:[%s2155_s7 + $0x30] sm:$0xff]   ;;  %v1860_v22 = vld [vmem:[%s2155_s7 + $0x38] sm:$0xff]   ;;  %v1862_v24 = vld [vmem:[%s2155_s7 + $0x40] sm:$0xff]  }
  0x5a   : > { %v1859_v21 = vld [vmem:[%s2155_s7 + $0xb0] sm:$0xff]   ;;  %v1861_v23 = vld [vmem:[%s2155_s7 + $0xb8] sm:$0xff]   ;;  %v1863_v25 = vld [vmem:[%s2155_s7 + $0xc0] sm:$0xff]  }
  0x5b   : > { %v1864_v26 = vld [vmem:[%s2155_s7 + $0x48] sm:$0xff]   ;;  %v1866_v28 = vld [vmem:[%s2155_s7 + $0x50] sm:$0xff]   ;;  %v1868_v30 = vld [vmem:[%s2155_s7 + $0x58] sm:$0xff]  }
  0x5c   : > { %1691 = vmatpush3.bf16.msra.mxu0 %v1840_v2  ;;  %1776 = vmatpush3.bf16.msra.mxu1 %v1840_v2  ;;  %v1865_v27 = vld [vmem:[%s2155_s7 + $0xc8] sm:$0xff]   ;;  %v1867_v29 = vld [vmem:[%s2155_s7 + $0xd0] sm:$0xff]   ;;  %v1869_v31 = vld [vmem:[%s2155_s7 + $0xd8] sm:$0xff]  }
  0x5d   : > { %1692 = vmatprep.subr.bf16.mxu0 %v1841_v3  ;;  %1769 = vmatprep.subr.bf16.mxu1 %v1841_v3  ;;  %v1870_v32 = vld [vmem:[%s2155_s7 + $0x60] sm:$0xff]   ;;  %v1872_v34 = vld [vmem:[%s2155_s7 + $0x68] sm:$0xff]   ;;  %v1874_v36 = vld [vmem:[%s2155_s7 + $0x70] sm:$0xff]  }
  0x5e   : > { %v1871_v33 = vld [vmem:[%s2155_s7 + $0xe0] sm:$0xff]   ;;  %v1873_v35 = vld [vmem:[%s2155_s7 + $0xe8] sm:$0xff]   ;;  %v1875_v37 = vld [vmem:[%s2155_s7 + $0xf0] sm:$0xff]  }
  0x5f   : > { %v1876_v38 = vld [vmem:[%s2155_s7 + $0x78] sm:$0xff]   ;;  %v2200_v42 = vld [vmem:[%s2366_s2] ss:$0 sm:$0xff] }
  0x60   : > { %1693 = vmatpush3.bf16.msra.mxu0 %v1841_v3  ;;  %1777 = vmatpush3.bf16.msra.mxu1 %v1841_v3  ;;  %v1877_v39 = vld [vmem:[%s2155_s7 + $0xf8] sm:$0xff]  }
  0x61   : > { %1694 = vmatprep.subr.bf16.mxu0 %v1842_v6  ;;  %1770 = vmatprep.subr.bf16.mxu1 %v1842_v6 }
  0x64   : > { %1695 = vmatpush3.bf16.msra.mxu0 %v1842_v6  ;;  %1778 = vmatpush3.bf16.msra.mxu1 %v1842_v6 }
  0x65   : > { %1696 = vmatprep.subr.bf16.mxu0 %v1843_v7  ;;  %1771 = vmatprep.subr.bf16.mxu1 %v1843_v7 }
  0x68   : > { %1697 = vmatpush3.bf16.msra.mxu0 %v1843_v7  ;;  %1779 = vmatpush3.bf16.msra.mxu1 %v1843_v7 }
  0x69   : > { %1698 = vmatprep.subr.bf16.mxu0 %v1844_v8  ;;  %1772 = vmatprep.subr.bf16.mxu1 %v1844_v8 }
  0x6c   : > { %1699 = vmatpush3.bf16.msra.mxu0 %v1844_v8  ;;  %1780 = vmatpush3.bf16.msra.mxu1 %v1844_v8 }
  0x6d   : > { %1700 = vmatprep.subr.bf16.mxu0 %v1845_v9  ;;  %1773 = vmatprep.subr.bf16.mxu1 %v1845_v9 }
  0x70   : > { %1701 = vmatpush3.bf16.msra.mxu0 %v1845_v9  ;;  %1781 = vmatpush3.bf16.msra.mxu1 %v1845_v9 }
  0x73   : > { %1703 = vmatmul.mubr.bf16.vlgmr.msra.gmra.mxu0 %v1848_v10  ;;  %1735 = vmatmul.mubr.bf16.vlgmr.msra.gmra.mxu1 %v1849_v11 }
  0x74   : > { %1706 = vmatprep.mubr.bf16.mxu0 %v1850_v12  ;;  %1738 = vmatprep.mubr.bf16.mxu1 %v1851_v13 }
  0x7b   : > { %1707 = vmatmul.mubr.bf16.gmra.mxu0 %v1852_v14  ;;  %1739 = vmatmul.mubr.bf16.gmra.mxu1 %v1853_v15 }
  0x7c   : > { %1710 = vmatprep.mubr.bf16.mxu0 %v1854_v16  ;;  %1742 = vmatprep.mubr.bf16.mxu1 %v1855_v17 }
  0x83   : > { %1711 = vmatmul.mubr.bf16.gmra.mxu0 %v1856_v18  ;;  %1743 = vmatmul.mubr.bf16.gmra.mxu1 %v1857_v19 }
  0x84   : > { %1714 = vmatprep.mubr.bf16.mxu0 %v1858_v20  ;;  %1746 = vmatprep.mubr.bf16.mxu1 %v1859_v21 }
  0x8b   : > { %1715 = vmatmul.mubr.bf16.gmra.mxu0 %v1860_v22  ;;  %1747 = vmatmul.mubr.bf16.gmra.mxu1 %v1861_v23 }
  0x8c   : > { %1718 = vmatprep.mubr.bf16.mxu0 %v1862_v24  ;;  %1750 = vmatprep.mubr.bf16.mxu1 %v1863_v25 }
  0x93   : > { %1719 = vmatmul.mubr.bf16.gmra.mxu0 %v1864_v26  ;;  %1751 = vmatmul.mubr.bf16.gmra.mxu1 %v1865_v27 }
  0x94   : > { %1722 = vmatprep.mubr.bf16.mxu0 %v1866_v28  ;;  %1754 = vmatprep.mubr.bf16.mxu1 %v1867_v29 }
  0x9b   : > { %1723 = vmatmul.mubr.bf16.gmra.mxu0 %v1868_v30  ;;  %1755 = vmatmul.mubr.bf16.gmra.mxu1 %v1869_v31 }
  0x9c   : > { %1726 = vmatprep.mubr.bf16.mxu0 %v1870_v32  ;;  %1758 = vmatprep.mubr.bf16.mxu1 %v1871_v33 }
  0xa3   : > { %1727 = vmatmul.mubr.bf16.gmra.mxu0 %v1872_v34  ;;  %1759 = vmatmul.mubr.bf16.gmra.mxu1 %v1873_v35 }
  0xa4   : > { %1730 = vmatprep.mubr.bf16.mxu0 %v1874_v36  ;;  %1762 = vmatprep.mubr.bf16.mxu1 %v1875_v37 }
  0xab   : > { %1731 = vmatmul.mubr.bf16.gmra.mxu0 %v1876_v38  ;;  %1763 = vmatmul.mubr.bf16.gmra.mxu1 %v1877_v39 }
 0x133   : > { %v1704_v40 = vpop.f32.mrf.mxu0  ;;  %v1736_v41 = vpop.f32.mrf.mxu1 }
 0x134   : > { %v591_v47 = vadd.f32 %v1704_v40, %v2200_v42  ;;  %v719_v48 = vadd.f32 %v1736_v41, %v2200_v42 }
 0x135   : > { %v582_v43 = vpop.f32.mrf.mxu0  ;;  %v710_v44 = vpop.f32.mrf.mxu1 }
 0x136   : > { %v583_v51 = vadd.f32 %v2200_v42, %v582_v43  ;;  %v711_v52 = vadd.f32 %v2200_v42, %v710_v44 }
 0x137   : > { %v1705_v45 = vpop.f32.mrf.mxu0  ;;  %v1737_v46 = vpop.f32.mrf.mxu1 }
 0x138   : > { %v594_v49 = vadd.f32 %v1705_v45, %v2200_v42  ;;  %v722_v50 = vadd.f32 %v1737_v46, %v2200_v42 }
 0x139   : > { %v585_v53 = vpop.f32.mrf.mxu0  ;;  %v713_v54 = vpop.f32.mrf.mxu1 }
 0x13a   : > { %v1463_v55 = vpack.c.bf16 %v594_v49, %v591_v47  ;;  %v1543_v56 = vpack.c.bf16 %v722_v50, %v719_v48  ;;  %v586_v57 = vadd.f32 %v2200_v42, %v585_v53  ;;  %v714_v58 = vadd.f32 %v2200_v42, %v713_v54 }
 0x13b   : > { %v1708_v59 = vpop.f32.mrf.mxu0  ;;  %v1740_v60 = vpop.f32.mrf.mxu1 }
 0x13c   : > { %1615 = vst [vmem:[%s2212_s11 + $0x8] sm:$0xff] %v1463_v55   ;;  %1631 = vst [vmem:[%s2212_s11 + $0x88] sm:$0xff] %v1543_v56   ;;  %v1458_v61 = vpack.c.bf16 %v586_v57, %v583_v51  ;;  %v1538_v62 = vpack.c.bf16 %v714_v58, %v711_v52  ;;  %v607_v3 = vadd.f32 %v1708_v59, %v2200_v42 }
 0x13d   : > { %v598_v63 = vpop.f32.mrf.mxu0  ;;  %v726_v0 = vpop.f32.mrf.mxu1  ;;  %v735_v4 = vadd.f32 %v1740_v60, %v2200_v42 }
 0x13e   : > { %1459 = vst [vmem:[%s2212_s11] sm:$0xff] %v1458_v61   ;;  %1630 = vst [vmem:[%s2212_s11 + $0x80] sm:$0xff] %v1538_v62   ;;  %v599_v7 = vadd.f32 %v2200_v42, %v598_v63  ;;  %v727_v8 = vadd.f32 %v2200_v42, %v726_v0 }
 0x13f   : > { %v1709_v1 = vpop.f32.mrf.mxu0  ;;  %v1741_v2 = vpop.f32.mrf.mxu1 }
 0x140   : > { %v610_v5 = vadd.f32 %v1709_v1, %v2200_v42  ;;  %v738_v6 = vadd.f32 %v1741_v2, %v2200_v42 }
 0x141   : > { %v601_v9 = vpop.f32.mrf.mxu0  ;;  %v729_v10 = vpop.f32.mrf.mxu1 }
 0x142   : > { %v1473_v11 = vpack.c.bf16 %v610_v5, %v607_v3  ;;  %v1553_v12 = vpack.c.bf16 %v738_v6, %v735_v4  ;;  %v602_v13 = vadd.f32 %v2200_v42, %v601_v9  ;;  %v730_v14 = vadd.f32 %v2200_v42, %v729_v10 }
 0x143   : > { %v1712_v15 = vpop.f32.mrf.mxu0  ;;  %v1744_v16 = vpop.f32.mrf.mxu1 }
 0x144   : > { %1617 = vst [vmem:[%s2212_s11 + $0x18] sm:$0xff] %v1473_v11   ;;  %1633 = vst [vmem:[%s2212_s11 + $0x98] sm:$0xff] %v1553_v12   ;;  %v1468_v17 = vpack.c.bf16 %v602_v13, %v599_v7  ;;  %v1548_v18 = vpack.c.bf16 %v730_v14, %v727_v8  ;;  %v623_v23 = vadd.f32 %v1712_v15, %v2200_v42 }
 0x145   : > { %v614_v19 = vpop.f32.mrf.mxu0  ;;  %v742_v20 = vpop.f32.mrf.mxu1  ;;  %v751_v24 = vadd.f32 %v1744_v16, %v2200_v42 }
 0x146   : > { %1616 = vst [vmem:[%s2212_s11 + $0x10] sm:$0xff] %v1468_v17   ;;  %1632 = vst [vmem:[%s2212_s11 + $0x90] sm:$0xff] %v1548_v18   ;;  %v615_v27 = vadd.f32 %v2200_v42, %v614_v19  ;;  %v743_v28 = vadd.f32 %v2200_v42, %v742_v20 }
 0x147   : > { %v1713_v21 = vpop.f32.mrf.mxu0  ;;  %v1745_v22 = vpop.f32.mrf.mxu1 }
 0x148   : > { %v626_v25 = vadd.f32 %v1713_v21, %v2200_v42  ;;  %v754_v26 = vadd.f32 %v1745_v22, %v2200_v42 }
 0x149   : > { %v617_v29 = vpop.f32.mrf.mxu0  ;;  %v745_v30 = vpop.f32.mrf.mxu1 }
 0x14a   : > { %v1483_v31 = vpack.c.bf16 %v626_v25, %v623_v23  ;;  %v1563_v32 = vpack.c.bf16 %v754_v26, %v751_v24  ;;  %v618_v33 = vadd.f32 %v2200_v42, %v617_v29  ;;  %v746_v34 = vadd.f32 %v2200_v42, %v745_v30 }
 0x14b   : > { %v1716_v35 = vpop.f32.mrf.mxu0  ;;  %v1748_v36 = vpop.f32.mrf.mxu1 }
 0x14c   : > { %1619 = vst [vmem:[%s2212_s11 + $0x28] sm:$0xff] %v1483_v31   ;;  %1635 = vst [vmem:[%s2212_s11 + $0xa8] sm:$0xff] %v1563_v32   ;;  %v1478_v37 = vpack.c.bf16 %v618_v33, %v615_v27  ;;  %v1558_v38 = vpack.c.bf16 %v746_v34, %v743_v28  ;;  %v639_v44 = vadd.f32 %v1716_v35, %v2200_v42 }
 0x14d   : > { %v630_v39 = vpop.f32.mrf.mxu0  ;;  %v758_v40 = vpop.f32.mrf.mxu1  ;;  %v767_v45 = vadd.f32 %v1748_v36, %v2200_v42 }
 0x14e   : > { %1618 = vst [vmem:[%s2212_s11 + $0x20] sm:$0xff] %v1478_v37   ;;  %1634 = vst [vmem:[%s2212_s11 + $0xa0] sm:$0xff] %v1558_v38   ;;  %v631_v48 = vadd.f32 %v2200_v42, %v630_v39  ;;  %v759_v49 = vadd.f32 %v2200_v42, %v758_v40 }
 0x14f   : > { %v1717_v41 = vpop.f32.mrf.mxu0  ;;  %v1749_v43 = vpop.f32.mrf.mxu1 }
 0x150   : > { %v642_v46 = vadd.f32 %v1717_v41, %v2200_v42  ;;  %v770_v47 = vadd.f32 %v1749_v43, %v2200_v42 }
 0x151   : > { %v633_v50 = vpop.f32.mrf.mxu0  ;;  %v761_v51 = vpop.f32.mrf.mxu1 }
 0x152   : > { %v1493_v52 = vpack.c.bf16 %v642_v46, %v639_v44  ;;  %v1573_v53 = vpack.c.bf16 %v770_v47, %v767_v45  ;;  %v634_v54 = vadd.f32 %v2200_v42, %v633_v50  ;;  %v762_v55 = vadd.f32 %v2200_v42, %v761_v51 }
 0x153   : > { %v1720_v56 = vpop.f32.mrf.mxu0  ;;  %v1752_v57 = vpop.f32.mrf.mxu1 }
 0x154   : > { %1621 = vst [vmem:[%s2212_s11 + $0x38] sm:$0xff] %v1493_v52   ;;  %1637 = vst [vmem:[%s2212_s11 + $0xb8] sm:$0xff] %v1573_v53   ;;  %v1488_v58 = vpack.c.bf16 %v634_v54, %v631_v48  ;;  %v1568_v59 = vpack.c.bf16 %v762_v55, %v759_v49  ;;  %v655_v0 = vadd.f32 %v1720_v56, %v2200_v42 }
 0x155   : > { %v646_v60 = vpop.f32.mrf.mxu0  ;;  %v774_v61 = vpop.f32.mrf.mxu1  ;;  %v783_v1 = vadd.f32 %v1752_v57, %v2200_v42 }
 0x156   : > { %1620 = vst [vmem:[%s2212_s11 + $0x30] sm:$0xff] %v1488_v58   ;;  %1636 = vst [vmem:[%s2212_s11 + $0xb0] sm:$0xff] %v1568_v59   ;;  %v647_v4 = vadd.f32 %v2200_v42, %v646_v60  ;;  %v775_v5 = vadd.f32 %v2200_v42, %v774_v61 }
 0x157   : > { %v1721_v62 = vpop.f32.mrf.mxu0  ;;  %v1753_v63 = vpop.f32.mrf.mxu1 }
 0x158   : > { %v658_v2 = vadd.f32 %v1721_v62, %v2200_v42  ;;  %v786_v3 = vadd.f32 %v1753_v63, %v2200_v42 }
 0x159   : > { %v649_v6 = vpop.f32.mrf.mxu0  ;;  %v777_v7 = vpop.f32.mrf.mxu1 }
 0x15a   : > { %v1503_v8 = vpack.c.bf16 %v658_v2, %v655_v0  ;;  %v1583_v9 = vpack.c.bf16 %v786_v3, %v783_v1  ;;  %v650_v10 = vadd.f32 %v2200_v42, %v649_v6  ;;  %v778_v11 = vadd.f32 %v2200_v42, %v777_v7 }
 0x15b   : > { %v1724_v12 = vpop.f32.mrf.mxu0  ;;  %v1756_v13 = vpop.f32.mrf.mxu1 }
 0x15c   : > { %1623 = vst [vmem:[%s2212_s11 + $0x48] sm:$0xff] %v1503_v8   ;;  %1639 = vst [vmem:[%s2212_s11 + $0xc8] sm:$0xff] %v1583_v9   ;;  %v1498_v14 = vpack.c.bf16 %v650_v10, %v647_v4  ;;  %v1578_v15 = vpack.c.bf16 %v778_v11, %v775_v5  ;;  %v671_v20 = vadd.f32 %v1724_v12, %v2200_v42 }
 0x15d   : > { %v662_v16 = vpop.f32.mrf.mxu0  ;;  %v790_v17 = vpop.f32.mrf.mxu1  ;;  %v799_v21 = vadd.f32 %v1756_v13, %v2200_v42 }
 0x15e   : > { %1622 = vst [vmem:[%s2212_s11 + $0x40] sm:$0xff] %v1498_v14   ;;  %1638 = vst [vmem:[%s2212_s11 + $0xc0] sm:$0xff] %v1578_v15   ;;  %v663_v24 = vadd.f32 %v2200_v42, %v662_v16  ;;  %v791_v25 = vadd.f32 %v2200_v42, %v790_v17 }
 0x15f   : > { %v1725_v18 = vpop.f32.mrf.mxu0  ;;  %v1757_v19 = vpop.f32.mrf.mxu1 }
 0x160   : > { %v674_v22 = vadd.f32 %v1725_v18, %v2200_v42  ;;  %v802_v23 = vadd.f32 %v1757_v19, %v2200_v42 }
 0x161   : > { %v665_v26 = vpop.f32.mrf.mxu0  ;;  %v793_v27 = vpop.f32.mrf.mxu1 }
 0x162   : > { %v1513_v28 = vpack.c.bf16 %v674_v22, %v671_v20  ;;  %v1593_v29 = vpack.c.bf16 %v802_v23, %v799_v21  ;;  %v666_v30 = vadd.f32 %v2200_v42, %v665_v26  ;;  %v794_v31 = vadd.f32 %v2200_v42, %v793_v27 }
 0x163   : > { %v1728_v32 = vpop.f32.mrf.mxu0  ;;  %v1760_v33 = vpop.f32.mrf.mxu1 }
 0x164   : > { %1625 = vst [vmem:[%s2212_s11 + $0x58] sm:$0xff] %v1513_v28   ;;  %1641 = vst [vmem:[%s2212_s11 + $0xd8] sm:$0xff] %v1593_v29   ;;  %v1508_v34 = vpack.c.bf16 %v666_v30, %v663_v24  ;;  %v1588_v35 = vpack.c.bf16 %v794_v31, %v791_v25  ;;  %v687_v40 = vadd.f32 %v1728_v32, %v2200_v42 }
 0x165   : > { %v678_v36 = vpop.f32.mrf.mxu0  ;;  %v806_v37 = vpop.f32.mrf.mxu1  ;;  %v815_v41 = vadd.f32 %v1760_v33, %v2200_v42 }
 0x166   : > { %1624 = vst [vmem:[%s2212_s11 + $0x50] sm:$0xff] %v1508_v34   ;;  %1640 = vst [vmem:[%s2212_s11 + $0xd0] sm:$0xff] %v1588_v35   ;;  %v679_v45 = vadd.f32 %v2200_v42, %v678_v36  ;;  %v807_v46 = vadd.f32 %v2200_v42, %v806_v37 }
 0x167   : > { %v1729_v38 = vpop.f32.mrf.mxu0  ;;  %v1761_v39 = vpop.f32.mrf.mxu1 }
 0x168   : > { %v690_v43 = vadd.f32 %v1729_v38, %v2200_v42  ;;  %v818_v44 = vadd.f32 %v1761_v39, %v2200_v42 }
 0x169   : > { %v681_v47 = vpop.f32.mrf.mxu0  ;;  %v809_v48 = vpop.f32.mrf.mxu1 }
 0x16a   : > { %v1523_v49 = vpack.c.bf16 %v690_v43, %v687_v40  ;;  %v1603_v50 = vpack.c.bf16 %v818_v44, %v815_v41  ;;  %v682_v51 = vadd.f32 %v2200_v42, %v681_v47  ;;  %v810_v52 = vadd.f32 %v2200_v42, %v809_v48 }
 0x16b   : > { %v1732_v53 = vpop.f32.mrf.mxu0  ;;  %v1764_v54 = vpop.f32.mrf.mxu1 }
 0x16c   : > { %1627 = vst [vmem:[%s2212_s11 + $0x68] sm:$0xff] %v1523_v49   ;;  %1643 = vst [vmem:[%s2212_s11 + $0xe8] sm:$0xff] %v1603_v50   ;;  %v1518_v55 = vpack.c.bf16 %v682_v51, %v679_v45  ;;  %v1598_v56 = vpack.c.bf16 %v810_v52, %v807_v46  ;;  %v703_v61 = vadd.f32 %v1732_v53, %v2200_v42 }
 0x16d   : > { %v694_v57 = vpop.f32.mrf.mxu0  ;;  %v822_v58 = vpop.f32.mrf.mxu1  ;;  %v831_v62 = vadd.f32 %v1764_v54, %v2200_v42 }
 0x16e   : > { %1626 = vst [vmem:[%s2212_s11 + $0x60] sm:$0xff] %v1518_v55   ;;  %1642 = vst [vmem:[%s2212_s11 + $0xe0] sm:$0xff] %v1598_v56   ;;  %v695_v1 = vadd.f32 %v2200_v42, %v694_v57  ;;  %v823_v2 = vadd.f32 %v2200_v42, %v822_v58 }
 0x16f   : > { %v1733_v59 = vpop.f32.mrf.mxu0  ;;  %v1765_v60 = vpop.f32.mrf.mxu1 }
 0x170   : > { %v706_v63 = vadd.f32 %v1733_v59, %v2200_v42  ;;  %v834_v0 = vadd.f32 %v1765_v60, %v2200_v42 }
 0x171   : > { %v697_v3 = vpop.f32.mrf.mxu0  ;;  %v825_v4 = vpop.f32.mrf.mxu1 }
 0x172   : > { %v1533_v5 = vpack.c.bf16 %v706_v63, %v703_v61  ;;  %v1613_v6 = vpack.c.bf16 %v834_v0, %v831_v62  ;;  %v698_v7 = vadd.f32 %v2200_v42, %v697_v3  ;;  %v826_v8 = vadd.f32 %v2200_v42, %v825_v4  ;;  %1164 = sbr.rel (!%p2376_p4) target bundleno = 402 (0x192), region = 44 }
 0x174   : > { %1629 = vst [vmem:[%s2212_s11 + $0x78] sm:$0xff] %v1533_v5   ;;  %1645 = vst [vmem:[%s2212_s11 + $0xf8] sm:$0xff] %v1613_v6   ;;  %v1528_v9 = vpack.c.bf16 %v698_v7, %v695_v1  ;;  %v1608_v10 = vpack.c.bf16 %v826_v8, %v823_v2 }
 0x176   : > { %1628 = vst [vmem:[%s2212_s11 + $0x70] sm:$0xff] %v1528_v9   ;;  %1644 = vst [vmem:[%s2212_s11 + $0xf0] sm:$0xff] %v1608_v10  }
 0x177   : > { %s2386_s30 = smov (!%p1167_p13, %s1166_s30), 64 }
 0x178   : > { %s2306_s8 = sshll.u32 %s2386_s30, 6 }
 0x179   : > { %s1171_s9 = ssub.s32 4096, %s2306_s8 }
 0x17a   : > { %1172 = vsyncadd %s1158_s19, %s1171_s9  ;;  %p1383_p5 = scmp.ne.s32.totalorder %s2306_s8, 0  ;;  %s1454_s24 = sshll.u32 %s2050_s16, 12 }
 0x17b   : > { %s2316_s20 = scalar_lea.hbm %s2367_s3, %s1454_s24  ;;  %s1177_s22 = sshll.u32 %s2212_s11, 4  ;;  %s2319_s22 = int_to_ptr.vmem [resolvable:$true] %s1177_s22 }
 0x17c   : > { %s1930_s27 = scalar_lea.vmem %s2319_s22, %s2306_s8  ;;  %s2006_s28 = smov [#allocation7]  }
 0x17d   : > { %p1931_p1 = scmp.ne.s32.totalorder %s2319_s22, %s1930_s27  ;;  %s1934_s5 = sshll.u32 %s2006_s28, 4  ;;  %s1935_s5 = int_to_ptr.vmem [resolvable:$false] %s1934_s5 }
 0x17e   : > { %s1936_s16 = scalar_lea.vmem %s1935_s5, 8192  ;;  %p1937_p3 = scmp.lt.s32.totalorder %s2319_s22, %s1935_s5 }
 0x17f   : > { %p1932_p0 = pnand %p1931_p1, %p1383_p5  ;;  %p1938_p8 = scmp.lt.s32.totalorder %s1936_s16, %s1930_s27 }
 0x181   : > { %p1933_p7 = pneg %p1932_p0  ;;  %p1939_p9 = por %p1938_p8, %p1937_p3 }
 0x183   : > { %p1940_p6 = pnand %p1939_p9, %p1933_p7 }
 0x185   : > { %1943 = shalt.err (!%p1940_p6)
}
 0x186   : > { %s1944_s6 = scalar_lea.hbm %s2316_s20, %s2306_s8  ;;  %s1948_s26 = scalar_lea.hbm %s2367_s3, 4672 }
 0x187   : > { %p1945_p11 = scmp.ne.s32.totalorder %s2316_s20, %s1944_s6  ;;  %p1949_p10 = scmp.lt.s32.totalorder %s2316_s20, %s2367_s3 }
 0x188   : > { %p1950_p4 = scmp.lt.s32.totalorder %s1948_s26, %s1944_s6 }
 0x189   : > { %p1946_p12 = pnand %p1945_p11, %p1383_p5 }
 0x18a   : > { %p1951_p13 = por %p1950_p4, %p1949_p10 }
 0x18b   : > { %p1947_p2 = pneg %p1946_p12 }
 0x18d   : > { %p1952_p1 = pnand %p1951_p13, %p1947_p2 }
 0x18f   : > { %1955 = shalt.err (!%p1952_p1)
}
 0x190   : > { %s2007_s30 = smov 64   ;;  %s2008_s9 = smov 4  }
 0x191   : > { %1183 = dma.vmem_to_hbm [thread:$0]  (%p1383_p5), %s2319_s22, %s2306_s8, %s2316_s20, %s1158_s19, %s2007_s30, %s2007_s30, %s2008_s9  }
 0x192 PF: > { %s1192_s24 = sand.u32 1, %s1986_s12   ;;  %p2377_p0 = scmp.ne.s32.totalorder %s2373_s25, 0 }
 0x193   : > { %p2378_p7 = scmp.ge.s32.totalorder %s1998_s15, 2  ;;  %s1193_s10 = scalar_lea.sflag [#allocation4], %s1192_s24 }
 0x195   : > { %p1793_p3 = pnand %p2378_p7, %p2377_p0 }
 0x197   : > { %p1794_p8 = pneg %p1793_p3 }
 0x199   : > { %1981 = dma.done.wait (%p1794_p8), %s1193_s10, 4096  }
 0x19a   : > { %1983 = vsyncadd (%p1794_p8), %s1193_s10, 4294963200  ;;  %p17_p9 = scmp.ge.s32.totalorder %s2054_s18, 4   ;;  %s2379_s12 = smov %s1990_s13 }
 0x19b   : > { %s2380_s13 = smov %s1994_s14  ;;  %s2381_s14 = smov %s2066_s21 }
 0x19c   : > { %s2382_s15 = smov %s2054_s18  ;;  %19 = sbr.rel (!%p17_p9) target bundleno = 6 (0x6), region = 81 }
 0x1a1   :  { %1198 = vsyncpa [#allocation3], 1 }
 0x1a2   :  { %1200 = vsyncpa [#allocation3 + $0x1], 1 }
 0x1a3   :  { %1201 = vsyncpa [#allocation6], 1 }
 0x1a4   :  { %1202 = vsyncpa [#allocation4], 1 }
 0x1a5   :  { %1204 = vsyncpa [#allocation4 + $0x1], 1 }

</bundles_post_ra>
